<compile_context>
chip_gen: v7x
topology: tpu7x:2x2x1
jax: 0.10.0
libtpu: 0.0.40
codegen_flags: <defaults>
</compile_context>

<pallas_src>
import functools

import jax
import jax.numpy as jnp
from jax.experimental import pallas as pl
from jax.experimental.pallas import tpu as pltpu

_SUBLANE = 8
_LANE = 128
_STORAGE_DTYPE = jnp.bfloat16            # HBM storage dtype for weights/activations
_FALLBACK_VMEM_LIMIT = 48 * 1024 * 1024  # safe on every generation (incl. v7x 64 MiB)


def _round_up(n, m):
    return ((n + m - 1) // m) * m


def _vmem_limit_bytes():
    """Per-generation VMEM budget: ~80% of physical (≈102 MiB v5e/v6e, ≈51 MiB v7x)."""
    try:
        cap = int(pltpu.get_tpu_info().vmem_capacity_bytes)
        return max(32 * 1024 * 1024, min(int(cap * 0.8), cap - 8 * 1024 * 1024))
    except Exception:
        return _FALLBACK_VMEM_LIMIT


def _choose_time_tiles(T, Bp, Hp, Ip, vmem_limit):
    """Pick (recurrence time tile, projection time tile, padded T).

    The recurrence tile is as large as the VMEM budget allows (<=64 steps) so the
    ~0.35us/step pipeline overhead is amortized; the projection tile is a multiple
    of it so both grids cover the same padded T, with >=256 LHS rows for the MXU.
    """
    G4 = 4 * Hp
    tile = max(1, min(T, 64))

    def rec_block_bytes(t):
        return (2 * t * Bp * G4 * 2        # gx in  (bf16, double-buffered)
                + 2 * t * Bp * G4 * 2      # gx_next / out (bf16, double-buffered)
                + t * Bp * Hp * 4          # h block scratch (f32)
                + 2 * 2 * Hp * G4 * 2      # W_hh + W_ih_next (bf16, 2 bufs each)
                + 2 * Bp * Hp * 4)         # h / c carries (f32)

    while tile > 8 and rec_block_bytes(tile) > vmem_limit // 2:
        tile = max(8, tile // 2)
    # Prefer an exact divisor of T nearby (avoids a masked tail block entirely).
    for cand in range(tile, max(tile // 2, 1), -1):
        if T % cand == 0:
            tile = cand
            break
    Tp = _round_up(T, tile)
    nblocks = Tp // tile

    mult = 1
    while (mult * 2 <= 8
           and nblocks % (mult * 2) == 0
           and (mult * 2) * tile * Bp <= 1024
           and 2 * (mult * 2) * tile * Bp * (G4 + Ip) * 2 <= vmem_limit // 2):
        mult *= 2
    return tile, tile * mult, Tp


# ----------------------- layer-0 input projection (parallel) -----------------------
def _in_proj_kernel(x_ref, w_ref, b_ref, gx_ref):
    """gx = x @ W_ih^T + (b_ih + b_hh) for one block of timesteps.

    x_ref : (TT, B, F) bf16   w_ref : (F, 4H) bf16 (pre-transposed)   b_ref : (1, 4H) f32
    """
    tt, b, f = x_ref.shape
    g4 = w_ref.shape[1]
    x2 = x_ref[...].reshape(tt * b, f)
    gx = jnp.dot(x2, w_ref[...], preferred_element_type=jnp.float32) + b_ref[...]
    gx_ref[...] = gx.reshape(tt, b, g4).astype(gx_ref.dtype)


def _input_projection(x_tm, wih_t, bias, tile_t, vmem_limit):
    Tp, Bp, Ip = x_tm.shape
    G4 = wih_t.shape[1]
    return pl.pallas_call(
        _in_proj_kernel,
        out_shape=jax.ShapeDtypeStruct((Tp, Bp, G4), wih_t.dtype),
        grid_spec=pltpu.PrefetchScalarGridSpec(
            num_scalar_prefetch=0,
            grid=(Tp // tile_t,),
            in_specs=[
                pl.BlockSpec((tile_t, Bp, Ip), lambda t: (t, 0, 0)),
                pl.BlockSpec((Ip, G4), lambda t: (0, 0)),
                pl.BlockSpec((1, G4), lambda t: (0, 0)),
            ],
            out_specs=pl.BlockSpec((tile_t, Bp, G4), lambda t: (t, 0, 0)),
        ),
        compiler_params=pltpu.CompilerParams(
            dimension_semantics=("parallel",),     # shards across TCs on v7x
            vmem_limit_bytes=vmem_limit,
        ),
    )(x_tm, wih_t, bias)


# --------------------------- sequential recurrence kernels ---------------------------
def _make_recurrence_kernel(tile_t, hidden_p, t_valid, mode):
    """LSTM recurrence over one block of `tile_t` timesteps.

    mode == "next": fuse the NEXT layer's input projection (one block-level MXU
                    matmul, off the h-carry chain) and emit gx_next.
    mode == "fc":   last layer; fuse the final Linear on the last block.
    Padded tail timesteps (global_t >= t_valid) are masked: h/c are frozen.
    """
    H = hidden_p
    needs_mask = (t_valid % tile_t) != 0

    def _run_block(gx_ref, whh, h_ref, c_ref, hbuf_ref, tb):
        def step(i, carry):
            h, c = carry
            gates = gx_ref[i].astype(jnp.float32) + jnp.dot(
                h.astype(whh.dtype), whh, preferred_element_type=jnp.float32)
            i_g = jax.nn.sigmoid(gates[:, 0 * H:1 * H])
            f_g = jax.nn.sigmoid(gates[:, 1 * H:2 * H])
            g_g = jnp.tanh(gates[:, 2 * H:3 * H])
            o_g = jax.nn.sigmoid(gates[:, 3 * H:4 * H])
            c_new = f_g * c + i_g * g_g
            h_new = o_g * jnp.tanh(c_new)
            if needs_mask:
                valid = (tb * tile_t + i) < t_valid
                h_new = jnp.where(valid, h_new, h)
                c_new = jnp.where(valid, c_new, c)
            if hbuf_ref is not None:
                hbuf_ref[i] = h_new
            return h_new, c_new

        h, c = jax.lax.fori_loop(0, tile_t, step, (h_ref[...], c_ref[...]),
                                 unroll=min(tile_t, 8))
        h_ref[...] = h
        c_ref[...] = c
        return h

    if mode == "next":
        def kernel(gx_ref, whh_ref, wih_n_ref, bias_n_ref, gxo_ref,
                   h_ref, c_ref, hbuf_ref):
            tb = pl.program_id(0)

            @pl.when(tb == 0)
            def _():
                h_ref[...] = jnp.zeros_like(h_ref)
                c_ref[...] = jnp.zeros_like(c_ref)

            _run_block(gx_ref, whh_ref[...], h_ref, c_ref, hbuf_ref, tb)

            # Fused next-layer input projection for the whole block:
            # one (tile_t*Bp, Hp) x (Hp, 4Hp) matmul, off the serial h-carry chain.
            bp = hbuf_ref.shape[1]
            hblk = hbuf_ref[...].reshape(tile_t * bp, H).astype(wih_n_ref.dtype)
            gxn = jnp.dot(hblk, wih_n_ref[...],
                          preferred_element_type=jnp.float32) + bias_n_ref[...]
            gxo_ref[...] = gxn.reshape(gxo_ref.shape).astype(gxo_ref.dtype)
    else:  # mode == "fc"
        def kernel(gx_ref, whh_ref, fcw_ref, fcb_ref, out_ref, h_ref, c_ref):
            tb = pl.program_id(0)

            @pl.when(tb == 0)
            def _():
                h_ref[...] = jnp.zeros_like(h_ref)
                c_ref[...] = jnp.zeros_like(c_ref)

            h_last = _run_block(gx_ref, whh_ref[...], h_ref, c_ref, None, tb)

            @pl.when(tb == pl.num_programs(0) - 1)
            def _():
                out_ref[...] = (
                    jnp.dot(h_last.astype(fcw_ref.dtype), fcw_ref[...],
                            preferred_element_type=jnp.float32)
                    + fcb_ref[...]).astype(out_ref.dtype)

    return kernel


def _run_recurrence_next(gx, whh_t, wih_next_t, bias_next, tile_t, t_valid,
                         vmem_limit):
    """Intermediate LSTM layer; emits the NEXT layer's input gates (Tp, Bp, 4Hp)."""
    Tp, Bp, G4 = gx.shape
    Hp = whh_t.shape[0]
    kernel = _make_recurrence_kernel(tile_t, Hp, t_valid, mode="next")
    return pl.pallas_call(
        kernel,
        out_shape=jax.ShapeDtypeStruct((Tp, Bp, G4), wih_next_t.dtype),
        grid_spec=pltpu.PrefetchScalarGridSpec(
            num_scalar_prefetch=0,
            grid=(Tp // tile_t,),
            in_specs=[
                pl.BlockSpec((tile_t, Bp, G4), lambda t: (t, 0, 0)),
                # Constant index maps -> weights DMA'd once and stay resident.
                pl.BlockSpec((Hp, G4), lambda t: (0, 0)),
                pl.BlockSpec((Hp, G4), lambda t: (0, 0)),
                pl.BlockSpec((1, G4), lambda t: (0, 0)),
            ],
            out_specs=pl.BlockSpec((tile_t, Bp, G4), lambda t: (t, 0, 0)),
            scratch_shapes=[
                pltpu.VMEM((Bp, Hp), jnp.float32),          # h carry
                pltpu.VMEM((Bp, Hp), jnp.float32),          # c carry
                pltpu.VMEM((tile_t, Bp, Hp), jnp.float32),  # per-block hidden buffer
            ],
        ),
        compiler_params=pltpu.CompilerParams(
            dimension_semantics=("arbitrary",),              # recurrence => serial
            vmem_limit_bytes=vmem_limit,
        ),
    )(gx, whh_t, wih_next_t, bias_next)


def _run_recurrence_fc(gx, whh_t, fc_wt, fc_bias, tile_t, t_valid, vmem_limit):
    """Last LSTM layer with the Linear fused in: returns (Bp, Cp) f32."""
    Tp, Bp, G4 = gx.shape
    Hp = whh_t.shape[0]
    Cp = fc_wt.shape[1]
    kernel = _make_recurrence_kernel(tile_t, Hp, t_valid, mode="fc")
    return pl.pallas_call(
        kernel,
        out_shape=jax.ShapeDtypeStruct((Bp, Cp), jnp.float32),
        grid_spec=pltpu.PrefetchScalarGridSpec(
            num_scalar_prefetch=0,
            grid=(Tp // tile_t,),
            in_specs=[
                pl.BlockSpec((tile_t, Bp, G4), lambda t: (t, 0, 0)),
                pl.BlockSpec((Hp, G4), lambda t: (0, 0)),
                pl.BlockSpec((Hp, Cp), lambda t: (0, 0)),
                pl.BlockSpec((1, Cp), lambda t: (0, 0)),
            ],
            out_specs=pl.BlockSpec((Bp, Cp), lambda t: (0, 0)),
            scratch_shapes=[
                pltpu.VMEM((Bp, Hp), jnp.float32),
                pltpu.VMEM((Bp, Hp), jnp.float32),
            ],
        ),
        compiler_params=pltpu.CompilerParams(
            dimension_semantics=("arbitrary",),
            vmem_limit_bytes=vmem_limit,
        ),
    )(gx, whh_t, fc_wt, fc_bias)


# ------------------------------- parameter preparation -------------------------------
def prepare_params(lstm_params, fc_w, fc_b, hidden_size, param_dtype=_STORAGE_DTYPE):
    """Pad to vreg-aligned sizes, pre-transpose once, cast weights to storage dtype.

    lstm_params: list of (w_ih (4H,in), w_hh (4H,H), b_ih (4H,), b_hh (4H,)) torch layout.
    Returns per layer (W_ih^T (in_p,4Hp), W_hh^T (Hp,4Hp), bias (1,4Hp) f32),
    plus fc W^T (Hp,Cp) and fc bias (1,Cp) f32. Gate blocks padded per-gate so the
    [i|f|g|o] layout is preserved; padded rows/cols are zero so padded hidden units
    stay exactly 0 and padded lanes never affect real outputs.
    """
    H = hidden_size
    Hp = _round_up(H, _LANE)
    prepared = []
    for (w_ih, w_hh, b_ih, b_hh) in lstm_params:
        in_sz = w_ih.shape[1]
        in_p = _round_up(in_sz, _LANE)

        w_ih4 = jnp.pad(w_ih.reshape(4, H, in_sz),
                        ((0, 0), (0, Hp - H), (0, in_p - in_sz)))
        wih_t = jnp.transpose(w_ih4.reshape(4 * Hp, in_p)).astype(param_dtype)

        w_hh4 = jnp.pad(w_hh.reshape(4, H, H),
                        ((0, 0), (0, Hp - H), (0, Hp - H)))
        whh_t = jnp.transpose(w_hh4.reshape(4 * Hp, Hp)).astype(param_dtype)

        bias = jnp.pad((b_ih + b_hh).reshape(4, H),
                       ((0, 0), (0, Hp - H))).reshape(1, 4 * Hp).astype(jnp.float32)
        prepared.append((wih_t, whh_t, bias))

    C = fc_w.shape[0]
    Cp = _round_up(C, _LANE)
    fc_wt = jnp.transpose(jnp.pad(fc_w, ((0, Cp - C), (0, Hp - H)))).astype(param_dtype)
    fc_bias = jnp.pad(fc_b, (0, Cp - C)).reshape(1, Cp).astype(jnp.float32)
    return tuple(prepared), fc_wt, fc_bias


# ------------------------------------ full forward ------------------------------------
@functools.partial(jax.jit, static_argnames=("num_classes",))
def rnn_forward(x, lstm_prepared, fc_wt, fc_bias, *, num_classes):
    """x: (B, T, input_size) batch_first, as in the PyTorch module."""
    B, T, I = x.shape
    Bp = _round_up(B, _SUBLANE)
    Ip = lstm_prepared[0][0].shape[0]
    G4 = lstm_prepared[0][0].shape[1]
    Hp = G4 // 4
    storage_dtype = lstm_prepared[0][0].dtype

    vmem_limit = _vmem_limit_bytes()
    tile_rec, tile_proj, Tp = _choose_time_tiles(T, Bp, Hp, Ip, vmem_limit)

    # time-major layout + pad once; storage dtype at the HBM boundary only.
    x_tm = jnp.transpose(x, (1, 0, 2))
    x_tm = jnp.pad(x_tm, ((0, Tp - T), (0, Bp - B), (0, Ip - I))).astype(storage_dtype)

    n_layers = len(lstm_prepared)
    # Layer 0 input projection: fully parallel, big time tile.
    gx = _input_projection(x_tm, lstm_prepared[0][0], lstm_prepared[0][2],
                           tile_proj, vmem_limit)
    # Intermediate layers: recurrence with the next layer's projection fused in.
    for l in range(n_layers - 1):
        whh_t = lstm_prepared[l][1]
        wih_next, _, bias_next = lstm_prepared[l + 1]
        gx = _run_recurrence_next(gx, whh_t, wih_next, bias_next,
                                  tile_rec, T, vmem_limit)
    # Last layer: recurrence with the final Linear fused in.
    out_p = _run_recurrence_fc(gx, lstm_prepared[-1][1], fc_wt, fc_bias,
                               tile_rec, T, vmem_limit)
    return out_p[:B, :num_classes]


# ------------------------------------ init & reference ------------------------------------
def init_params(key, input_size, hidden_size, num_layers, num_classes):
    """Deterministic init mimicking torch's uniform(-1/sqrt(H), 1/sqrt(H)), torch layout."""
    bound = 1.0 / (hidden_size ** 0.5)
    lstm_params = []
    for layer in range(num_layers):
        in_sz = input_size if layer == 0 else hidden_size
        key, k1, k2, k3, k4 = jax.random.split(key, 5)
        w_ih = jax.random.uniform(k1, (4 * hidden_size, in_sz),
                                  minval=-bound, maxval=bound, dtype=jnp.float32)
        w_hh = jax.random.uniform(k2, (4 * hidden_size, hidden_size),
                                  minval=-bound, maxval=bound, dtype=jnp.float32)
        b_ih = jax.random.uniform(k3, (4 * hidden_size,),
                                  minval=-bound, maxval=bound, dtype=jnp.float32)
        b_hh = jax.random.uniform(k4, (4 * hidden_size,),
                                  minval=-bound, maxval=bound, dtype=jnp.float32)
        lstm_params.append((w_ih, w_hh, b_ih, b_hh))

    key, k5, k6 = jax.random.split(key, 3)
    fc_w = jax.random.uniform(k5, (num_classes, hidden_size),
                              minval=-bound, maxval=bound, dtype=jnp.float32)
    fc_b = jax.random.uniform(k6, (num_classes,),
                              minval=-bound, maxval=bound, dtype=jnp.float32)
    return lstm_params, fc_w, fc_b


def _reference_forward(x, lstm_params, fc_w, fc_b):
    """Pure-JAX (XLA, f32, HIGHEST precision) reference matching torch.nn.LSTM eval."""
    hp = jax.lax.Precision.HIGHEST
    B = x.shape[0]
    h_seq = x.astype(jnp.float32)
    for (w_ih, w_hh, b_ih, b_hh) in lstm_params:
        H = w_hh.shape[1]
        h = jnp.zeros((B, H), jnp.float32)
        c = jnp.zeros((B, H), jnp.float32)
        outs = []
        for t in range(h_seq.shape[1]):
            gates = (jnp.dot(h_seq[:, t], w_ih.T, precision=hp)
                     + jnp.dot(h, w_hh.T, precision=hp) + b_ih + b_hh)
            i_g = jax.nn.sigmoid(gates[:, 0 * H:1 * H])
            f_g = jax.nn.sigmoid(gates[:, 1 * H:2 * H])
            g_g = jnp.tanh(gates[:, 2 * H:3 * H])
            o_g = jax.nn.sigmoid(gates[:, 3 * H:4 * H])
            c = f_g * c + i_g * g_g
            h = o_g * jnp.tanh(c)
            outs.append(h)
        h_seq = jnp.stack(outs, axis=1)
    return jnp.dot(h_seq[:, -1], fc_w.T, precision=hp) + fc_b


if __name__ == "__main__":
    # Small shapes consistent with the module's forward: x is (batch, seq_len, input_size).
    batch, seq_len, input_size = 2, 8, 4
    hidden_size, num_layers, num_classes = 32, 2, 3

    key = jax.random.PRNGKey(0)
    key, kx = jax.random.split(key)
    x = jax.random.normal(kx, (batch, seq_len, input_size), dtype=jnp.float32)

    lstm_params, fc_w, fc_b = init_params(
        key, input_size, hidden_size, num_layers, num_classes
    )
    prepared_lstm, fc_wt, fc_bias = prepare_params(
        lstm_params, fc_w, fc_b, hidden_size
    )

    out = rnn_forward(x, prepared_lstm, fc_wt, fc_bias, num_classes=num_classes)
    jax.block_until_ready(out)
    assert out.shape == (batch, num_classes), out.shape

    # Kernel stores weights/gx in bf16 (f32 accumulation + f32 gate math), while the
    # reference is full-f32 HIGHEST precision -> documented bf16 tolerance.
    ref = _reference_forward(x, lstm_params, fc_w, fc_b)
    assert jnp.allclose(out, ref, atol=5e-2, rtol=5e-2), (
        "mismatch vs pure-JAX reference: max abs err = "
        f"{float(jnp.max(jnp.abs(out - ref)))}"
    )
    print("KERNEL_OK")
</pallas_src>

<mosaic_0001>
module attributes {stable_mosaic.version = 11 : i64} {
  func.func @_in_proj_kernel(%arg0: i32, %arg1: memref<8x8x128xbf16, #tpu.memory_space<vmem>>, %arg2: memref<128x512xbf16, #tpu.memory_space<vmem>>, %arg3: memref<1x512xf32, #tpu.memory_space<vmem>>, %arg4: memref<8x8x512xbf16, #tpu.memory_space<vmem>>) attributes {dimension_semantics = [#tpu.dimension_semantics<parallel>], iteration_bounds = array<i64: 1>, scalar_prefetch = 0 : i64, scratch_operands = 0 : i64, tpu.core_type = #tpu.core_type<tc>, window_params = [{transform_indices = @transform_0, window_bounds = array<i64: 8, 8, 128>}, {pipeline_mode = #tpu.pipeline_mode<synchronous>, transform_indices = @transform_1, window_bounds = array<i64: 128, 512>}, {pipeline_mode = #tpu.pipeline_mode<synchronous>, transform_indices = @transform_2, window_bounds = array<i64: 1, 512>}, {transform_indices = @transform_3, window_bounds = array<i64: 8, 8, 512>}]} {
    %c0 = arith.constant 0 : index
    %c0_0 = arith.constant 0 : index
    %c0_1 = arith.constant 0 : index
    %0 = vector.load %arg1[%c0, %c0_0, %c0_1] : memref<8x8x128xbf16, #tpu.memory_space<vmem>>, vector<8x8x128xbf16>
    %1 = vector.shape_cast %0 : vector<8x8x128xbf16> to vector<64x128xbf16>
    %c0_2 = arith.constant 0 : index
    %c0_3 = arith.constant 0 : index
    %2 = vector.load %arg2[%c0_2, %c0_3] : memref<128x512xbf16, #tpu.memory_space<vmem>>, vector<128x512xbf16>
    %cst = arith.constant dense<0.000000e+00> : vector<64x512xf32>
    %3 = tpu.matmul %1, %2, %cst {dimension_numbers = #tpu.dot_dimension_numbers<[1], [0], [0], [1], [0, 0, 1, 1], [], []>} : vector<64x128xbf16>, vector<128x512xbf16>, vector<64x512xf32> -> vector<64x512xf32>
    %c0_4 = arith.constant 0 : index
    %c0_5 = arith.constant 0 : index
    %4 = vector.load %arg3[%c0_4, %c0_5] : memref<1x512xf32, #tpu.memory_space<vmem>>, vector<1x512xf32>
    %5 = vector.broadcast %4 : vector<1x512xf32> to vector<64x512xf32>
    %6 = arith.addf %3, %5 : vector<64x512xf32>
    %7 = vector.shape_cast %6 : vector<64x512xf32> to vector<8x8x512xf32>
    %8 = arith.truncf %7 : vector<8x8x512xf32> to vector<8x8x512xbf16>
    %c0_6 = arith.constant 0 : index
    %c0_7 = arith.constant 0 : index
    %c0_8 = arith.constant 0 : index
    %9 = vector.load %arg4[%c0_6, %c0_7, %c0_8] : memref<8x8x512xbf16, #tpu.memory_space<vmem>>, vector<8x8x512xbf16>
    tpu.vector_store %arg4[%c0_6, %c0_7, %c0_8], %8 {strides = array<i32>} : memref<8x8x512xbf16, #tpu.memory_space<vmem>>, vector<8x8x512xbf16>,
    return
  }
  func.func @transform_0(%arg0: i32) -> (i32, i32, i32) {
    %c0_i32 = arith.constant 0 : i32
    %c0_i32_0 = arith.constant 0 : i32
    %c0_i32_1 = arith.constant 0 : i32
    return %arg0, %c0_i32, %c0_i32_0 : i32, i32, i32
  }
  func.func @transform_1(%arg0: i32) -> (i32, i32) {
    %c0_i32 = arith.constant 0 : i32
    %c0_i32_0 = arith.constant 0 : i32
    %c0_i32_1 = arith.constant 0 : i32
    return %c0_i32, %c0_i32_0 : i32, i32
  }
  func.func @transform_2(%arg0: i32) -> (i32, i32) {
    %c0_i32 = arith.constant 0 : i32
    %c0_i32_0 = arith.constant 0 : i32
    %c0_i32_1 = arith.constant 0 : i32
    return %c0_i32, %c0_i32_0 : i32, i32
  }
  func.func @transform_3(%arg0: i32) -> (i32, i32, i32) {
    %c0_i32 = arith.constant 0 : i32
    %c0_i32_0 = arith.constant 0 : i32
    %c0_i32_1 = arith.constant 0 : i32
    return %arg0, %c0_i32, %c0_i32_0 : i32, i32, i32
  }
}

module attributes {stable_mosaic.version = 11 : i64} {
  func.func @kernel(%arg0: i32, %arg1: memref<8x8x512xbf16, #tpu.memory_space<vmem>>, %arg2: memref<128x512xbf16, #tpu.memory_space<vmem>>, %arg3: memref<128x128xbf16, #tpu.memory_space<vmem>>, %arg4: memref<1x128xf32, #tpu.memory_space<vmem>>, %arg5: memref<8x128xf32, #tpu.memory_space<vmem>>, %arg6: memref<8x128xf32, #tpu.memory_space<vmem>>, %arg7: memref<8x128xf32, #tpu.memory_space<vmem>>) attributes {dimension_semantics = [#tpu.dimension_semantics<arbitrary>], iteration_bounds = array<i64: 1>, scalar_prefetch = 0 : i64, scratch_operands = 2 : i64, tpu.core_type = #tpu.core_type<tc>, window_params = [{transform_indices = @transform_0, window_bounds = array<i64: 8, 8, 512>}, {pipeline_mode = #tpu.pipeline_mode<synchronous>, transform_indices = @transform_1, window_bounds = array<i64: 128, 512>}, {pipeline_mode = #tpu.pipeline_mode<synchronous>, transform_indices = @transform_2, window_bounds = array<i64: 128, 128>}, {pipeline_mode = #tpu.pipeline_mode<synchronous>, transform_indices = @transform_3, window_bounds = array<i64: 1, 128>}, {pipeline_mode = #tpu.pipeline_mode<synchronous>, transform_indices = @transform_4, window_bounds = array<i64: 8, 128>}]} {
    %c0_i32 = arith.constant 0 : i32
    %0 = arith.cmpi eq, %arg0, %c0_i32 : i32
    %1 = arith.extui %0 : i1 to i32
    %c0_i32_0 = arith.constant 0 : i32
    %2 = arith.cmpi ne, %1, %c0_i32_0 : i32
    scf.if %2 {
      %cst_60 = arith.constant 0.000000e+00 : f32
      %267 = vector.broadcast %cst_60 : f32 to vector<8x128xf32>
      %c0_61 = arith.constant 0 : index
      %c0_62 = arith.constant 0 : index
      %268 = vector.load %arg6[%c0_61, %c0_62] : memref<8x128xf32, #tpu.memory_space<vmem>>, vector<8x128xf32>
      tpu.vector_store %arg6[%c0_61, %c0_62], %267 {strides = array<i32>} : memref<8x128xf32, #tpu.memory_space<vmem>>, vector<8x128xf32>,
      %cst_63 = arith.constant 0.000000e+00 : f32
      %269 = vector.broadcast %cst_63 : f32 to vector<8x128xf32>
      %c0_64 = arith.constant 0 : index
      %c0_65 = arith.constant 0 : index
      %270 = vector.load %arg7[%c0_64, %c0_65] : memref<8x128xf32, #tpu.memory_space<vmem>>, vector<8x128xf32>
      tpu.vector_store %arg7[%c0_64, %c0_65], %269 {strides = array<i32>} : memref<8x128xf32, #tpu.memory_space<vmem>>, vector<8x128xf32>,
    } else {
    }
    %c0 = arith.constant 0 : index
    %c0_1 = arith.constant 0 : index
    %3 = vector.load %arg2[%c0, %c0_1] : memref<128x512xbf16, #tpu.memory_space<vmem>>, vector<128x512xbf16>
    %c0_2 = arith.constant 0 : index
    %c0_3 = arith.constant 0 : index
    %4 = vector.load %arg6[%c0_2, %c0_3] : memref<8x128xf32, #tpu.memory_space<vmem>>, vector<8x128xf32>
    %c0_4 = arith.constant 0 : index
    %c0_5 = arith.constant 0 : index
    %5 = vector.load %arg7[%c0_4, %c0_5] : memref<8x128xf32, #tpu.memory_space<vmem>>, vector<8x128xf32>
    %c0_i32_6 = arith.constant 0 : i32
    %6 = arith.index_cast %c0_i32_6 : i32 to index
    %c0_7 = arith.constant 0 : index
    %c0_8 = arith.constant 0 : index
    %7 = vector.load %arg1[%6, %c0_7, %c0_8] : memref<8x8x512xbf16, #tpu.memory_space<vmem>>, vector<1x8x512xbf16>
    %8 = vector.shape_cast %7 : vector<1x8x512xbf16> to vector<8x512xbf16>
    %9 = arith.extf %8 : vector<8x512xbf16> to vector<8x512xf32>
    %10 = arith.truncf %4 : vector<8x128xf32> to vector<8x128xbf16>
    %cst = arith.constant dense<0.000000e+00> : vector<8x512xf32>
    %11 = tpu.matmul %10, %3, %cst {dimension_numbers = #tpu.dot_dimension_numbers<[1], [0], [0], [1], [0, 0, 1, 1], [], []>} : vector<8x128xbf16>, vector<128x512xbf16>, vector<8x512xf32> -> vector<8x512xf32>
    %12 = arith.addf %9, %11 : vector<8x512xf32>
    %13 = vector.extract_strided_slice %12 {offsets = [0, 0], sizes = [8, 128], strides = [1, 1]} : vector<8x512xf32> to vector<8x128xf32>
    %14 = arith.negf %13 : vector<8x128xf32>
    %15 = math.exp %14 : vector<8x128xf32>
    %cst_9 = arith.constant 1.000000e+00 : f32
    %16 = vector.broadcast %cst_9 : f32 to vector<8x128xf32>
    %17 = arith.addf %16, %15 : vector<8x128xf32>
    %18 = arith.divf %16, %17 : vector<8x128xf32>
    %19 = vector.extract_strided_slice %12 {offsets = [0, 128], sizes = [8, 128], strides = [1, 1]} : vector<8x512xf32> to vector<8x128xf32>
    %20 = arith.negf %19 : vector<8x128xf32>
    %21 = math.exp %20 : vector<8x128xf32>
    %cst_10 = arith.constant 1.000000e+00 : f32
    %22 = vector.broadcast %cst_10 : f32 to vector<8x128xf32>
    %23 = arith.addf %22, %21 : vector<8x128xf32>
    %24 = arith.divf %22, %23 : vector<8x128xf32>
    %25 = vector.extract_strided_slice %12 {offsets = [0, 256], sizes = [8, 128], strides = [1, 1]} : vector<8x512xf32> to vector<8x128xf32>
    %26 = math.tanh %25 : vector<8x128xf32>
    %27 = vector.extract_strided_slice %12 {offsets = [0, 384], sizes = [8, 128], strides = [1, 1]} : vector<8x512xf32> to vector<8x128xf32>
    %28 = arith.negf %27 : vector<8x128xf32>
    %29 = math.exp %28 : vector<8x128xf32>
    %cst_11 = arith.constant 1.000000e+00 : f32
    %30 = vector.broadcast %cst_11 : f32 to vector<8x128xf32>
    %31 = arith.addf %30, %29 : vector<8x128xf32>
    %32 = arith.divf %30, %31 : vector<8x128xf32>
    %33 = arith.mulf %24, %5 : vector<8x128xf32>
    %34 = arith.mulf %18, %26 : vector<8x128xf32>
    %35 = arith.addf %33, %34 : vector<8x128xf32>
    %36 = math.tanh %35 : vector<8x128xf32>
    %37 = arith.mulf %32, %36 : vector<8x128xf32>
    %c1_i32 = arith.constant 1 : i32
    %38 = arith.index_cast %c1_i32 : i32 to index
    %c0_12 = arith.constant 0 : index
    %c0_13 = arith.constant 0 : index
    %39 = vector.load %arg1[%38, %c0_12, %c0_13] : memref<8x8x512xbf16, #tpu.memory_space<vmem>>, vector<1x8x512xbf16>
    %40 = vector.shape_cast %39 : vector<1x8x512xbf16> to vector<8x512xbf16>
    %41 = arith.extf %40 : vector<8x512xbf16> to vector<8x512xf32>
    %42 = arith.truncf %37 : vector<8x128xf32> to vector<8x128xbf16>
    %cst_14 = arith.constant dense<0.000000e+00> : vector<8x512xf32>
    %43 = tpu.matmul %42, %3, %cst_14 {dimension_numbers = #tpu.dot_dimension_numbers<[1], [0], [0], [1], [0, 0, 1, 1], [], []>} : vector<8x128xbf16>, vector<128x512xbf16>, vector<8x512xf32> -> vector<8x512xf32>
    %44 = arith.addf %41, %43 : vector<8x512xf32>
    %45 = vector.extract_strided_slice %44 {offsets = [0, 0], sizes = [8, 128], strides = [1, 1]} : vector<8x512xf32> to vector<8x128xf32>
    %46 = arith.negf %45 : vector<8x128xf32>
    %47 = math.exp %46 : vector<8x128xf32>
    %cst_15 = arith.constant 1.000000e+00 : f32
    %48 = vector.broadcast %cst_15 : f32 to vector<8x128xf32>
    %49 = arith.addf %48, %47 : vector<8x128xf32>
    %50 = arith.divf %48, %49 : vector<8x128xf32>
    %51 = vector.extract_strided_slice %44 {offsets = [0, 128], sizes = [8, 128], strides = [1, 1]} : vector<8x512xf32> to vector<8x128xf32>
    %52 = arith.negf %51 : vector<8x128xf32>
    %53 = math.exp %52 : vector<8x128xf32>
    %cst_16 = arith.constant 1.000000e+00 : f32
    %54 = vector.broadcast %cst_16 : f32 to vector<8x128xf32>
    %55 = arith.addf %54, %53 : vector<8x128xf32>
    %56 = arith.divf %54, %55 : vector<8x128xf32>
    %57 = vector.extract_strided_slice %44 {offsets = [0, 256], sizes = [8, 128], strides = [1, 1]} : vector<8x512xf32> to vector<8x128xf32>
    %58 = math.tanh %57 : vector<8x128xf32>
    %59 = vector.extract_strided_slice %44 {offsets = [0, 384], sizes = [8, 128], strides = [1, 1]} : vector<8x512xf32> to vector<8x128xf32>
    %60 = arith.negf %59 : vector<8x128xf32>
    %61 = math.exp %60 : vector<8x128xf32>
    %cst_17 = arith.constant 1.000000e+00 : f32
    %62 = vector.broadcast %cst_17 : f32 to vector<8x128xf32>
    %63 = arith.addf %62, %61 : vector<8x128xf32>
    %64 = arith.divf %62, %63 : vector<8x128xf32>
    %65 = arith.mulf %56, %35 : vector<8x128xf32>
    %66 = arith.mulf %50, %58 : vector<8x128xf32>
    %67 = arith.addf %65, %66 : vector<8x128xf32>
    %68 = math.tanh %67 : vector<8x128xf32>
    %69 = arith.mulf %64, %68 : vector<8x128xf32>
    %c2_i32 = arith.constant 2 : i32
    %70 = arith.index_cast %c2_i32 : i32 to index
    %c0_18 = arith.constant 0 : index
    %c0_19 = arith.constant 0 : index
    %71 = vector.load %arg1[%70, %c0_18, %c0_19] : memref<8x8x512xbf16, #tpu.memory_space<vmem>>, vector<1x8x512xbf16>
    %72 = vector.shape_cast %71 : vector<1x8x512xbf16> to vector<8x512xbf16>
    %73 = arith.extf %72 : vector<8x512xbf16> to vector<8x512xf32>
    %74 = arith.truncf %69 : vector<8x128xf32> to vector<8x128xbf16>
    %cst_20 = arith.constant dense<0.000000e+00> : vector<8x512xf32>
    %75 = tpu.matmul %74, %3, %cst_20 {dimension_numbers = #tpu.dot_dimension_numbers<[1], [0], [0], [1], [0, 0, 1, 1], [], []>} : vector<8x128xbf16>, vector<128x512xbf16>, vector<8x512xf32> -> vector<8x512xf32>
    %76 = arith.addf %73, %75 : vector<8x512xf32>
    %77 = vector.extract_strided_slice %76 {offsets = [0, 0], sizes = [8, 128], strides = [1, 1]} : vector<8x512xf32> to vector<8x128xf32>
    %78 = arith.negf %77 : vector<8x128xf32>
    %79 = math.exp %78 : vector<8x128xf32>
    %cst_21 = arith.constant 1.000000e+00 : f32
    %80 = vector.broadcast %cst_21 : f32 to vector<8x128xf32>
    %81 = arith.addf %80, %79 : vector<8x128xf32>
    %82 = arith.divf %80, %81 : vector<8x128xf32>
    %83 = vector.extract_strided_slice %76 {offsets = [0, 128], sizes = [8, 128], strides = [1, 1]} : vector<8x512xf32> to vector<8x128xf32>
    %84 = arith.negf %83 : vector<8x128xf32>
    %85 = math.exp %84 : vector<8x128xf32>
    %cst_22 = arith.constant 1.000000e+00 : f32
    %86 = vector.broadcast %cst_22 : f32 to vector<8x128xf32>
    %87 = arith.addf %86, %85 : vector<8x128xf32>
    %88 = arith.divf %86, %87 : vector<8x128xf32>
    %89 = vector.extract_strided_slice %76 {offsets = [0, 256], sizes = [8, 128], strides = [1, 1]} : vector<8x512xf32> to vector<8x128xf32>
    %90 = math.tanh %89 : vector<8x128xf32>
    %91 = vector.extract_strided_slice %76 {offsets = [0, 384], sizes = [8, 128], strides = [1, 1]} : vector<8x512xf32> to vector<8x128xf32>
    %92 = arith.negf %91 : vector<8x128xf32>
    %93 = math.exp %92 : vector<8x128xf32>
    %cst_23 = arith.constant 1.000000e+00 : f32
    %94 = vector.broadcast %cst_23 : f32 to vector<8x128xf32>
    %95 = arith.addf %94, %93 : vector<8x128xf32>
    %96 = arith.divf %94, %95 : vector<8x128xf32>
    %97 = arith.mulf %88, %67 : vector<8x128xf32>
    %98 = arith.mulf %82, %90 : vector<8x128xf32>
    %99 = arith.addf %97, %98 : vector<8x128xf32>
    %100 = math.tanh %99 : vector<8x128xf32>
    %101 = arith.mulf %96, %100 : vector<8x128xf32>
    %c3_i32 = arith.constant 3 : i32
    %102 = arith.index_cast %c3_i32 : i32 to index
    %c0_24 = arith.constant 0 : index
    %c0_25 = arith.constant 0 : index
    %103 = vector.load %arg1[%102, %c0_24, %c0_25] : memref<8x8x512xbf16, #tpu.memory_space<vmem>>, vector<1x8x512xbf16>
    %104 = vector.shape_cast %103 : vector<1x8x512xbf16> to vector<8x512xbf16>
    %105 = arith.extf %104 : vector<8x512xbf16> to vector<8x512xf32>
    %106 = arith.truncf %101 : vector<8x128xf32> to vector<8x128xbf16>
    %cst_26 = arith.constant dense<0.000000e+00> : vector<8x512xf32>
    %107 = tpu.matmul %106, %3, %cst_26 {dimension_numbers = #tpu.dot_dimension_numbers<[1], [0], [0], [1], [0, 0, 1, 1], [], []>} : vector<8x128xbf16>, vector<128x512xbf16>, vector<8x512xf32> -> vector<8x512xf32>
    %108 = arith.addf %105, %107 : vector<8x512xf32>
    %109 = vector.extract_strided_slice %108 {offsets = [0, 0], sizes = [8, 128], strides = [1, 1]} : vector<8x512xf32> to vector<8x128xf32>
    %110 = arith.negf %109 : vector<8x128xf32>
    %111 = math.exp %110 : vector<8x128xf32>
    %cst_27 = arith.constant 1.000000e+00 : f32
    %112 = vector.broadcast %cst_27 : f32 to vector<8x128xf32>
    %113 = arith.addf %112, %111 : vector<8x128xf32>
    %114 = arith.divf %112, %113 : vector<8x128xf32>
    %115 = vector.extract_strided_slice %108 {offsets = [0, 128], sizes = [8, 128], strides = [1, 1]} : vector<8x512xf32> to vector<8x128xf32>
    %116 = arith.negf %115 : vector<8x128xf32>
    %117 = math.exp %116 : vector<8x128xf32>
    %cst_28 = arith.constant 1.000000e+00 : f32
    %118 = vector.broadcast %cst_28 : f32 to vector<8x128xf32>
    %119 = arith.addf %118, %117 : vector<8x128xf32>
    %120 = arith.divf %118, %119 : vector<8x128xf32>
    %121 = vector.extract_strided_slice %108 {offsets = [0, 256], sizes = [8, 128], strides = [1, 1]} : vector<8x512xf32> to vector<8x128xf32>
    %122 = math.tanh %121 : vector<8x128xf32>
    %123 = vector.extract_strided_slice %108 {offsets = [0, 384], sizes = [8, 128], strides = [1, 1]} : vector<8x512xf32> to vector<8x128xf32>
    %124 = arith.negf %123 : vector<8x128xf32>
    %125 = math.exp %124 : vector<8x128xf32>
    %cst_29 = arith.constant 1.000000e+00 : f32
    %126 = vector.broadcast %cst_29 : f32 to vector<8x128xf32>
    %127 = arith.addf %126, %125 : vector<8x128xf32>
    %128 = arith.divf %126, %127 : vector<8x128xf32>
    %129 = arith.mulf %120, %99 : vector<8x128xf32>
    %130 = arith.mulf %114, %122 : vector<8x128xf32>
    %131 = arith.addf %129, %130 : vector<8x128xf32>
    %132 = math.tanh %131 : vector<8x128xf32>
    %133 = arith.mulf %128, %132 : vector<8x128xf32>
    %c4_i32 = arith.constant 4 : i32
    %134 = arith.index_cast %c4_i32 : i32 to index
    %c0_30 = arith.constant 0 : index
    %c0_31 = arith.constant 0 : index
    %135 = vector.load %arg1[%134, %c0_30, %c0_31] : memref<8x8x512xbf16, #tpu.memory_space<vmem>>, vector<1x8x512xbf16>
    %136 = vector.shape_cast %135 : vector<1x8x512xbf16> to vector<8x512xbf16>
    %137 = arith.extf %136 : vector<8x512xbf16> to vector<8x512xf32>
    %138 = arith.truncf %133 : vector<8x128xf32> to vector<8x128xbf16>
    %cst_32 = arith.constant dense<0.000000e+00> : vector<8x512xf32>
    %139 = tpu.matmul %138, %3, %cst_32 {dimension_numbers = #tpu.dot_dimension_numbers<[1], [0], [0], [1], [0, 0, 1, 1], [], []>} : vector<8x128xbf16>, vector<128x512xbf16>, vector<8x512xf32> -> vector<8x512xf32>
    %140 = arith.addf %137, %139 : vector<8x512xf32>
    %141 = vector.extract_strided_slice %140 {offsets = [0, 0], sizes = [8, 128], strides = [1, 1]} : vector<8x512xf32> to vector<8x128xf32>
    %142 = arith.negf %141 : vector<8x128xf32>
    %143 = math.exp %142 : vector<8x128xf32>
    %cst_33 = arith.constant 1.000000e+00 : f32
    %144 = vector.broadcast %cst_33 : f32 to vector<8x128xf32>
    %145 = arith.addf %144, %143 : vector<8x128xf32>
    %146 = arith.divf %144, %145 : vector<8x128xf32>
    %147 = vector.extract_strided_slice %140 {offsets = [0, 128], sizes = [8, 128], strides = [1, 1]} : vector<8x512xf32> to vector<8x128xf32>
    %148 = arith.negf %147 : vector<8x128xf32>
    %149 = math.exp %148 : vector<8x128xf32>
    %cst_34 = arith.constant 1.000000e+00 : f32
    %150 = vector.broadcast %cst_34 : f32 to vector<8x128xf32>
    %151 = arith.addf %150, %149 : vector<8x128xf32>
    %152 = arith.divf %150, %151 : vector<8x128xf32>
    %153 = vector.extract_strided_slice %140 {offsets = [0, 256], sizes = [8, 128], strides = [1, 1]} : vector<8x512xf32> to vector<8x128xf32>
    %154 = math.tanh %153 : vector<8x128xf32>
    %155 = vector.extract_strided_slice %140 {offsets = [0, 384], sizes = [8, 128], strides = [1, 1]} : vector<8x512xf32> to vector<8x128xf32>
    %156 = arith.negf %155 : vector<8x128xf32>
    %157 = math.exp %156 : vector<8x128xf32>
    %cst_35 = arith.constant 1.000000e+00 : f32
    %158 = vector.broadcast %cst_35 : f32 to vector<8x128xf32>
    %159 = arith.addf %158, %157 : vector<8x128xf32>
    %160 = arith.divf %158, %159 : vector<8x128xf32>
    %161 = arith.mulf %152, %131 : vector<8x128xf32>
    %162 = arith.mulf %146, %154 : vector<8x128xf32>
    %163 = arith.addf %161, %162 : vector<8x128xf32>
    %164 = math.tanh %163 : vector<8x128xf32>
    %165 = arith.mulf %160, %164 : vector<8x128xf32>
    %c5_i32 = arith.constant 5 : i32
    %166 = arith.index_cast %c5_i32 : i32 to index
    %c0_36 = arith.constant 0 : index
    %c0_37 = arith.constant 0 : index
    %167 = vector.load %arg1[%166, %c0_36, %c0_37] : memref<8x8x512xbf16, #tpu.memory_space<vmem>>, vector<1x8x512xbf16>
    %168 = vector.shape_cast %167 : vector<1x8x512xbf16> to vector<8x512xbf16>
    %169 = arith.extf %168 : vector<8x512xbf16> to vector<8x512xf32>
    %170 = arith.truncf %165 : vector<8x128xf32> to vector<8x128xbf16>
    %cst_38 = arith.constant dense<0.000000e+00> : vector<8x512xf32>
    %171 = tpu.matmul %170, %3, %cst_38 {dimension_numbers = #tpu.dot_dimension_numbers<[1], [0], [0], [1], [0, 0, 1, 1], [], []>} : vector<8x128xbf16>, vector<128x512xbf16>, vector<8x512xf32> -> vector<8x512xf32>
    %172 = arith.addf %169, %171 : vector<8x512xf32>
    %173 = vector.extract_strided_slice %172 {offsets = [0, 0], sizes = [8, 128], strides = [1, 1]} : vector<8x512xf32> to vector<8x128xf32>
    %174 = arith.negf %173 : vector<8x128xf32>
    %175 = math.exp %174 : vector<8x128xf32>
    %cst_39 = arith.constant 1.000000e+00 : f32
    %176 = vector.broadcast %cst_39 : f32 to vector<8x128xf32>
    %177 = arith.addf %176, %175 : vector<8x128xf32>
    %178 = arith.divf %176, %177 : vector<8x128xf32>
    %179 = vector.extract_strided_slice %172 {offsets = [0, 128], sizes = [8, 128], strides = [1, 1]} : vector<8x512xf32> to vector<8x128xf32>
    %180 = arith.negf %179 : vector<8x128xf32>
    %181 = math.exp %180 : vector<8x128xf32>
    %cst_40 = arith.constant 1.000000e+00 : f32
    %182 = vector.broadcast %cst_40 : f32 to vector<8x128xf32>
    %183 = arith.addf %182, %181 : vector<8x128xf32>
    %184 = arith.divf %182, %183 : vector<8x128xf32>
    %185 = vector.extract_strided_slice %172 {offsets = [0, 256], sizes = [8, 128], strides = [1, 1]} : vector<8x512xf32> to vector<8x128xf32>
    %186 = math.tanh %185 : vector<8x128xf32>
    %187 = vector.extract_strided_slice %172 {offsets = [0, 384], sizes = [8, 128], strides = [1, 1]} : vector<8x512xf32> to vector<8x128xf32>
    %188 = arith.negf %187 : vector<8x128xf32>
    %189 = math.exp %188 : vector<8x128xf32>
    %cst_41 = arith.constant 1.000000e+00 : f32
    %190 = vector.broadcast %cst_41 : f32 to vector<8x128xf32>
    %191 = arith.addf %190, %189 : vector<8x128xf32>
    %192 = arith.divf %190, %191 : vector<8x128xf32>
    %193 = arith.mulf %184, %163 : vector<8x128xf32>
    %194 = arith.mulf %178, %186 : vector<8x128xf32>
    %195 = arith.addf %193, %194 : vector<8x128xf32>
    %196 = math.tanh %195 : vector<8x128xf32>
    %197 = arith.mulf %192, %196 : vector<8x128xf32>
    %c6_i32 = arith.constant 6 : i32
    %198 = arith.index_cast %c6_i32 : i32 to index
    %c0_42 = arith.constant 0 : index
    %c0_43 = arith.constant 0 : index
    %199 = vector.load %arg1[%198, %c0_42, %c0_43] : memref<8x8x512xbf16, #tpu.memory_space<vmem>>, vector<1x8x512xbf16>
    %200 = vector.shape_cast %199 : vector<1x8x512xbf16> to vector<8x512xbf16>
    %201 = arith.extf %200 : vector<8x512xbf16> to vector<8x512xf32>
    %202 = arith.truncf %197 : vector<8x128xf32> to vector<8x128xbf16>
    %cst_44 = arith.constant dense<0.000000e+00> : vector<8x512xf32>
    %203 = tpu.matmul %202, %3, %cst_44 {dimension_numbers = #tpu.dot_dimension_numbers<[1], [0], [0], [1], [0, 0, 1, 1], [], []>} : vector<8x128xbf16>, vector<128x512xbf16>, vector<8x512xf32> -> vector<8x512xf32>
    %204 = arith.addf %201, %203 : vector<8x512xf32>
    %205 = vector.extract_strided_slice %204 {offsets = [0, 0], sizes = [8, 128], strides = [1, 1]} : vector<8x512xf32> to vector<8x128xf32>
    %206 = arith.negf %205 : vector<8x128xf32>
    %207 = math.exp %206 : vector<8x128xf32>
    %cst_45 = arith.constant 1.000000e+00 : f32
    %208 = vector.broadcast %cst_45 : f32 to vector<8x128xf32>
    %209 = arith.addf %208, %207 : vector<8x128xf32>
    %210 = arith.divf %208, %209 : vector<8x128xf32>
    %211 = vector.extract_strided_slice %204 {offsets = [0, 128], sizes = [8, 128], strides = [1, 1]} : vector<8x512xf32> to vector<8x128xf32>
    %212 = arith.negf %211 : vector<8x128xf32>
    %213 = math.exp %212 : vector<8x128xf32>
    %cst_46 = arith.constant 1.000000e+00 : f32
    %214 = vector.broadcast %cst_46 : f32 to vector<8x128xf32>
    %215 = arith.addf %214, %213 : vector<8x128xf32>
    %216 = arith.divf %214, %215 : vector<8x128xf32>
    %217 = vector.extract_strided_slice %204 {offsets = [0, 256], sizes = [8, 128], strides = [1, 1]} : vector<8x512xf32> to vector<8x128xf32>
    %218 = math.tanh %217 : vector<8x128xf32>
    %219 = vector.extract_strided_slice %204 {offsets = [0, 384], sizes = [8, 128], strides = [1, 1]} : vector<8x512xf32> to vector<8x128xf32>
    %220 = arith.negf %219 : vector<8x128xf32>
    %221 = math.exp %220 : vector<8x128xf32>
    %cst_47 = arith.constant 1.000000e+00 : f32
    %222 = vector.broadcast %cst_47 : f32 to vector<8x128xf32>
    %223 = arith.addf %222, %221 : vector<8x128xf32>
    %224 = arith.divf %222, %223 : vector<8x128xf32>
    %225 = arith.mulf %216, %195 : vector<8x128xf32>
    %226 = arith.mulf %210, %218 : vector<8x128xf32>
    %227 = arith.addf %225, %226 : vector<8x128xf32>
    %228 = math.tanh %227 : vector<8x128xf32>
    %229 = arith.mulf %224, %228 : vector<8x128xf32>
    %c7_i32 = arith.constant 7 : i32
    %230 = arith.index_cast %c7_i32 : i32 to index
    %c0_48 = arith.constant 0 : index
    %c0_49 = arith.constant 0 : index
    %231 = vector.load %arg1[%230, %c0_48, %c0_49] : memref<8x8x512xbf16, #tpu.memory_space<vmem>>, vector<1x8x512xbf16>
    %232 = vector.shape_cast %231 : vector<1x8x512xbf16> to vector<8x512xbf16>
    %233 = arith.extf %232 : vector<8x512xbf16> to vector<8x512xf32>
    %234 = arith.truncf %229 : vector<8x128xf32> to vector<8x128xbf16>
    %cst_50 = arith.constant dense<0.000000e+00> : vector<8x512xf32>
    %235 = tpu.matmul %234, %3, %cst_50 {dimension_numbers = #tpu.dot_dimension_numbers<[1], [0], [0], [1], [0, 0, 1, 1], [], []>} : vector<8x128xbf16>, vector<128x512xbf16>, vector<8x512xf32> -> vector<8x512xf32>
    %236 = arith.addf %233, %235 : vector<8x512xf32>
    %237 = vector.extract_strided_slice %236 {offsets = [0, 0], sizes = [8, 128], strides = [1, 1]} : vector<8x512xf32> to vector<8x128xf32>
    %238 = arith.negf %237 : vector<8x128xf32>
    %239 = math.exp %238 : vector<8x128xf32>
    %cst_51 = arith.constant 1.000000e+00 : f32
    %240 = vector.broadcast %cst_51 : f32 to vector<8x128xf32>
    %241 = arith.addf %240, %239 : vector<8x128xf32>
    %242 = arith.divf %240, %241 : vector<8x128xf32>
    %243 = vector.extract_strided_slice %236 {offsets = [0, 128], sizes = [8, 128], strides = [1, 1]} : vector<8x512xf32> to vector<8x128xf32>
    %244 = arith.negf %243 : vector<8x128xf32>
    %245 = math.exp %244 : vector<8x128xf32>
    %cst_52 = arith.constant 1.000000e+00 : f32
    %246 = vector.broadcast %cst_52 : f32 to vector<8x128xf32>
    %247 = arith.addf %246, %245 : vector<8x128xf32>
    %248 = arith.divf %246, %247 : vector<8x128xf32>
    %249 = vector.extract_strided_slice %236 {offsets = [0, 256], sizes = [8, 128], strides = [1, 1]} : vector<8x512xf32> to vector<8x128xf32>
    %250 = math.tanh %249 : vector<8x128xf32>
    %251 = vector.extract_strided_slice %236 {offsets = [0, 384], sizes = [8, 128], strides = [1, 1]} : vector<8x512xf32> to vector<8x128xf32>
    %252 = arith.negf %251 : vector<8x128xf32>
    %253 = math.exp %252 : vector<8x128xf32>
    %cst_53 = arith.constant 1.000000e+00 : f32
    %254 = vector.broadcast %cst_53 : f32 to vector<8x128xf32>
    %255 = arith.addf %254, %253 : vector<8x128xf32>
    %256 = arith.divf %254, %255 : vector<8x128xf32>
    %257 = arith.mulf %248, %227 : vector<8x128xf32>
    %258 = arith.mulf %242, %250 : vector<8x128xf32>
    %259 = arith.addf %257, %258 : vector<8x128xf32>
    %260 = math.tanh %259 : vector<8x128xf32>
    %261 = arith.mulf %256, %260 : vector<8x128xf32>
    %c8_i32 = arith.constant 8 : i32
    %c0_54 = arith.constant 0 : index
    %c0_55 = arith.constant 0 : index
    %262 = vector.load %arg6[%c0_54, %c0_55] : memref<8x128xf32, #tpu.memory_space<vmem>>, vector<8x128xf32>
    tpu.vector_store %arg6[%c0_54, %c0_55], %261 {strides = array<i32>} : memref<8x128xf32, #tpu.memory_space<vmem>>, vector<8x128xf32>,
    %c0_56 = arith.constant 0 : index
    %c0_57 = arith.constant 0 : index
    %263 = vector.load %arg7[%c0_56, %c0_57] : memref<8x128xf32, #tpu.memory_space<vmem>>, vector<8x128xf32>
    tpu.vector_store %arg7[%c0_56, %c0_57], %259 {strides = array<i32>} : memref<8x128xf32, #tpu.memory_space<vmem>>, vector<8x128xf32>,
    %c0_i32_58 = arith.constant 0 : i32
    %264 = arith.cmpi eq, %arg0, %c0_i32_58 : i32
    %265 = arith.extui %264 : i1 to i32
    %c0_i32_59 = arith.constant 0 : i32
    %266 = arith.cmpi ne, %265, %c0_i32_59 : i32
    scf.if %266 {
      %267 = arith.truncf %261 : vector<8x128xf32> to vector<8x128xbf16>
      %c0_60 = arith.constant 0 : index
      %c0_61 = arith.constant 0 : index
      %268 = vector.load %arg3[%c0_60, %c0_61] : memref<128x128xbf16, #tpu.memory_space<vmem>>, vector<128x128xbf16>
      %cst_62 = arith.constant dense<0.000000e+00> : vector<8x128xf32>
      %269 = tpu.matmul %267, %268, %cst_62 {dimension_numbers = #tpu.dot_dimension_numbers<[1], [0], [0], [1], [0, 0, 1, 1], [], []>} : vector<8x128xbf16>, vector<128x128xbf16>, vector<8x128xf32> -> vector<8x128xf32>
      %c0_63 = arith.constant 0 : index
      %c0_64 = arith.constant 0 : index
      %270 = vector.load %arg4[%c0_63, %c0_64] : memref<1x128xf32, #tpu.memory_space<vmem>>, vector<1x128xf32>
      %271 = vector.broadcast %270 : vector<1x128xf32> to vector<8x128xf32>
      %272 = arith.addf %269, %271 : vector<8x128xf32>
      %c0_65 = arith.constant 0 : index
      %c0_66 = arith.constant 0 : index
      %273 = vector.load %arg5[%c0_65, %c0_66] : memref<8x128xf32, #tpu.memory_space<vmem>>, vector<8x128xf32>
      tpu.vector_store %arg5[%c0_65, %c0_66], %272 {strides = array<i32>} : memref<8x128xf32, #tpu.memory_space<vmem>>, vector<8x128xf32>,
    } else {
    }
    return
  }
  func.func @transform_0(%arg0: i32) -> (i32, i32, i32) {
    %c0_i32 = arith.constant 0 : i32
    %c0_i32_0 = arith.constant 0 : i32
    %c0_i32_1 = arith.constant 0 : i32
    return %arg0, %c0_i32, %c0_i32_0 : i32, i32, i32
  }
  func.func @transform_1(%arg0: i32) -> (i32, i32) {
    %c0_i32 = arith.constant 0 : i32
    %c0_i32_0 = arith.constant 0 : i32
    %c0_i32_1 = arith.constant 0 : i32
    return %c0_i32, %c0_i32_0 : i32, i32
  }
  func.func @transform_2(%arg0: i32) -> (i32, i32) {
    %c0_i32 = arith.constant 0 : i32
    %c0_i32_0 = arith.constant 0 : i32
    %c0_i32_1 = arith.constant 0 : i32
    return %c0_i32, %c0_i32_0 : i32, i32
  }
  func.func @transform_3(%arg0: i32) -> (i32, i32) {
    %c0_i32 = arith.constant 0 : i32
    %c0_i32_0 = arith.constant 0 : i32
    %c0_i32_1 = arith.constant 0 : i32
    return %c0_i32, %c0_i32_0 : i32, i32
  }
  func.func @transform_4(%arg0: i32) -> (i32, i32) {
    %c0_i32 = arith.constant 0 : i32
    %c0_i32_0 = arith.constant 0 : i32
    %c0_i32_1 = arith.constant 0 : i32
    return %c0_i32, %c0_i32_0 : i32, i32
  }
}

module attributes {stable_mosaic.version = 11 : i64} {
  func.func @kernel(%arg0: i32, %arg1: memref<8x8x512xbf16, #tpu.memory_space<vmem>>, %arg2: memref<128x512xbf16, #tpu.memory_space<vmem>>, %arg3: memref<128x512xbf16, #tpu.memory_space<vmem>>, %arg4: memref<1x512xf32, #tpu.memory_space<vmem>>, %arg5: memref<8x8x512xbf16, #tpu.memory_space<vmem>>, %arg6: memref<8x128xf32, #tpu.memory_space<vmem>>, %arg7: memref<8x128xf32, #tpu.memory_space<vmem>>, %arg8: memref<8x8x128xf32, #tpu.memory_space<vmem>>) attributes {dimension_semantics = [#tpu.dimension_semantics<arbitrary>], iteration_bounds = array<i64: 1>, scalar_prefetch = 0 : i64, scratch_operands = 3 : i64, tpu.core_type = #tpu.core_type<tc>, window_params = [{transform_indices = @transform_0, window_bounds = array<i64: 8, 8, 512>}, {pipeline_mode = #tpu.pipeline_mode<synchronous>, transform_indices = @transform_1, window_bounds = array<i64: 128, 512>}, {pipeline_mode = #tpu.pipeline_mode<synchronous>, transform_indices = @transform_2, window_bounds = array<i64: 128, 512>}, {pipeline_mode = #tpu.pipeline_mode<synchronous>, transform_indices = @transform_3, window_bounds = array<i64: 1, 512>}, {transform_indices = @transform_4, window_bounds = array<i64: 8, 8, 512>}]} {
    %c0_i32 = arith.constant 0 : i32
    %0 = arith.cmpi eq, %arg0, %c0_i32 : i32
    %1 = arith.extui %0 : i1 to i32
    %c0_i32_0 = arith.constant 0 : i32
    %2 = arith.cmpi ne, %1, %c0_i32_0 : i32
    scf.if %2 {
      %cst_85 = arith.constant 0.000000e+00 : f32
      %307 = vector.broadcast %cst_85 : f32 to vector<8x128xf32>
      %c0_86 = arith.constant 0 : index
      %c0_87 = arith.constant 0 : index
      %308 = vector.load %arg6[%c0_86, %c0_87] : memref<8x128xf32, #tpu.memory_space<vmem>>, vector<8x128xf32>
      tpu.vector_store %arg6[%c0_86, %c0_87], %307 {strides = array<i32>} : memref<8x128xf32, #tpu.memory_space<vmem>>, vector<8x128xf32>,
      %cst_88 = arith.constant 0.000000e+00 : f32
      %309 = vector.broadcast %cst_88 : f32 to vector<8x128xf32>
      %c0_89 = arith.constant 0 : index
      %c0_90 = arith.constant 0 : index
      %310 = vector.load %arg7[%c0_89, %c0_90] : memref<8x128xf32, #tpu.memory_space<vmem>>, vector<8x128xf32>
      tpu.vector_store %arg7[%c0_89, %c0_90], %309 {strides = array<i32>} : memref<8x128xf32, #tpu.memory_space<vmem>>, vector<8x128xf32>,
    } else {
    }
    %c0 = arith.constant 0 : index
    %c0_1 = arith.constant 0 : index
    %3 = vector.load %arg2[%c0, %c0_1] : memref<128x512xbf16, #tpu.memory_space<vmem>>, vector<128x512xbf16>
    %c0_2 = arith.constant 0 : index
    %c0_3 = arith.constant 0 : index
    %4 = vector.load %arg6[%c0_2, %c0_3] : memref<8x128xf32, #tpu.memory_space<vmem>>, vector<8x128xf32>
    %c0_4 = arith.constant 0 : index
    %c0_5 = arith.constant 0 : index
    %5 = vector.load %arg7[%c0_4, %c0_5] : memref<8x128xf32, #tpu.memory_space<vmem>>, vector<8x128xf32>
    %c0_i32_6 = arith.constant 0 : i32
    %6 = arith.index_cast %c0_i32_6 : i32 to index
    %c0_7 = arith.constant 0 : index
    %c0_8 = arith.constant 0 : index
    %7 = vector.load %arg1[%6, %c0_7, %c0_8] : memref<8x8x512xbf16, #tpu.memory_space<vmem>>, vector<1x8x512xbf16>
    %8 = vector.shape_cast %7 : vector<1x8x512xbf16> to vector<8x512xbf16>
    %9 = arith.extf %8 : vector<8x512xbf16> to vector<8x512xf32>
    %10 = arith.truncf %4 : vector<8x128xf32> to vector<8x128xbf16>
    %cst = arith.constant dense<0.000000e+00> : vector<8x512xf32>
    %11 = tpu.matmul %10, %3, %cst {dimension_numbers = #tpu.dot_dimension_numbers<[1], [0], [0], [1], [0, 0, 1, 1], [], []>} : vector<8x128xbf16>, vector<128x512xbf16>, vector<8x512xf32> -> vector<8x512xf32>
    %12 = arith.addf %9, %11 : vector<8x512xf32>
    %13 = vector.extract_strided_slice %12 {offsets = [0, 0], sizes = [8, 128], strides = [1, 1]} : vector<8x512xf32> to vector<8x128xf32>
    %14 = arith.negf %13 : vector<8x128xf32>
    %15 = math.exp %14 : vector<8x128xf32>
    %cst_9 = arith.constant 1.000000e+00 : f32
    %16 = vector.broadcast %cst_9 : f32 to vector<8x128xf32>
    %17 = arith.addf %16, %15 : vector<8x128xf32>
    %18 = arith.divf %16, %17 : vector<8x128xf32>
    %19 = vector.extract_strided_slice %12 {offsets = [0, 128], sizes = [8, 128], strides = [1, 1]} : vector<8x512xf32> to vector<8x128xf32>
    %20 = arith.negf %19 : vector<8x128xf32>
    %21 = math.exp %20 : vector<8x128xf32>
    %cst_10 = arith.constant 1.000000e+00 : f32
    %22 = vector.broadcast %cst_10 : f32 to vector<8x128xf32>
    %23 = arith.addf %22, %21 : vector<8x128xf32>
    %24 = arith.divf %22, %23 : vector<8x128xf32>
    %25 = vector.extract_strided_slice %12 {offsets = [0, 256], sizes = [8, 128], strides = [1, 1]} : vector<8x512xf32> to vector<8x128xf32>
    %26 = math.tanh %25 : vector<8x128xf32>
    %27 = vector.extract_strided_slice %12 {offsets = [0, 384], sizes = [8, 128], strides = [1, 1]} : vector<8x512xf32> to vector<8x128xf32>
    %28 = arith.negf %27 : vector<8x128xf32>
    %29 = math.exp %28 : vector<8x128xf32>
    %cst_11 = arith.constant 1.000000e+00 : f32
    %30 = vector.broadcast %cst_11 : f32 to vector<8x128xf32>
    %31 = arith.addf %30, %29 : vector<8x128xf32>
    %32 = arith.divf %30, %31 : vector<8x128xf32>
    %33 = arith.mulf %24, %5 : vector<8x128xf32>
    %34 = arith.mulf %18, %26 : vector<8x128xf32>
    %35 = arith.addf %33, %34 : vector<8x128xf32>
    %36 = math.tanh %35 : vector<8x128xf32>
    %37 = arith.mulf %32, %36 : vector<8x128xf32>
    %38 = arith.index_cast %c0_i32_6 : i32 to index
    %c0_12 = arith.constant 0 : index
    %c0_13 = arith.constant 0 : index
    %39 = vector.load %arg8[%38, %c0_12, %c0_13] : memref<8x8x128xf32, #tpu.memory_space<vmem>>, vector<1x8x128xf32>
    %40 = vector.shape_cast %39 : vector<1x8x128xf32> to vector<8x128xf32>
    %41 = vector.shape_cast %37 : vector<8x128xf32> to vector<1x8x128xf32>
    tpu.vector_store %arg8[%38, %c0_12, %c0_13], %41 {strides = array<i32>} : memref<8x8x128xf32, #tpu.memory_space<vmem>>, vector<1x8x128xf32>,
    %c1_i32 = arith.constant 1 : i32
    %42 = arith.index_cast %c1_i32 : i32 to index
    %c0_14 = arith.constant 0 : index
    %c0_15 = arith.constant 0 : index
    %43 = vector.load %arg1[%42, %c0_14, %c0_15] : memref<8x8x512xbf16, #tpu.memory_space<vmem>>, vector<1x8x512xbf16>
    %44 = vector.shape_cast %43 : vector<1x8x512xbf16> to vector<8x512xbf16>
    %45 = arith.extf %44 : vector<8x512xbf16> to vector<8x512xf32>
    %46 = arith.truncf %37 : vector<8x128xf32> to vector<8x128xbf16>
    %cst_16 = arith.constant dense<0.000000e+00> : vector<8x512xf32>
    %47 = tpu.matmul %46, %3, %cst_16 {dimension_numbers = #tpu.dot_dimension_numbers<[1], [0], [0], [1], [0, 0, 1, 1], [], []>} : vector<8x128xbf16>, vector<128x512xbf16>, vector<8x512xf32> -> vector<8x512xf32>
    %48 = arith.addf %45, %47 : vector<8x512xf32>
    %49 = vector.extract_strided_slice %48 {offsets = [0, 0], sizes = [8, 128], strides = [1, 1]} : vector<8x512xf32> to vector<8x128xf32>
    %50 = arith.negf %49 : vector<8x128xf32>
    %51 = math.exp %50 : vector<8x128xf32>
    %cst_17 = arith.constant 1.000000e+00 : f32
    %52 = vector.broadcast %cst_17 : f32 to vector<8x128xf32>
    %53 = arith.addf %52, %51 : vector<8x128xf32>
    %54 = arith.divf %52, %53 : vector<8x128xf32>
    %55 = vector.extract_strided_slice %48 {offsets = [0, 128], sizes = [8, 128], strides = [1, 1]} : vector<8x512xf32> to vector<8x128xf32>
    %56 = arith.negf %55 : vector<8x128xf32>
    %57 = math.exp %56 : vector<8x128xf32>
    %cst_18 = arith.constant 1.000000e+00 : f32
    %58 = vector.broadcast %cst_18 : f32 to vector<8x128xf32>
    %59 = arith.addf %58, %57 : vector<8x128xf32>
    %60 = arith.divf %58, %59 : vector<8x128xf32>
    %61 = vector.extract_strided_slice %48 {offsets = [0, 256], sizes = [8, 128], strides = [1, 1]} : vector<8x512xf32> to vector<8x128xf32>
    %62 = math.tanh %61 : vector<8x128xf32>
    %63 = vector.extract_strided_slice %48 {offsets = [0, 384], sizes = [8, 128], strides = [1, 1]} : vector<8x512xf32> to vector<8x128xf32>
    %64 = arith.negf %63 : vector<8x128xf32>
    %65 = math.exp %64 : vector<8x128xf32>
    %cst_19 = arith.constant 1.000000e+00 : f32
    %66 = vector.broadcast %cst_19 : f32 to vector<8x128xf32>
    %67 = arith.addf %66, %65 : vector<8x128xf32>
    %68 = arith.divf %66, %67 : vector<8x128xf32>
    %69 = arith.mulf %60, %35 : vector<8x128xf32>
    %70 = arith.mulf %54, %62 : vector<8x128xf32>
    %71 = arith.addf %69, %70 : vector<8x128xf32>
    %72 = math.tanh %71 : vector<8x128xf32>
    %73 = arith.mulf %68, %72 : vector<8x128xf32>
    %74 = arith.index_cast %c1_i32 : i32 to index
    %c0_20 = arith.constant 0 : index
    %c0_21 = arith.constant 0 : index
    %75 = vector.load %arg8[%74, %c0_20, %c0_21] : memref<8x8x128xf32, #tpu.memory_space<vmem>>, vector<1x8x128xf32>
    %76 = vector.shape_cast %75 : vector<1x8x128xf32> to vector<8x128xf32>
    %77 = vector.shape_cast %73 : vector<8x128xf32> to vector<1x8x128xf32>
    tpu.vector_store %arg8[%74, %c0_20, %c0_21], %77 {strides = array<i32>} : memref<8x8x128xf32, #tpu.memory_space<vmem>>, vector<1x8x128xf32>,
    %c2_i32 = arith.constant 2 : i32
    %78 = arith.index_cast %c2_i32 : i32 to index
    %c0_22 = arith.constant 0 : index
    %c0_23 = arith.constant 0 : index
    %79 = vector.load %arg1[%78, %c0_22, %c0_23] : memref<8x8x512xbf16, #tpu.memory_space<vmem>>, vector<1x8x512xbf16>
    %80 = vector.shape_cast %79 : vector<1x8x512xbf16> to vector<8x512xbf16>
    %81 = arith.extf %80 : vector<8x512xbf16> to vector<8x512xf32>
    %82 = arith.truncf %73 : vector<8x128xf32> to vector<8x128xbf16>
    %cst_24 = arith.constant dense<0.000000e+00> : vector<8x512xf32>
    %83 = tpu.matmul %82, %3, %cst_24 {dimension_numbers = #tpu.dot_dimension_numbers<[1], [0], [0], [1], [0, 0, 1, 1], [], []>} : vector<8x128xbf16>, vector<128x512xbf16>, vector<8x512xf32> -> vector<8x512xf32>
    %84 = arith.addf %81, %83 : vector<8x512xf32>
    %85 = vector.extract_strided_slice %84 {offsets = [0, 0], sizes = [8, 128], strides = [1, 1]} : vector<8x512xf32> to vector<8x128xf32>
    %86 = arith.negf %85 : vector<8x128xf32>
    %87 = math.exp %86 : vector<8x128xf32>
    %cst_25 = arith.constant 1.000000e+00 : f32
    %88 = vector.broadcast %cst_25 : f32 to vector<8x128xf32>
    %89 = arith.addf %88, %87 : vector<8x128xf32>
    %90 = arith.divf %88, %89 : vector<8x128xf32>
    %91 = vector.extract_strided_slice %84 {offsets = [0, 128], sizes = [8, 128], strides = [1, 1]} : vector<8x512xf32> to vector<8x128xf32>
    %92 = arith.negf %91 : vector<8x128xf32>
    %93 = math.exp %92 : vector<8x128xf32>
    %cst_26 = arith.constant 1.000000e+00 : f32
    %94 = vector.broadcast %cst_26 : f32 to vector<8x128xf32>
    %95 = arith.addf %94, %93 : vector<8x128xf32>
    %96 = arith.divf %94, %95 : vector<8x128xf32>
    %97 = vector.extract_strided_slice %84 {offsets = [0, 256], sizes = [8, 128], strides = [1, 1]} : vector<8x512xf32> to vector<8x128xf32>
    %98 = math.tanh %97 : vector<8x128xf32>
    %99 = vector.extract_strided_slice %84 {offsets = [0, 384], sizes = [8, 128], strides = [1, 1]} : vector<8x512xf32> to vector<8x128xf32>
    %100 = arith.negf %99 : vector<8x128xf32>
    %101 = math.exp %100 : vector<8x128xf32>
    %cst_27 = arith.constant 1.000000e+00 : f32
    %102 = vector.broadcast %cst_27 : f32 to vector<8x128xf32>
    %103 = arith.addf %102, %101 : vector<8x128xf32>
    %104 = arith.divf %102, %103 : vector<8x128xf32>
    %105 = arith.mulf %96, %71 : vector<8x128xf32>
    %106 = arith.mulf %90, %98 : vector<8x128xf32>
    %107 = arith.addf %105, %106 : vector<8x128xf32>
    %108 = math.tanh %107 : vector<8x128xf32>
    %109 = arith.mulf %104, %108 : vector<8x128xf32>
    %110 = arith.index_cast %c2_i32 : i32 to index
    %c0_28 = arith.constant 0 : index
    %c0_29 = arith.constant 0 : index
    %111 = vector.load %arg8[%110, %c0_28, %c0_29] : memref<8x8x128xf32, #tpu.memory_space<vmem>>, vector<1x8x128xf32>
    %112 = vector.shape_cast %111 : vector<1x8x128xf32> to vector<8x128xf32>
    %113 = vector.shape_cast %109 : vector<8x128xf32> to vector<1x8x128xf32>
    tpu.vector_store %arg8[%110, %c0_28, %c0_29], %113 {strides = array<i32>} : memref<8x8x128xf32, #tpu.memory_space<vmem>>, vector<1x8x128xf32>,
    %c3_i32 = arith.constant 3 : i32
    %114 = arith.index_cast %c3_i32 : i32 to index
    %c0_30 = arith.constant 0 : index
    %c0_31 = arith.constant 0 : index
    %115 = vector.load %arg1[%114, %c0_30, %c0_31] : memref<8x8x512xbf16, #tpu.memory_space<vmem>>, vector<1x8x512xbf16>
    %116 = vector.shape_cast %115 : vector<1x8x512xbf16> to vector<8x512xbf16>
    %117 = arith.extf %116 : vector<8x512xbf16> to vector<8x512xf32>
    %118 = arith.truncf %109 : vector<8x128xf32> to vector<8x128xbf16>
    %cst_32 = arith.constant dense<0.000000e+00> : vector<8x512xf32>
    %119 = tpu.matmul %118, %3, %cst_32 {dimension_numbers = #tpu.dot_dimension_numbers<[1], [0], [0], [1], [0, 0, 1, 1], [], []>} : vector<8x128xbf16>, vector<128x512xbf16>, vector<8x512xf32> -> vector<8x512xf32>
    %120 = arith.addf %117, %119 : vector<8x512xf32>
    %121 = vector.extract_strided_slice %120 {offsets = [0, 0], sizes = [8, 128], strides = [1, 1]} : vector<8x512xf32> to vector<8x128xf32>
    %122 = arith.negf %121 : vector<8x128xf32>
    %123 = math.exp %122 : vector<8x128xf32>
    %cst_33 = arith.constant 1.000000e+00 : f32
    %124 = vector.broadcast %cst_33 : f32 to vector<8x128xf32>
    %125 = arith.addf %124, %123 : vector<8x128xf32>
    %126 = arith.divf %124, %125 : vector<8x128xf32>
    %127 = vector.extract_strided_slice %120 {offsets = [0, 128], sizes = [8, 128], strides = [1, 1]} : vector<8x512xf32> to vector<8x128xf32>
    %128 = arith.negf %127 : vector<8x128xf32>
    %129 = math.exp %128 : vector<8x128xf32>
    %cst_34 = arith.constant 1.000000e+00 : f32
    %130 = vector.broadcast %cst_34 : f32 to vector<8x128xf32>
    %131 = arith.addf %130, %129 : vector<8x128xf32>
    %132 = arith.divf %130, %131 : vector<8x128xf32>
    %133 = vector.extract_strided_slice %120 {offsets = [0, 256], sizes = [8, 128], strides = [1, 1]} : vector<8x512xf32> to vector<8x128xf32>
    %134 = math.tanh %133 : vector<8x128xf32>
    %135 = vector.extract_strided_slice %120 {offsets = [0, 384], sizes = [8, 128], strides = [1, 1]} : vector<8x512xf32> to vector<8x128xf32>
    %136 = arith.negf %135 : vector<8x128xf32>
    %137 = math.exp %136 : vector<8x128xf32>
    %cst_35 = arith.constant 1.000000e+00 : f32
    %138 = vector.broadcast %cst_35 : f32 to vector<8x128xf32>
    %139 = arith.addf %138, %137 : vector<8x128xf32>
    %140 = arith.divf %138, %139 : vector<8x128xf32>
    %141 = arith.mulf %132, %107 : vector<8x128xf32>
    %142 = arith.mulf %126, %134 : vector<8x128xf32>
    %143 = arith.addf %141, %142 : vector<8x128xf32>
    %144 = math.tanh %143 : vector<8x128xf32>
    %145 = arith.mulf %140, %144 : vector<8x128xf32>
    %146 = arith.index_cast %c3_i32 : i32 to index
    %c0_36 = arith.constant 0 : index
    %c0_37 = arith.constant 0 : index
    %147 = vector.load %arg8[%146, %c0_36, %c0_37] : memref<8x8x128xf32, #tpu.memory_space<vmem>>, vector<1x8x128xf32>
    %148 = vector.shape_cast %147 : vector<1x8x128xf32> to vector<8x128xf32>
    %149 = vector.shape_cast %145 : vector<8x128xf32> to vector<1x8x128xf32>
    tpu.vector_store %arg8[%146, %c0_36, %c0_37], %149 {strides = array<i32>} : memref<8x8x128xf32, #tpu.memory_space<vmem>>, vector<1x8x128xf32>,
    %c4_i32 = arith.constant 4 : i32
    %150 = arith.index_cast %c4_i32 : i32 to index
    %c0_38 = arith.constant 0 : index
    %c0_39 = arith.constant 0 : index
    %151 = vector.load %arg1[%150, %c0_38, %c0_39] : memref<8x8x512xbf16, #tpu.memory_space<vmem>>, vector<1x8x512xbf16>
    %152 = vector.shape_cast %151 : vector<1x8x512xbf16> to vector<8x512xbf16>
    %153 = arith.extf %152 : vector<8x512xbf16> to vector<8x512xf32>
    %154 = arith.truncf %145 : vector<8x128xf32> to vector<8x128xbf16>
    %cst_40 = arith.constant dense<0.000000e+00> : vector<8x512xf32>
    %155 = tpu.matmul %154, %3, %cst_40 {dimension_numbers = #tpu.dot_dimension_numbers<[1], [0], [0], [1], [0, 0, 1, 1], [], []>} : vector<8x128xbf16>, vector<128x512xbf16>, vector<8x512xf32> -> vector<8x512xf32>
    %156 = arith.addf %153, %155 : vector<8x512xf32>
    %157 = vector.extract_strided_slice %156 {offsets = [0, 0], sizes = [8, 128], strides = [1, 1]} : vector<8x512xf32> to vector<8x128xf32>
    %158 = arith.negf %157 : vector<8x128xf32>
    %159 = math.exp %158 : vector<8x128xf32>
    %cst_41 = arith.constant 1.000000e+00 : f32
    %160 = vector.broadcast %cst_41 : f32 to vector<8x128xf32>
    %161 = arith.addf %160, %159 : vector<8x128xf32>
    %162 = arith.divf %160, %161 : vector<8x128xf32>
    %163 = vector.extract_strided_slice %156 {offsets = [0, 128], sizes = [8, 128], strides = [1, 1]} : vector<8x512xf32> to vector<8x128xf32>
    %164 = arith.negf %163 : vector<8x128xf32>
    %165 = math.exp %164 : vector<8x128xf32>
    %cst_42 = arith.constant 1.000000e+00 : f32
    %166 = vector.broadcast %cst_42 : f32 to vector<8x128xf32>
    %167 = arith.addf %166, %165 : vector<8x128xf32>
    %168 = arith.divf %166, %167 : vector<8x128xf32>
    %169 = vector.extract_strided_slice %156 {offsets = [0, 256], sizes = [8, 128], strides = [1, 1]} : vector<8x512xf32> to vector<8x128xf32>
    %170 = math.tanh %169 : vector<8x128xf32>
    %171 = vector.extract_strided_slice %156 {offsets = [0, 384], sizes = [8, 128], strides = [1, 1]} : vector<8x512xf32> to vector<8x128xf32>
    %172 = arith.negf %171 : vector<8x128xf32>
    %173 = math.exp %172 : vector<8x128xf32>
    %cst_43 = arith.constant 1.000000e+00 : f32
    %174 = vector.broadcast %cst_43 : f32 to vector<8x128xf32>
    %175 = arith.addf %174, %173 : vector<8x128xf32>
    %176 = arith.divf %174, %175 : vector<8x128xf32>
    %177 = arith.mulf %168, %143 : vector<8x128xf32>
    %178 = arith.mulf %162, %170 : vector<8x128xf32>
    %179 = arith.addf %177, %178 : vector<8x128xf32>
    %180 = math.tanh %179 : vector<8x128xf32>
    %181 = arith.mulf %176, %180 : vector<8x128xf32>
    %182 = arith.index_cast %c4_i32 : i32 to index
    %c0_44 = arith.constant 0 : index
    %c0_45 = arith.constant 0 : index
    %183 = vector.load %arg8[%182, %c0_44, %c0_45] : memref<8x8x128xf32, #tpu.memory_space<vmem>>, vector<1x8x128xf32>
    %184 = vector.shape_cast %183 : vector<1x8x128xf32> to vector<8x128xf32>
    %185 = vector.shape_cast %181 : vector<8x128xf32> to vector<1x8x128xf32>
    tpu.vector_store %arg8[%182, %c0_44, %c0_45], %185 {strides = array<i32>} : memref<8x8x128xf32, #tpu.memory_space<vmem>>, vector<1x8x128xf32>,
    %c5_i32 = arith.constant 5 : i32
    %186 = arith.index_cast %c5_i32 : i32 to index
    %c0_46 = arith.constant 0 : index
    %c0_47 = arith.constant 0 : index
    %187 = vector.load %arg1[%186, %c0_46, %c0_47] : memref<8x8x512xbf16, #tpu.memory_space<vmem>>, vector<1x8x512xbf16>
    %188 = vector.shape_cast %187 : vector<1x8x512xbf16> to vector<8x512xbf16>
    %189 = arith.extf %188 : vector<8x512xbf16> to vector<8x512xf32>
    %190 = arith.truncf %181 : vector<8x128xf32> to vector<8x128xbf16>
    %cst_48 = arith.constant dense<0.000000e+00> : vector<8x512xf32>
    %191 = tpu.matmul %190, %3, %cst_48 {dimension_numbers = #tpu.dot_dimension_numbers<[1], [0], [0], [1], [0, 0, 1, 1], [], []>} : vector<8x128xbf16>, vector<128x512xbf16>, vector<8x512xf32> -> vector<8x512xf32>
    %192 = arith.addf %189, %191 : vector<8x512xf32>
    %193 = vector.extract_strided_slice %192 {offsets = [0, 0], sizes = [8, 128], strides = [1, 1]} : vector<8x512xf32> to vector<8x128xf32>
    %194 = arith.negf %193 : vector<8x128xf32>
    %195 = math.exp %194 : vector<8x128xf32>
    %cst_49 = arith.constant 1.000000e+00 : f32
    %196 = vector.broadcast %cst_49 : f32 to vector<8x128xf32>
    %197 = arith.addf %196, %195 : vector<8x128xf32>
    %198 = arith.divf %196, %197 : vector<8x128xf32>
    %199 = vector.extract_strided_slice %192 {offsets = [0, 128], sizes = [8, 128], strides = [1, 1]} : vector<8x512xf32> to vector<8x128xf32>
    %200 = arith.negf %199 : vector<8x128xf32>
    %201 = math.exp %200 : vector<8x128xf32>
    %cst_50 = arith.constant 1.000000e+00 : f32
    %202 = vector.broadcast %cst_50 : f32 to vector<8x128xf32>
    %203 = arith.addf %202, %201 : vector<8x128xf32>
    %204 = arith.divf %202, %203 : vector<8x128xf32>
    %205 = vector.extract_strided_slice %192 {offsets = [0, 256], sizes = [8, 128], strides = [1, 1]} : vector<8x512xf32> to vector<8x128xf32>
    %206 = math.tanh %205 : vector<8x128xf32>
    %207 = vector.extract_strided_slice %192 {offsets = [0, 384], sizes = [8, 128], strides = [1, 1]} : vector<8x512xf32> to vector<8x128xf32>
    %208 = arith.negf %207 : vector<8x128xf32>
    %209 = math.exp %208 : vector<8x128xf32>
    %cst_51 = arith.constant 1.000000e+00 : f32
    %210 = vector.broadcast %cst_51 : f32 to vector<8x128xf32>
    %211 = arith.addf %210, %209 : vector<8x128xf32>
    %212 = arith.divf %210, %211 : vector<8x128xf32>
    %213 = arith.mulf %204, %179 : vector<8x128xf32>
    %214 = arith.mulf %198, %206 : vector<8x128xf32>
    %215 = arith.addf %213, %214 : vector<8x128xf32>
    %216 = math.tanh %215 : vector<8x128xf32>
    %217 = arith.mulf %212, %216 : vector<8x128xf32>
    %218 = arith.index_cast %c5_i32 : i32 to index
    %c0_52 = arith.constant 0 : index
    %c0_53 = arith.constant 0 : index
    %219 = vector.load %arg8[%218, %c0_52, %c0_53] : memref<8x8x128xf32, #tpu.memory_space<vmem>>, vector<1x8x128xf32>
    %220 = vector.shape_cast %219 : vector<1x8x128xf32> to vector<8x128xf32>
    %221 = vector.shape_cast %217 : vector<8x128xf32> to vector<1x8x128xf32>
    tpu.vector_store %arg8[%218, %c0_52, %c0_53], %221 {strides = array<i32>} : memref<8x8x128xf32, #tpu.memory_space<vmem>>, vector<1x8x128xf32>,
    %c6_i32 = arith.constant 6 : i32
    %222 = arith.index_cast %c6_i32 : i32 to index
    %c0_54 = arith.constant 0 : index
    %c0_55 = arith.constant 0 : index
    %223 = vector.load %arg1[%222, %c0_54, %c0_55] : memref<8x8x512xbf16, #tpu.memory_space<vmem>>, vector<1x8x512xbf16>
    %224 = vector.shape_cast %223 : vector<1x8x512xbf16> to vector<8x512xbf16>
    %225 = arith.extf %224 : vector<8x512xbf16> to vector<8x512xf32>
    %226 = arith.truncf %217 : vector<8x128xf32> to vector<8x128xbf16>
    %cst_56 = arith.constant dense<0.000000e+00> : vector<8x512xf32>
    %227 = tpu.matmul %226, %3, %cst_56 {dimension_numbers = #tpu.dot_dimension_numbers<[1], [0], [0], [1], [0, 0, 1, 1], [], []>} : vector<8x128xbf16>, vector<128x512xbf16>, vector<8x512xf32> -> vector<8x512xf32>
    %228 = arith.addf %225, %227 : vector<8x512xf32>
    %229 = vector.extract_strided_slice %228 {offsets = [0, 0], sizes = [8, 128], strides = [1, 1]} : vector<8x512xf32> to vector<8x128xf32>
    %230 = arith.negf %229 : vector<8x128xf32>
    %231 = math.exp %230 : vector<8x128xf32>
    %cst_57 = arith.constant 1.000000e+00 : f32
    %232 = vector.broadcast %cst_57 : f32 to vector<8x128xf32>
    %233 = arith.addf %232, %231 : vector<8x128xf32>
    %234 = arith.divf %232, %233 : vector<8x128xf32>
    %235 = vector.extract_strided_slice %228 {offsets = [0, 128], sizes = [8, 128], strides = [1, 1]} : vector<8x512xf32> to vector<8x128xf32>
    %236 = arith.negf %235 : vector<8x128xf32>
    %237 = math.exp %236 : vector<8x128xf32>
    %cst_58 = arith.constant 1.000000e+00 : f32
    %238 = vector.broadcast %cst_58 : f32 to vector<8x128xf32>
    %239 = arith.addf %238, %237 : vector<8x128xf32>
    %240 = arith.divf %238, %239 : vector<8x128xf32>
    %241 = vector.extract_strided_slice %228 {offsets = [0, 256], sizes = [8, 128], strides = [1, 1]} : vector<8x512xf32> to vector<8x128xf32>
    %242 = math.tanh %241 : vector<8x128xf32>
    %243 = vector.extract_strided_slice %228 {offsets = [0, 384], sizes = [8, 128], strides = [1, 1]} : vector<8x512xf32> to vector<8x128xf32>
    %244 = arith.negf %243 : vector<8x128xf32>
    %245 = math.exp %244 : vector<8x128xf32>
    %cst_59 = arith.constant 1.000000e+00 : f32
    %246 = vector.broadcast %cst_59 : f32 to vector<8x128xf32>
    %247 = arith.addf %246, %245 : vector<8x128xf32>
    %248 = arith.divf %246, %247 : vector<8x128xf32>
    %249 = arith.mulf %240, %215 : vector<8x128xf32>
    %250 = arith.mulf %234, %242 : vector<8x128xf32>
    %251 = arith.addf %249, %250 : vector<8x128xf32>
    %252 = math.tanh %251 : vector<8x128xf32>
    %253 = arith.mulf %248, %252 : vector<8x128xf32>
    %254 = arith.index_cast %c6_i32 : i32 to index
    %c0_60 = arith.constant 0 : index
    %c0_61 = arith.constant 0 : index
    %255 = vector.load %arg8[%254, %c0_60, %c0_61] : memref<8x8x128xf32, #tpu.memory_space<vmem>>, vector<1x8x128xf32>
    %256 = vector.shape_cast %255 : vector<1x8x128xf32> to vector<8x128xf32>
    %257 = vector.shape_cast %253 : vector<8x128xf32> to vector<1x8x128xf32>
    tpu.vector_store %arg8[%254, %c0_60, %c0_61], %257 {strides = array<i32>} : memref<8x8x128xf32, #tpu.memory_space<vmem>>, vector<1x8x128xf32>,
    %c7_i32 = arith.constant 7 : i32
    %258 = arith.index_cast %c7_i32 : i32 to index
    %c0_62 = arith.constant 0 : index
    %c0_63 = arith.constant 0 : index
    %259 = vector.load %arg1[%258, %c0_62, %c0_63] : memref<8x8x512xbf16, #tpu.memory_space<vmem>>, vector<1x8x512xbf16>
    %260 = vector.shape_cast %259 : vector<1x8x512xbf16> to vector<8x512xbf16>
    %261 = arith.extf %260 : vector<8x512xbf16> to vector<8x512xf32>
    %262 = arith.truncf %253 : vector<8x128xf32> to vector<8x128xbf16>
    %cst_64 = arith.constant dense<0.000000e+00> : vector<8x512xf32>
    %263 = tpu.matmul %262, %3, %cst_64 {dimension_numbers = #tpu.dot_dimension_numbers<[1], [0], [0], [1], [0, 0, 1, 1], [], []>} : vector<8x128xbf16>, vector<128x512xbf16>, vector<8x512xf32> -> vector<8x512xf32>
    %264 = arith.addf %261, %263 : vector<8x512xf32>
    %265 = vector.extract_strided_slice %264 {offsets = [0, 0], sizes = [8, 128], strides = [1, 1]} : vector<8x512xf32> to vector<8x128xf32>
    %266 = arith.negf %265 : vector<8x128xf32>
    %267 = math.exp %266 : vector<8x128xf32>
    %cst_65 = arith.constant 1.000000e+00 : f32
    %268 = vector.broadcast %cst_65 : f32 to vector<8x128xf32>
    %269 = arith.addf %268, %267 : vector<8x128xf32>
    %270 = arith.divf %268, %269 : vector<8x128xf32>
    %271 = vector.extract_strided_slice %264 {offsets = [0, 128], sizes = [8, 128], strides = [1, 1]} : vector<8x512xf32> to vector<8x128xf32>
    %272 = arith.negf %271 : vector<8x128xf32>
    %273 = math.exp %272 : vector<8x128xf32>
    %cst_66 = arith.constant 1.000000e+00 : f32
    %274 = vector.broadcast %cst_66 : f32 to vector<8x128xf32>
    %275 = arith.addf %274, %273 : vector<8x128xf32>
    %276 = arith.divf %274, %275 : vector<8x128xf32>
    %277 = vector.extract_strided_slice %264 {offsets = [0, 256], sizes = [8, 128], strides = [1, 1]} : vector<8x512xf32> to vector<8x128xf32>
    %278 = math.tanh %277 : vector<8x128xf32>
    %279 = vector.extract_strided_slice %264 {offsets = [0, 384], sizes = [8, 128], strides = [1, 1]} : vector<8x512xf32> to vector<8x128xf32>
    %280 = arith.negf %279 : vector<8x128xf32>
    %281 = math.exp %280 : vector<8x128xf32>
    %cst_67 = arith.constant 1.000000e+00 : f32
    %282 = vector.broadcast %cst_67 : f32 to vector<8x128xf32>
    %283 = arith.addf %282, %281 : vector<8x128xf32>
    %284 = arith.divf %282, %283 : vector<8x128xf32>
    %285 = arith.mulf %276, %251 : vector<8x128xf32>
    %286 = arith.mulf %270, %278 : vector<8x128xf32>
    %287 = arith.addf %285, %286 : vector<8x128xf32>
    %288 = math.tanh %287 : vector<8x128xf32>
    %289 = arith.mulf %284, %288 : vector<8x128xf32>
    %290 = arith.index_cast %c7_i32 : i32 to index
    %c0_68 = arith.constant 0 : index
    %c0_69 = arith.constant 0 : index
    %291 = vector.load %arg8[%290, %c0_68, %c0_69] : memref<8x8x128xf32, #tpu.memory_space<vmem>>, vector<1x8x128xf32>
    %292 = vector.shape_cast %291 : vector<1x8x128xf32> to vector<8x128xf32>
    %293 = vector.shape_cast %289 : vector<8x128xf32> to vector<1x8x128xf32>
    tpu.vector_store %arg8[%290, %c0_68, %c0_69], %293 {strides = array<i32>} : memref<8x8x128xf32, #tpu.memory_space<vmem>>, vector<1x8x128xf32>,
    %c8_i32 = arith.constant 8 : i32
    %c0_70 = arith.constant 0 : index
    %c0_71 = arith.constant 0 : index
    %294 = vector.load %arg6[%c0_70, %c0_71] : memref<8x128xf32, #tpu.memory_space<vmem>>, vector<8x128xf32>
    tpu.vector_store %arg6[%c0_70, %c0_71], %289 {strides = array<i32>} : memref<8x128xf32, #tpu.memory_space<vmem>>, vector<8x128xf32>,
    %c0_72 = arith.constant 0 : index
    %c0_73 = arith.constant 0 : index
    %295 = vector.load %arg7[%c0_72, %c0_73] : memref<8x128xf32, #tpu.memory_space<vmem>>, vector<8x128xf32>
    tpu.vector_store %arg7[%c0_72, %c0_73], %287 {strides = array<i32>} : memref<8x128xf32, #tpu.memory_space<vmem>>, vector<8x128xf32>,
    %c0_74 = arith.constant 0 : index
    %c0_75 = arith.constant 0 : index
    %c0_76 = arith.constant 0 : index
    %296 = vector.load %arg8[%c0_74, %c0_75, %c0_76] : memref<8x8x128xf32, #tpu.memory_space<vmem>>, vector<8x8x128xf32>
    %297 = vector.shape_cast %296 : vector<8x8x128xf32> to vector<64x128xf32>
    %298 = arith.truncf %297 : vector<64x128xf32> to vector<64x128xbf16>
    %c0_77 = arith.constant 0 : index
    %c0_78 = arith.constant 0 : index
    %299 = vector.load %arg3[%c0_77, %c0_78] : memref<128x512xbf16, #tpu.memory_space<vmem>>, vector<128x512xbf16>
    %cst_79 = arith.constant dense<0.000000e+00> : vector<64x512xf32>
    %300 = tpu.matmul %298, %299, %cst_79 {dimension_numbers = #tpu.dot_dimension_numbers<[1], [0], [0], [1], [0, 0, 1, 1], [], []>} : vector<64x128xbf16>, vector<128x512xbf16>, vector<64x512xf32> -> vector<64x512xf32>
    %c0_80 = arith.constant 0 : index
    %c0_81 = arith.constant 0 : index
    %301 = vector.load %arg4[%c0_80, %c0_81] : memref<1x512xf32, #tpu.memory_space<vmem>>, vector<1x512xf32>
    %302 = vector.broadcast %301 : vector<1x512xf32> to vector<64x512xf32>
    %303 = arith.addf %300, %302 : vector<64x512xf32>
    %304 = vector.shape_cast %303 : vector<64x512xf32> to vector<8x8x512xf32>
    %305 = arith.truncf %304 : vector<8x8x512xf32> to vector<8x8x512xbf16>
    %c0_82 = arith.constant 0 : index
    %c0_83 = arith.constant 0 : index
    %c0_84 = arith.constant 0 : index
    %306 = vector.load %arg5[%c0_82, %c0_83, %c0_84] : memref<8x8x512xbf16, #tpu.memory_space<vmem>>, vector<8x8x512xbf16>
    tpu.vector_store %arg5[%c0_82, %c0_83, %c0_84], %305 {strides = array<i32>} : memref<8x8x512xbf16, #tpu.memory_space<vmem>>, vector<8x8x512xbf16>,
    return
  }
  func.func @transform_0(%arg0: i32) -> (i32, i32, i32) {
    %c0_i32 = arith.constant 0 : i32
    %c0_i32_0 = arith.constant 0 : i32
    %c0_i32_1 = arith.constant 0 : i32
    return %arg0, %c0_i32, %c0_i32_0 : i32, i32, i32
  }
  func.func @transform_1(%arg0: i32) -> (i32, i32) {
    %c0_i32 = arith.constant 0 : i32
    %c0_i32_0 = arith.constant 0 : i32
    %c0_i32_1 = arith.constant 0 : i32
    return %c0_i32, %c0_i32_0 : i32, i32
  }
  func.func @transform_2(%arg0: i32) -> (i32, i32) {
    %c0_i32 = arith.constant 0 : i32
    %c0_i32_0 = arith.constant 0 : i32
    %c0_i32_1 = arith.constant 0 : i32
    return %c0_i32, %c0_i32_0 : i32, i32
  }
  func.func @transform_3(%arg0: i32) -> (i32, i32) {
    %c0_i32 = arith.constant 0 : i32
    %c0_i32_0 = arith.constant 0 : i32
    %c0_i32_1 = arith.constant 0 : i32
    return %c0_i32, %c0_i32_0 : i32, i32
  }
  func.func @transform_4(%arg0: i32) -> (i32, i32, i32) {
    %c0_i32 = arith.constant 0 : i32
    %c0_i32_0 = arith.constant 0 : i32
    %c0_i32_1 = arith.constant 0 : i32
    return %arg0, %c0_i32, %c0_i32_0 : i32, i32, i32
  }
}

</mosaic_0001>

<bundles_post_ra>
// kernel: rnn_forward.3
= control target key start
LH: loop header
LB: loop body
LE: loop exit
PB: predicated region body
PF: predicated region fallthrough
CT: control target
= control target key end

     0   :  { %8 = vsyncpa [#allocation3], 0  ;;  %s718_s12 = smov [#allocation2]   ;;  %s865_s0 = inlined_call_operand.vmem [shape: bf16[8,8,128], index: 0, kind: input, shape index: {}]   ;;  %s866_s1 = inlined_call_operand.hbm [shape: bf16[128,512], index: 1, kind: input, shape index: {}]   ;;  %s867_s2 = inlined_call_operand.vmem [shape: f32[1,512], index: 2, kind: input, shape index: {}]   ;;  %s868_s3 = inlined_call_operand.vmem [shape: bf16[8,8,512], index: 3, kind: output, shape index: {}]  }
   0x1   :  { %s16_s13 = sshll.u32 %s718_s12, 4  ;;  %s694_s16 = scalar_lea.hbm %s866_s1, 4096  ;;  %s17_s13 = int_to_ptr.vmem [resolvable:$true] %s16_s13 }
   0x2   :  { %p695_p0 = scmp.ne.s32.totalorder %s866_s1, %s694_s16  ;;  %p698_p1 = scmp.lt.u32.totalorder %s694_s16, %s866_s1 }
   0x4   :  { %p700_p2 = pnand %p698_p1, %p695_p0 }
   0x6   :  { %703 = shalt.err (!%p700_p2)
}
   0x7   :  { %s704_s21 = scalar_lea.vmem %s17_s13, 4096  ;;  %p709_p4 = scmp.lt.s32.totalorder %s17_s13, %s17_s13 }
   0x8   :  { %p705_p3 = scmp.ne.s32.totalorder %s17_s13, %s704_s21  ;;  %p710_p5 = scmp.lt.s32.totalorder %s704_s21, %s704_s21 }
   0xa   :  { %p711_p6 = por %p710_p5, %p709_p4 }
   0xc   :  { %p712_p7 = pnand %p711_p6, %p705_p3 }
   0xe   :  { %715 = shalt.err (!%p712_p7)
}
   0xf   :  { %s719_s22 = smov 256   ;;  %s720_s23 = smov 16  }
  0x10   :  { %22 = dma.hbm_to_vmem [thread:$0]  %s866_s1, 4096, %s17_s13, [#allocation3], %s719_s22, %s719_s22, %s720_s23  }
  0x11   :  { %716 = dma.done.wait [#allocation3], 4096  }
  0x12   :  { %717 = vsyncadd [#allocation3], 4294963200  ;;  %v721_v0 = vmov 0   ;;  %v642_v1 = vld [vmem:[#allocation2 + $0x4] ss:$16 sps:$4 sm:$0xff]   ;;  %v691_v34 = vld [vmem:[%s865_s0 + $0x8] sm:$0xff]   ;;  %v71_v37 = vlaneseq }
  0x13   :  { %307 = vmatprep.mubr.bf16.mxu0 %v721_v0  ;;  %380 = vmatprep.mubr.bf16.mxu1 %v721_v0  ;;  %v644_v2 = vld [vmem:[#allocation2 + $0xc] ss:$16 sps:$4 sm:$0xff]   ;;  %v646_v3 = vld [vmem:[#allocation2] ss:$16 sps:$4 sm:$0xff]   ;;  %v647_v4 = vld [vmem:[#allocation2 + $0x8] ss:$16 sps:$4 sm:$0xff]  }
  0x14   :  { %275 = vmatprep.subr.bf16.mxu0 %v642_v1  ;;  %348 = vmatprep.subr.bf16.mxu1 %v644_v2  ;;  %v648_v5 = vld [vmem:[#allocation2 + $0x24] ss:$16 sps:$4 sm:$0xff]   ;;  %v650_v6 = vld [vmem:[#allocation2 + $0x2c] ss:$16 sps:$4 sm:$0xff]   ;;  %v652_v7 = vld [vmem:[#allocation2 + $0x20] ss:$16 sps:$4 sm:$0xff]  }
  0x15   :  { %276 = vmatpush1.bf16.msra.mxu0 %v646_v3  ;;  %349 = vmatpush1.bf16.msra.mxu1 %v647_v4  ;;  %v653_v8 = vld [vmem:[#allocation2 + $0x28] ss:$16 sps:$4 sm:$0xff]   ;;  %v654_v9 = vld [vmem:[#allocation2 + $0x44] ss:$16 sps:$4 sm:$0xff]   ;;  %v656_v10 = vld [vmem:[#allocation2 + $0x4c] ss:$16 sps:$4 sm:$0xff]  }
  0x16   :  { %277 = vmatprep.subr.bf16.mxu0 %v648_v5  ;;  %350 = vmatprep.subr.bf16.mxu1 %v650_v6  ;;  %v658_v11 = vld [vmem:[#allocation2 + $0x40] ss:$16 sps:$4 sm:$0xff]   ;;  %v659_v12 = vld [vmem:[#allocation2 + $0x48] ss:$16 sps:$4 sm:$0xff]   ;;  %v660_v13 = vld [vmem:[#allocation2 + $0x64] ss:$16 sps:$4 sm:$0xff]  }
  0x17   :  { %v662_v14 = vld [vmem:[#allocation2 + $0x6c] ss:$16 sps:$4 sm:$0xff]   ;;  %v664_v15 = vld [vmem:[#allocation2 + $0x60] ss:$16 sps:$4 sm:$0xff]   ;;  %v665_v16 = vld [vmem:[#allocation2 + $0x68] ss:$16 sps:$4 sm:$0xff]  }
  0x18   :  { %v666_v17 = vld [vmem:[#allocation2 + $0x84] ss:$16 sps:$4 sm:$0xff]   ;;  %v668_v18 = vld [vmem:[#allocation2 + $0x8c] ss:$16 sps:$4 sm:$0xff]   ;;  %v670_v19 = vld [vmem:[#allocation2 + $0x80] ss:$16 sps:$4 sm:$0xff]  }
  0x19   :  { %278 = vmatpush1.bf16.msra.mxu0 %v652_v7  ;;  %351 = vmatpush1.bf16.msra.mxu1 %v653_v8  ;;  %v671_v20 = vld [vmem:[#allocation2 + $0x88] ss:$16 sps:$4 sm:$0xff]   ;;  %v672_v21 = vld [vmem:[#allocation2 + $0xa4] ss:$16 sps:$4 sm:$0xff]   ;;  %v674_v22 = vld [vmem:[#allocation2 + $0xac] ss:$16 sps:$4 sm:$0xff]  }
  0x1a   :  { %279 = vmatprep.subr.bf16.mxu0 %v654_v9  ;;  %352 = vmatprep.subr.bf16.mxu1 %v656_v10  ;;  %v676_v23 = vld [vmem:[#allocation2 + $0xa0] ss:$16 sps:$4 sm:$0xff]   ;;  %v677_v24 = vld [vmem:[#allocation2 + $0xa8] ss:$16 sps:$4 sm:$0xff]   ;;  %v678_v25 = vld [vmem:[#allocation2 + $0xc4] ss:$16 sps:$4 sm:$0xff]  }
  0x1b   :  { %v680_v26 = vld [vmem:[#allocation2 + $0xcc] ss:$16 sps:$4 sm:$0xff]   ;;  %v682_v27 = vld [vmem:[#allocation2 + $0xc0] ss:$16 sps:$4 sm:$0xff]   ;;  %v683_v28 = vld [vmem:[#allocation2 + $0xc8] ss:$16 sps:$4 sm:$0xff]  }
  0x1c   :  { %v684_v29 = vld [vmem:[#allocation2 + $0xe4] ss:$16 sps:$4 sm:$0xff]   ;;  %v686_v30 = vld [vmem:[#allocation2 + $0xec] ss:$16 sps:$4 sm:$0xff]   ;;  %v688_v31 = vld [vmem:[#allocation2 + $0xe0] ss:$16 sps:$4 sm:$0xff]  }
  0x1d   :  { %280 = vmatpush1.bf16.msra.mxu0 %v658_v11  ;;  %353 = vmatpush1.bf16.msra.mxu1 %v659_v12  ;;  %v689_v32 = vld [vmem:[#allocation2 + $0xe8] ss:$16 sps:$4 sm:$0xff]   ;;  %v690_v33 = vld [vmem:[%s865_s0] sm:$0xff]   ;;  %v692_v35 = vld [vmem:[%s865_s0 + $0x10] sm:$0xff]   ;;  %v72_v38 = vshrl.u32 %v71_v37, 7 }
  0x1e   :  { %281 = vmatprep.subr.bf16.mxu0 %v660_v13  ;;  %354 = vmatprep.subr.bf16.mxu1 %v662_v14  ;;  %v693_v36 = vld [vmem:[%s865_s0 + $0x18] sm:$0xff]   ;;  %v69_v41 = vld [vmem:[%s867_s2] sm:$0xf] }
  0x1f   :  { %v73_v39 = vsub.s32 0, %v72_v38  ;;  %v81_v40 = vsub.s32 2, %v72_v38  ;;  %v77_v42 = vsub.s32 1, %v72_v38  ;;  %v85_v43 = vsub.s32 3, %v72_v38 }
  0x21   :  { %282 = vmatpush1.bf16.msra.mxu0 %v664_v15  ;;  %355 = vmatpush1.bf16.msra.mxu1 %v665_v16  ;;  %v777_v44 = vrot.slane %v69_v41, %v73_v39  ;;  %v779_v45 = vrot.slane %v69_v41, %v81_v40  ;;  %v781_v46 = vrot.slane %v69_v41, %v77_v42 }
  0x22   :  { %283 = vmatprep.subr.bf16.mxu0 %v666_v17  ;;  %356 = vmatprep.subr.bf16.mxu1 %v668_v18  ;;  %v783_v47 = vrot.slane %v69_v41, %v85_v43 }
  0x25   :  { %284 = vmatpush1.bf16.msra.mxu0 %v670_v19  ;;  %357 = vmatpush1.bf16.msra.mxu1 %v671_v20 }
  0x26   :  { %285 = vmatprep.subr.bf16.mxu0 %v672_v21  ;;  %358 = vmatprep.subr.bf16.mxu1 %v674_v22 }
  0x29   :  { %286 = vmatpush1.bf16.msra.mxu0 %v676_v23  ;;  %359 = vmatpush1.bf16.msra.mxu1 %v677_v24 }
  0x2a   :  { %287 = vmatprep.subr.bf16.mxu0 %v678_v25  ;;  %360 = vmatprep.subr.bf16.mxu1 %v680_v26 }
  0x2d   :  { %288 = vmatpush1.bf16.msra.mxu0 %v682_v27  ;;  %361 = vmatpush1.bf16.msra.mxu1 %v683_v28 }
  0x2e   :  { %289 = vmatprep.subr.bf16.mxu0 %v684_v29  ;;  %362 = vmatprep.subr.bf16.mxu1 %v686_v30 }
  0x31   :  { %290 = vmatpush1.bf16.msra.mxu0 %v688_v31  ;;  %363 = vmatpush1.bf16.msra.mxu1 %v689_v32 }
  0x34   :  { %308 = vmatmul.mubr.bf16.vlgmr.msra.gmra.mrb[0].mxu0 %v690_v33  ;;  %381 = vmatmul.mubr.bf16.vlgmr.msra.gmra.mrb[0].mxu1 %v690_v33 }
  0x35   :  { %317 = vmatprep.mubr.bf16.mxu0 %v721_v0  ;;  %390 = vmatprep.mubr.bf16.mxu1 %v721_v0 }
  0x3c   :  { %318 = vmatmul.mubr.bf16.gmra.mrb[4].mxu0 %v691_v34  ;;  %391 = vmatmul.mubr.bf16.gmra.mrb[4].mxu1 %v691_v34 }
  0x3d   :  { %327 = vmatprep.mubr.bf16.mxu0 %v721_v0  ;;  %400 = vmatprep.mubr.bf16.mxu1 %v721_v0 }
  0x44   :  { %328 = vmatmul.mubr.bf16.gmra.mrb[8].mxu0 %v692_v35  ;;  %401 = vmatmul.mubr.bf16.gmra.mrb[8].mxu1 %v692_v35 }
  0x45   :  { %337 = vmatprep.mubr.bf16.mxu0 %v721_v0  ;;  %410 = vmatprep.mubr.bf16.mxu1 %v721_v0 }
  0x4c   :  { %338 = vmatmul.mubr.bf16.gmra.mrb[12].mxu0 %v693_v36  ;;  %411 = vmatmul.mubr.bf16.gmra.mrb[12].mxu1 %v693_v36 }
 0x107   :  { %v309_v48 = vpop.f32.mrb[0].mxu0  ;;  %v382_v49 = vpop.f32.mrb[0].mxu1 }
 0x108   :  { %v310_v50 = vadd.f32 %v309_v48, %v777_v44  ;;  %v383_v51 = vadd.f32 %v382_v49, %v779_v45  ;;  %v311_v52 = vpop.f32.mrb[1].mxu0  ;;  %v384_v53 = vpop.f32.mrb[1].mxu1 }
 0x109   :  { %v312_v54 = vadd.f32 %v311_v52, %v781_v46  ;;  %v385_v55 = vadd.f32 %v384_v53, %v783_v47  ;;  %v313_v56 = vpop.f32.mrb[2].mxu0  ;;  %v386_v57 = vpop.f32.mrb[2].mxu1 }
 0x10a   :  { %v314_v58 = vadd.f32 %v313_v56, %v777_v44  ;;  %v387_v59 = vadd.f32 %v386_v57, %v779_v45  ;;  %v315_v60 = vpop.f32.mrb[3].mxu0  ;;  %v388_v61 = vpop.f32.mrb[3].mxu1 }
 0x10b   :  { %v622_v62 = vpack.c.bf16 %v312_v54, %v310_v50  ;;  %v623_v63 = vpack.c.bf16 %v385_v55, %v383_v51  ;;  %v316_v0 = vadd.f32 %v315_v60, %v781_v46  ;;  %v389_v1 = vadd.f32 %v388_v61, %v783_v47 }
 0x10d   :  { %549 = vst [vmem:[%s868_s3] sm:$0xff] %v622_v62  ;;  %550 = vst [vmem:[%s868_s3 + $0x8] sm:$0xff] %v623_v63  ;;  %v624_v2 = vpack.c.bf16 %v316_v0, %v314_v58  ;;  %v625_v3 = vpack.c.bf16 %v389_v1, %v387_v59 }
 0x10f   :  { %551 = vst [vmem:[%s868_s3 + $0x10] sm:$0xff] %v624_v2  ;;  %552 = vst [vmem:[%s868_s3 + $0x18] sm:$0xff] %v625_v3  ;;  %v319_v4 = vpop.f32.mrb[4].mxu0  ;;  %v392_v5 = vpop.f32.mrb[4].mxu1 }
 0x110   :  { %v320_v6 = vadd.f32 %v319_v4, %v777_v44  ;;  %v393_v7 = vadd.f32 %v392_v5, %v779_v45  ;;  %v321_v8 = vpop.f32.mrb[5].mxu0  ;;  %v394_v9 = vpop.f32.mrb[5].mxu1 }
 0x111   :  { %v322_v10 = vadd.f32 %v321_v8, %v781_v46  ;;  %v395_v11 = vadd.f32 %v394_v9, %v783_v47  ;;  %v323_v12 = vpop.f32.mrb[6].mxu0  ;;  %v396_v13 = vpop.f32.mrb[6].mxu1 }
 0x112   :  { %v324_v14 = vadd.f32 %v323_v12, %v777_v44  ;;  %v397_v15 = vadd.f32 %v396_v13, %v779_v45  ;;  %v325_v16 = vpop.f32.mrb[7].mxu0  ;;  %v398_v17 = vpop.f32.mrb[7].mxu1 }
 0x113   :  { %v626_v18 = vpack.c.bf16 %v322_v10, %v320_v6  ;;  %v627_v19 = vpack.c.bf16 %v395_v11, %v393_v7  ;;  %v326_v20 = vadd.f32 %v325_v16, %v781_v46  ;;  %v399_v21 = vadd.f32 %v398_v17, %v783_v47 }
 0x115   :  { %553 = vst [vmem:[%s868_s3 + $0x20] sm:$0xff] %v626_v18  ;;  %554 = vst [vmem:[%s868_s3 + $0x28] sm:$0xff] %v627_v19  ;;  %v628_v22 = vpack.c.bf16 %v326_v20, %v324_v14  ;;  %v629_v23 = vpack.c.bf16 %v399_v21, %v397_v15 }
 0x117   :  { %555 = vst [vmem:[%s868_s3 + $0x30] sm:$0xff] %v628_v22  ;;  %556 = vst [vmem:[%s868_s3 + $0x38] sm:$0xff] %v629_v23  ;;  %v329_v24 = vpop.f32.mrb[8].mxu0  ;;  %v402_v25 = vpop.f32.mrb[8].mxu1 }
 0x118   :  { %v330_v26 = vadd.f32 %v329_v24, %v777_v44  ;;  %v403_v27 = vadd.f32 %v402_v25, %v779_v45  ;;  %v331_v28 = vpop.f32.mrb[9].mxu0  ;;  %v404_v29 = vpop.f32.mrb[9].mxu1 }
 0x119   :  { %v332_v30 = vadd.f32 %v331_v28, %v781_v46  ;;  %v405_v31 = vadd.f32 %v404_v29, %v783_v47  ;;  %v333_v32 = vpop.f32.mrb[10].mxu0  ;;  %v406_v33 = vpop.f32.mrb[10].mxu1 }
 0x11a   :  { %v334_v34 = vadd.f32 %v333_v32, %v777_v44  ;;  %v407_v35 = vadd.f32 %v406_v33, %v779_v45  ;;  %v335_v36 = vpop.f32.mrb[11].mxu0  ;;  %v408_v37 = vpop.f32.mrb[11].mxu1 }
 0x11b   :  { %v630_v38 = vpack.c.bf16 %v332_v30, %v330_v26  ;;  %v631_v39 = vpack.c.bf16 %v405_v31, %v403_v27  ;;  %v336_v40 = vadd.f32 %v335_v36, %v781_v46  ;;  %v409_v41 = vadd.f32 %v408_v37, %v783_v47 }
 0x11d   :  { %557 = vst [vmem:[%s868_s3 + $0x40] sm:$0xff] %v630_v38  ;;  %558 = vst [vmem:[%s868_s3 + $0x48] sm:$0xff] %v631_v39  ;;  %v632_v42 = vpack.c.bf16 %v336_v40, %v334_v34  ;;  %v633_v43 = vpack.c.bf16 %v409_v41, %v407_v35 }
 0x11f   :  { %559 = vst [vmem:[%s868_s3 + $0x50] sm:$0xff] %v632_v42  ;;  %560 = vst [vmem:[%s868_s3 + $0x58] sm:$0xff] %v633_v43  ;;  %v339_v48 = vpop.f32.mrb[12].mxu0  ;;  %v412_v49 = vpop.f32.mrb[12].mxu1 }
 0x120   :  { %v340_v50 = vadd.f32 %v339_v48, %v777_v44  ;;  %v413_v51 = vadd.f32 %v412_v49, %v779_v45  ;;  %v341_v52 = vpop.f32.mrb[13].mxu0  ;;  %v414_v53 = vpop.f32.mrb[13].mxu1 }
 0x121   :  { %v342_v54 = vadd.f32 %v341_v52, %v781_v46  ;;  %v415_v55 = vadd.f32 %v414_v53, %v783_v47  ;;  %v343_v56 = vpop.f32.mrb[14].mxu0  ;;  %v416_v57 = vpop.f32.mrb[14].mxu1 }
 0x122   :  { %v344_v58 = vadd.f32 %v343_v56, %v777_v44  ;;  %v417_v59 = vadd.f32 %v416_v57, %v779_v45  ;;  %v345_v60 = vpop.f32.mrb[15].mxu0  ;;  %v418_v61 = vpop.f32.mrb[15].mxu1 }
 0x123   :  { %v634_v62 = vpack.c.bf16 %v342_v54, %v340_v50  ;;  %v635_v63 = vpack.c.bf16 %v415_v55, %v413_v51  ;;  %v346_v0 = vadd.f32 %v345_v60, %v781_v46  ;;  %v419_v1 = vadd.f32 %v418_v61, %v783_v47 }
 0x125   :  { %561 = vst [vmem:[%s868_s3 + $0x60] sm:$0xff] %v634_v62  ;;  %562 = vst [vmem:[%s868_s3 + $0x68] sm:$0xff] %v635_v63  ;;  %v636_v2 = vpack.c.bf16 %v346_v0, %v344_v58  ;;  %v637_v44 = vpack.c.bf16 %v419_v1, %v417_v59 }
 0x127   :  { %563 = vst [vmem:[%s868_s3 + $0x70] sm:$0xff] %v636_v2  ;;  %564 = vst [vmem:[%s868_s3 + $0x78] sm:$0xff] %v637_v44 }
 0x128   :  { %569 = vsyncpa [#allocation3], 1 }

// kernel: rnn_forward.5
= control target key start
LH: loop header
LB: loop body
LE: loop exit
PB: predicated region body
PF: predicated region fallthrough
CT: control target
= control target key end

     0   :  { %v1611_v1 = vmov 0   ;;  %v1612_v33 = vmov 0.0|0.0   ;;  %vm1614_vm0 = vmmov 0   ;;  %s2242_s1 = inlined_call_operand.vmem [shape: bf16[128,512], index: 1, kind: input, shape index: {}]   ;;  %s2243_s0 = inlined_call_operand.vmem [shape: bf16[8,8,512], index: 0, kind: input, shape index: {}]   ;;  %s2244_s2 = inlined_call_operand.vmem [shape: bf16[128,128], index: 2, kind: input, shape index: {}]   ;;  %s2245_s3 = inlined_call_operand.vmem [shape: f32[1,128], index: 3, kind: input, shape index: {}]   ;;  %s2246_s4 = inlined_call_operand.vmem [shape: f32[8,128], index: 4, kind: output, shape index: {}]  }
   0x1   :  { %v1643_v0 = vld [vmem:[%s2242_s1 + $0x4] ss:$16 sps:$4 sm:$0xff]   ;;  %257 = vmatprep.mubr.bf16.mxu0 %v1611_v1  ;;  %298 = vmatprep.mubr.bf16.mxu1 %v1611_v1  ;;  %v1650_v2 = vld [vmem:[%s2242_s1] ss:$16 sps:$4 sm:$0xff]   ;;  %v1673_v6 = vld [vmem:[%s2242_s1 + $0xc] ss:$16 sps:$4 sm:$0xff]  }
   0x2   :  { %225 = vmatprep.subr.bf16.mxu0 %v1643_v0  ;;  %v1656_v3 = vld [vmem:[%s2242_s1 + $0x24] ss:$16 sps:$4 sm:$0xff]   ;;  %v1662_v4 = vld [vmem:[%s2242_s1 + $0x20] ss:$16 sps:$4 sm:$0xff]   ;;  %v1678_v7 = vld [vmem:[%s2242_s1 + $0x8] ss:$16 sps:$4 sm:$0xff]   ;;  %266 = vmatprep.subr.bf16.mxu1 %v1673_v6 }
   0x3   :  { %226 = vmatpush1.bf16.msra.mxu0 %v1650_v2  ;;  %v1668_v5 = vld [vmem:[%s2242_s1 + $0x44] ss:$16 sps:$4 sm:$0xff]   ;;  %v1684_v8 = vld [vmem:[%s2242_s1 + $0x40] ss:$16 sps:$4 sm:$0xff]   ;;  %267 = vmatpush1.bf16.msra.mxu1 %v1678_v7  ;;  %v1697_v10 = vld [vmem:[%s2242_s1 + $0x2c] ss:$16 sps:$4 sm:$0xff]  }
   0x4   :  { %227 = vmatprep.subr.bf16.mxu0 %v1656_v3  ;;  %v1691_v9 = vld [vmem:[%s2242_s1 + $0x64] ss:$16 sps:$4 sm:$0xff]   ;;  %v1702_v11 = vld [vmem:[%s2242_s1 + $0x28] ss:$16 sps:$4 sm:$0xff]   ;;  %268 = vmatprep.subr.bf16.mxu1 %v1697_v10  ;;  %v1709_v12 = vld [vmem:[%s2242_s1 + $0x60] ss:$16 sps:$4 sm:$0xff]  }
   0x5   :  { %v1714_v13 = vld [vmem:[%s2242_s1 + $0x84] ss:$16 sps:$4 sm:$0xff]   ;;  %v1719_v14 = vld [vmem:[%s2242_s1 + $0x4c] ss:$16 sps:$4 sm:$0xff]   ;;  %v1726_v15 = vld [vmem:[%s2242_s1 + $0x48] ss:$16 sps:$4 sm:$0xff]  }
   0x6   :  { %v1732_v16 = vld [vmem:[%s2242_s1 + $0x6c] ss:$16 sps:$4 sm:$0xff]   ;;  %v1738_v17 = vld [vmem:[%s2242_s1 + $0x80] ss:$16 sps:$4 sm:$0xff]   ;;  %v1744_v18 = vld [vmem:[%s2242_s1 + $0xa4] ss:$16 sps:$4 sm:$0xff]  }
   0x7   :  { %228 = vmatpush1.bf16.msra.mxu0 %v1662_v4  ;;  %269 = vmatpush1.bf16.msra.mxu1 %v1702_v11  ;;  %v1750_v19 = vld [vmem:[%s2242_s1 + $0x68] ss:$16 sps:$4 sm:$0xff]   ;;  %v1756_v20 = vld [vmem:[%s2242_s1 + $0x8c] ss:$16 sps:$4 sm:$0xff]   ;;  %v1762_v21 = vld [vmem:[%s2242_s1 + $0xa0] ss:$16 sps:$4 sm:$0xff]  }
   0x8   :  { %229 = vmatprep.subr.bf16.mxu0 %v1668_v5  ;;  %270 = vmatprep.subr.bf16.mxu1 %v1719_v14  ;;  %v1767_v22 = vld [vmem:[%s2242_s1 + $0xc4] ss:$16 sps:$4 sm:$0xff]   ;;  %v1774_v23 = vld [vmem:[%s2242_s1 + $0x88] ss:$16 sps:$4 sm:$0xff]   ;;  %v1780_v24 = vld [vmem:[%s2242_s1 + $0xac] ss:$16 sps:$4 sm:$0xff]  }
   0x9   :  { %v1786_v25 = vld [vmem:[%s2242_s1 + $0xc0] ss:$16 sps:$4 sm:$0xff]   ;;  %v1792_v26 = vld [vmem:[%s2242_s1 + $0xe4] ss:$16 sps:$4 sm:$0xff]   ;;  %v1798_v27 = vld [vmem:[%s2242_s1 + $0xa8] ss:$16 sps:$4 sm:$0xff]  }
   0xa   :  { %v1804_v28 = vld [vmem:[%s2242_s1 + $0xcc] ss:$16 sps:$4 sm:$0xff]   ;;  %v1810_v29 = vld [vmem:[%s2242_s1 + $0xe0] ss:$16 sps:$4 sm:$0xff]   ;;  %v1817_v30 = vld [vmem:[%s2242_s1 + $0xc8] ss:$16 sps:$4 sm:$0xff]  }
   0xb   :  { %230 = vmatpush1.bf16.msra.mxu0 %v1684_v8  ;;  %271 = vmatpush1.bf16.msra.mxu1 %v1726_v15  ;;  %v1823_v31 = vld [vmem:[%s2242_s1 + $0xec] ss:$16 sps:$4 sm:$0xff]   ;;  %v1830_v32 = vld [vmem:[%s2242_s1 + $0xe8] ss:$16 sps:$4 sm:$0xff]   ;;  %v58_v34 = vld [vmem:[%s2243_s0] sm:$0xff] }
   0xc   :  { %231 = vmatprep.subr.bf16.mxu0 %v1691_v9  ;;  %272 = vmatprep.subr.bf16.mxu1 %v1732_v16  ;;  %v60_v35 = vunpack.c.l.bf16 %v58_v34  ;;  %v61_v36 = vunpack.c.h.bf16 %v58_v34  ;;  %v59_v38 = vld [vmem:[%s2243_s0 + $0x8] sm:$0xff] }
   0xd   :  { %v63_v45 = vunpack.c.h.bf16 %v59_v38  ;;  %v62_v51 = vunpack.c.l.bf16 %v59_v38 }
   0xf   :  { %232 = vmatpush1.bf16.msra.mxu0 %v1709_v12  ;;  %273 = vmatpush1.bf16.msra.mxu1 %v1750_v19 }
  0x10   :  { %233 = vmatprep.subr.bf16.mxu0 %v1714_v13  ;;  %274 = vmatprep.subr.bf16.mxu1 %v1756_v20 }
  0x13   :  { %234 = vmatpush1.bf16.msra.mxu0 %v1738_v17  ;;  %275 = vmatpush1.bf16.msra.mxu1 %v1774_v23 }
  0x14   :  { %235 = vmatprep.subr.bf16.mxu0 %v1744_v18  ;;  %276 = vmatprep.subr.bf16.mxu1 %v1780_v24 }
  0x17   :  { %236 = vmatpush1.bf16.msra.mxu0 %v1762_v21  ;;  %277 = vmatpush1.bf16.msra.mxu1 %v1798_v27 }
  0x18   :  { %237 = vmatprep.subr.bf16.mxu0 %v1767_v22  ;;  %278 = vmatprep.subr.bf16.mxu1 %v1804_v28 }
  0x1b   :  { %238 = vmatpush1.bf16.msra.mxu0 %v1786_v25  ;;  %279 = vmatpush1.bf16.msra.mxu1 %v1817_v30 }
  0x1c   :  { %239 = vmatprep.subr.bf16.mxu0 %v1792_v26  ;;  %280 = vmatprep.subr.bf16.mxu1 %v1823_v31 }
  0x1f   :  { %240 = vmatpush1.bf16.msra.mxu0 %v1810_v29  ;;  %281 = vmatpush1.bf16.msra.mxu1 %v1830_v32 }
  0x20   :  { %343 = vmatprep.subr.bf16.mxu0 %v1643_v0  ;;  %384 = vmatprep.subr.bf16.mxu1 %v1673_v6 }
  0x22   :  { %258 = vmatmul.mubr.bf16.vlgmr.msra.gmra.mrb[0].mxu0 %v1612_v33  ;;  %299 = vmatmul.mubr.bf16.vlgmr.msra.gmra.mrb[0].mxu1 %v1612_v33 }
  0x23   :  { %344 = vmatpush1.bf16.msra.mxu0 %v1650_v2  ;;  %375 = vmatprep.mubr.bf16.mxu0 %v1611_v1 }
  0x24   :  { %345 = vmatprep.subr.bf16.mxu0 %v1656_v3  ;;  %385 = vmatpush1.bf16.msra.mxu1 %v1678_v7 }
  0x25   :  { %386 = vmatprep.subr.bf16.mxu1 %v1697_v10  ;;  %416 = vmatprep.mubr.bf16.mxu1 %v1611_v1 }
  0x27   :  { %346 = vmatpush1.bf16.msra.mxu0 %v1662_v4 }
  0x28   :  { %347 = vmatprep.subr.bf16.mxu0 %v1668_v5  ;;  %387 = vmatpush1.bf16.msra.mxu1 %v1702_v11 }
  0x29   :  { %388 = vmatprep.subr.bf16.mxu1 %v1719_v14 }
  0x2b   :  { %348 = vmatpush1.bf16.msra.mxu0 %v1684_v8 }
  0x2c   :  { %349 = vmatprep.subr.bf16.mxu0 %v1691_v9  ;;  %389 = vmatpush1.bf16.msra.mxu1 %v1726_v15 }
  0x2d   :  { %390 = vmatprep.subr.bf16.mxu1 %v1732_v16 }
  0x2f   :  { %350 = vmatpush1.bf16.msra.mxu0 %v1709_v12 }
  0x30   :  { %351 = vmatprep.subr.bf16.mxu0 %v1714_v13  ;;  %391 = vmatpush1.bf16.msra.mxu1 %v1750_v19 }
  0x31   :  { %392 = vmatprep.subr.bf16.mxu1 %v1756_v20 }
  0x33   :  { %352 = vmatpush1.bf16.msra.mxu0 %v1738_v17 }
  0x34   :  { %353 = vmatprep.subr.bf16.mxu0 %v1744_v18  ;;  %393 = vmatpush1.bf16.msra.mxu1 %v1774_v23 }
  0x35   :  { %394 = vmatprep.subr.bf16.mxu1 %v1780_v24 }
  0x37   :  { %354 = vmatpush1.bf16.msra.mxu0 %v1762_v21 }
  0x38   :  { %355 = vmatprep.subr.bf16.mxu0 %v1767_v22  ;;  %395 = vmatpush1.bf16.msra.mxu1 %v1798_v27 }
  0x39   :  { %396 = vmatprep.subr.bf16.mxu1 %v1804_v28 }
  0x3b   :  { %356 = vmatpush1.bf16.msra.mxu0 %v1786_v25 }
  0x3c   :  { %357 = vmatprep.subr.bf16.mxu0 %v1792_v26  ;;  %397 = vmatpush1.bf16.msra.mxu1 %v1817_v30 }
  0x3d   :  { %398 = vmatprep.subr.bf16.mxu1 %v1823_v31 }
  0x3f   :  { %358 = vmatpush1.bf16.msra.mxu0 %v1810_v29 }
  0x40   :  { %461 = vmatprep.subr.bf16.mxu0 %v1643_v0  ;;  %399 = vmatpush1.bf16.msra.mxu1 %v1830_v32 }
  0x41   :  { %502 = vmatprep.subr.bf16.mxu1 %v1673_v6 }
  0xf5   :  { %v259_v37 = vpop.f32.mrb[0].mxu0  ;;  %v300_v47 = vpop.f32.mrb[0].mxu1 }
  0xf6   :  { %v307_v39 = vadd.f32 %v259_v37, %v60_v35  ;;  %v261_v40 = vpop.f32.mrb[1].mxu0  ;;  %v302_v48 = vpop.f32.mrb[1].mxu1  ;;  %v309_v54 = vadd.f32 %v300_v47, %v62_v51 }
  0xf7   :  { %v308_v41 = vadd.f32 %v261_v40, %v61_v36  ;;  %v263_v42 = vpop.f32.mrb[2].mxu0  ;;  %v310_v49 = vadd.f32 %v302_v48, %v63_v45  ;;  %v304_v50 = vpop.f32.mrb[2].mxu1  ;;  %v1318_v40 = vld [vmem:[%s2243_s0 + $0x10] sm:$0xff] }
  0xf8   :  { %v1315_v43 = vmul.f32 -1.442695, %v307_v39  ;;  %v264_v44 = vpop.f32.mrb[3].mxu0  ;;  %v305_v52 = vpop.f32.mrb[3].mxu1  ;;  %v339_v42 = vunpack.c.h.bf16 %v1318_v40 }
  0xf9   :  { %v1316_v46 = vmul.f32 -1.442695, %v308_v41  ;;  %v1317_v53 = vmul.f32 -1.442695, %v310_v49  ;;  %v338_v41 = vunpack.c.l.bf16 %v1318_v40 }
  0xfa   :  { %1451 = vpow2.f32 %v1315_v43 }
  0xfb   :  { %1453 = vpow2.f32 %v1316_v46  ;;  %v1319_v46 = vld [vmem:[%s2243_s0 + $0x18] sm:$0xff] }
  0xfc   :  { %1455 = vpow2.f32 %v1317_v53 }
  0xfd   :  { %1457 = vtanh.f32 %v309_v54 }
 0x104   :  { %v1452_v55 = vpop.eup %1451 }
 0x105   :  { %v1454_v56 = vpop.eup %1453  ;;  %v314_v57 = vadd.f32 1.0, %v1452_v55 }
 0x106   :  { %v320_v58 = vadd.f32 1.0, %v1454_v56  ;;  %v1456_v59 = vpop.eup %1455  ;;  %v341_v56 = vunpack.c.h.bf16 %v1319_v46 }
 0x107   :  { %1459 = vrcp.f32 %v314_v57  ;;  %v1458_v60 = vpop.eup %1457  ;;  %v327_v62 = vadd.f32 1.0, %v1456_v59 }
 0x108   :  { %1461 = vrcp.f32 %v320_v58  ;;  %v340_v58 = vunpack.c.l.bf16 %v1319_v46 }
 0x109   :  { %1463 = vrcp.f32 %v327_v62 }
 0x111   :  { %v1460_v61 = vpop.eup %1459 }
 0x112   :  { %v1462_v63 = vpop.eup %1461  ;;  %v331_v33 = vmul.f32 %v1460_v61, %v1458_v60 }
 0x113   :  { %v330_v34 = vmul.f32 0.0, %v1462_v63  ;;  %v1464_v36 = vpop.eup %1463 }
 0x115   :  { %v1876_v35 = vadd.f32 %v331_v33, %v330_v34 }
 0x117   :  { %1465 = vtanh.f32 %v1876_v35 }
 0x121   :  { %v1466_v37 = vpop.eup %1465 }
 0x122   :  { %v334_v38 = vmul.f32 %v1466_v37, %v1464_v36 }
 0x124   :  { %v342_v39 = vpack.c.bf16 %v334_v38, %v334_v38 }
 0x126   :  { %376 = vmatmul.mubr.bf16.vlgmr.msra.gmra.mrb[4].mxu0 %v342_v39  ;;  %417 = vmatmul.mubr.bf16.vlgmr.msra.gmra.mrb[4].mxu1 %v342_v39 }
 0x127   :  { %462 = vmatpush1.bf16.msra.mxu0 %v1650_v2  ;;  %503 = vmatpush1.bf16.msra.mxu1 %v1678_v7 }
 0x128   :  { %463 = vmatprep.subr.bf16.mxu0 %v1656_v3  ;;  %504 = vmatprep.subr.bf16.mxu1 %v1697_v10 }
 0x129   :  { %493 = vmatprep.mubr.bf16.mxu0 %v1611_v1  ;;  %534 = vmatprep.mubr.bf16.mxu1 %v1611_v1 }
 0x12b   :  { %464 = vmatpush1.bf16.msra.mxu0 %v1662_v4  ;;  %505 = vmatpush1.bf16.msra.mxu1 %v1702_v11 }
 0x12c   :  { %465 = vmatprep.subr.bf16.mxu0 %v1668_v5  ;;  %506 = vmatprep.subr.bf16.mxu1 %v1719_v14 }
 0x12f   :  { %466 = vmatpush1.bf16.msra.mxu0 %v1684_v8  ;;  %507 = vmatpush1.bf16.msra.mxu1 %v1726_v15 }
 0x130   :  { %467 = vmatprep.subr.bf16.mxu0 %v1691_v9  ;;  %508 = vmatprep.subr.bf16.mxu1 %v1732_v16 }
 0x133   :  { %468 = vmatpush1.bf16.msra.mxu0 %v1709_v12  ;;  %509 = vmatpush1.bf16.msra.mxu1 %v1750_v19 }
 0x134   :  { %469 = vmatprep.subr.bf16.mxu0 %v1714_v13  ;;  %510 = vmatprep.subr.bf16.mxu1 %v1756_v20 }
 0x137   :  { %470 = vmatpush1.bf16.msra.mxu0 %v1738_v17  ;;  %511 = vmatpush1.bf16.msra.mxu1 %v1774_v23 }
 0x138   :  { %471 = vmatprep.subr.bf16.mxu0 %v1744_v18  ;;  %512 = vmatprep.subr.bf16.mxu1 %v1780_v24 }
 0x13b   :  { %472 = vmatpush1.bf16.msra.mxu0 %v1762_v21  ;;  %513 = vmatpush1.bf16.msra.mxu1 %v1798_v27 }
 0x13c   :  { %473 = vmatprep.subr.bf16.mxu0 %v1767_v22  ;;  %514 = vmatprep.subr.bf16.mxu1 %v1804_v28 }
 0x13f   :  { %474 = vmatpush1.bf16.msra.mxu0 %v1786_v25  ;;  %515 = vmatpush1.bf16.msra.mxu1 %v1817_v30 }
 0x140   :  { %475 = vmatprep.subr.bf16.mxu0 %v1792_v26  ;;  %516 = vmatprep.subr.bf16.mxu1 %v1823_v31 }
 0x143   :  { %476 = vmatpush1.bf16.msra.mxu0 %v1810_v29  ;;  %517 = vmatpush1.bf16.msra.mxu1 %v1830_v32 }
 0x144   :  { %579 = vmatprep.subr.bf16.mxu0 %v1643_v0  ;;  %620 = vmatprep.subr.bf16.mxu1 %v1673_v6 }
 0x1f9   :  { %v377_v43 = vpop.f32.mrb[4].mxu0  ;;  %v418_v44 = vpop.f32.mrb[4].mxu1 }
 0x1fa   :  { %v425_v45 = vadd.f32 %v377_v43, %v338_v41  ;;  %v379_v47 = vpop.f32.mrb[5].mxu0  ;;  %v420_v48 = vpop.f32.mrb[5].mxu1  ;;  %v427_v60 = vadd.f32 %v418_v44, %v340_v58 }
 0x1fb   :  { %v426_v49 = vadd.f32 %v379_v47, %v339_v42  ;;  %v381_v50 = vpop.f32.mrb[6].mxu0  ;;  %v422_v51 = vpop.f32.mrb[6].mxu1  ;;  %v428_v57 = vadd.f32 %v420_v48, %v341_v56 }
 0x1fc   :  { %v1320_v52 = vmul.f32 -1.442695, %v425_v45  ;;  %v382_v53 = vpop.f32.mrb[7].mxu0  ;;  %v423_v54 = vpop.f32.mrb[7].mxu1 }
 0x1fd   :  { %v1321_v55 = vmul.f32 -1.442695, %v426_v49  ;;  %v1322_v59 = vmul.f32 -1.442695, %v428_v57 }
 0x1fe   :  { %1467 = vpow2.f32 %v1320_v52  ;;  %v1324_v52 = vld [vmem:[%s2243_s0 + $0x28] sm:$0xff] }
 0x1ff   :  { %1469 = vpow2.f32 %v1321_v55 }
 0x200   :  { %1471 = vpow2.f32 %v1322_v59 }
 0x201   :  { %1473 = vtanh.f32 %v427_v60 }
 0x208   :  { %v1468_v61 = vpop.eup %1467 }
 0x209   :  { %v1470_v62 = vpop.eup %1469  ;;  %v432_v63 = vadd.f32 1.0, %v1468_v61 }
 0x20a   :  { %v438_v33 = vadd.f32 1.0, %v1470_v62  ;;  %v1472_v34 = vpop.eup %1471  ;;  %v459_v62 = vunpack.c.h.bf16 %v1324_v52 }
 0x20b   :  { %1475 = vrcp.f32 %v432_v63  ;;  %v1474_v36 = vpop.eup %1473  ;;  %v445_v40 = vadd.f32 1.0, %v1472_v34 }
 0x20c   :  { %1477 = vrcp.f32 %v438_v33  ;;  %v458_v33 = vunpack.c.l.bf16 %v1324_v52 }
 0x20d   :  { %1479 = vrcp.f32 %v445_v40 }
 0x215   :  { %v1476_v37 = vpop.eup %1475 }
 0x216   :  { %v1478_v38 = vpop.eup %1477  ;;  %v449_v39 = vmul.f32 %v1476_v37, %v1474_v36 }
 0x217   :  { %v448_v41 = vmul.f32 %v1478_v38, %v1876_v35  ;;  %v1480_v43 = vpop.eup %1479  ;;  %v1323_v35 = vld [vmem:[%s2243_s0 + $0x20] sm:$0xff] }
 0x218   :  { %v456_v47 = vunpack.c.l.bf16 %v1323_v35  ;;  %v457_v48 = vunpack.c.h.bf16 %v1323_v35 }
 0x219   :  { %v1920_v42 = vadd.f32 %v449_v39, %v448_v41 }
 0x21b   :  { %1481 = vtanh.f32 %v1920_v42 }
 0x225   :  { %v1482_v44 = vpop.eup %1481 }
 0x226   :  { %v452_v45 = vmul.f32 %v1482_v44, %v1480_v43 }
 0x228   :  { %v460_v46 = vpack.c.bf16 %v452_v45, %v452_v45 }
 0x22a   :  { %494 = vmatmul.mubr.bf16.vlgmr.msra.gmra.mrb[8].mxu0 %v460_v46  ;;  %535 = vmatmul.mubr.bf16.vlgmr.msra.gmra.mrb[8].mxu1 %v460_v46 }
 0x22b   :  { %580 = vmatpush1.bf16.msra.mxu0 %v1650_v2  ;;  %621 = vmatpush1.bf16.msra.mxu1 %v1678_v7 }
 0x22c   :  { %581 = vmatprep.subr.bf16.mxu0 %v1656_v3  ;;  %622 = vmatprep.subr.bf16.mxu1 %v1697_v10 }
 0x22d   :  { %611 = vmatprep.mubr.bf16.mxu0 %v1611_v1  ;;  %652 = vmatprep.mubr.bf16.mxu1 %v1611_v1 }
 0x22f   :  { %582 = vmatpush1.bf16.msra.mxu0 %v1662_v4  ;;  %623 = vmatpush1.bf16.msra.mxu1 %v1702_v11 }
 0x230   :  { %583 = vmatprep.subr.bf16.mxu0 %v1668_v5  ;;  %624 = vmatprep.subr.bf16.mxu1 %v1719_v14 }
 0x233   :  { %584 = vmatpush1.bf16.msra.mxu0 %v1684_v8  ;;  %625 = vmatpush1.bf16.msra.mxu1 %v1726_v15 }
 0x234   :  { %585 = vmatprep.subr.bf16.mxu0 %v1691_v9  ;;  %626 = vmatprep.subr.bf16.mxu1 %v1732_v16 }
 0x237   :  { %586 = vmatpush1.bf16.msra.mxu0 %v1709_v12  ;;  %627 = vmatpush1.bf16.msra.mxu1 %v1750_v19 }
 0x238   :  { %587 = vmatprep.subr.bf16.mxu0 %v1714_v13  ;;  %628 = vmatprep.subr.bf16.mxu1 %v1756_v20 }
 0x23b   :  { %588 = vmatpush1.bf16.msra.mxu0 %v1738_v17  ;;  %629 = vmatpush1.bf16.msra.mxu1 %v1774_v23 }
 0x23c   :  { %589 = vmatprep.subr.bf16.mxu0 %v1744_v18  ;;  %630 = vmatprep.subr.bf16.mxu1 %v1780_v24 }
 0x23f   :  { %590 = vmatpush1.bf16.msra.mxu0 %v1762_v21  ;;  %631 = vmatpush1.bf16.msra.mxu1 %v1798_v27 }
 0x240   :  { %591 = vmatprep.subr.bf16.mxu0 %v1767_v22  ;;  %632 = vmatprep.subr.bf16.mxu1 %v1804_v28 }
 0x243   :  { %592 = vmatpush1.bf16.msra.mxu0 %v1786_v25  ;;  %633 = vmatpush1.bf16.msra.mxu1 %v1817_v30 }
 0x244   :  { %593 = vmatprep.subr.bf16.mxu0 %v1792_v26  ;;  %634 = vmatprep.subr.bf16.mxu1 %v1823_v31 }
 0x247   :  { %594 = vmatpush1.bf16.msra.mxu0 %v1810_v29  ;;  %635 = vmatpush1.bf16.msra.mxu1 %v1830_v32 }
 0x248   :  { %697 = vmatprep.subr.bf16.mxu0 %v1643_v0  ;;  %738 = vmatprep.subr.bf16.mxu1 %v1673_v6 }
 0x2fd   :  { %v495_v49 = vpop.f32.mrb[8].mxu0  ;;  %v536_v50 = vpop.f32.mrb[8].mxu1 }
 0x2fe   :  { %v543_v51 = vadd.f32 %v495_v49, %v456_v47  ;;  %v497_v53 = vpop.f32.mrb[9].mxu0  ;;  %v538_v54 = vpop.f32.mrb[9].mxu1  ;;  %v545_v36 = vadd.f32 %v536_v50, %v458_v33 }
 0x2ff   :  { %v544_v55 = vadd.f32 %v497_v53, %v457_v48  ;;  %v499_v56 = vpop.f32.mrb[10].mxu0  ;;  %v540_v57 = vpop.f32.mrb[10].mxu1  ;;  %v546_v63 = vadd.f32 %v538_v54, %v459_v62 }
 0x300   :  { %v1325_v58 = vmul.f32 -1.442695, %v543_v51  ;;  %v500_v59 = vpop.f32.mrb[11].mxu0  ;;  %v541_v60 = vpop.f32.mrb[11].mxu1 }
 0x301   :  { %v1326_v61 = vmul.f32 -1.442695, %v544_v55  ;;  %v1327_v34 = vmul.f32 -1.442695, %v546_v63 }
 0x302   :  { %1483 = vpow2.f32 %v1325_v58  ;;  %v1329_v58 = vld [vmem:[%s2243_s0 + $0x38] sm:$0xff] }
 0x303   :  { %1485 = vpow2.f32 %v1326_v61 }
 0x304   :  { %1487 = vpow2.f32 %v1327_v34 }
 0x305   :  { %1489 = vtanh.f32 %v545_v36 }
 0x30c   :  { %v1484_v37 = vpop.eup %1483 }
 0x30d   :  { %v1486_v38 = vpop.eup %1485  ;;  %v550_v39 = vadd.f32 1.0, %v1484_v37 }
 0x30e   :  { %v556_v40 = vadd.f32 1.0, %v1486_v38  ;;  %v1488_v41 = vpop.eup %1487  ;;  %v577_v38 = vunpack.c.h.bf16 %v1329_v58 }
 0x30f   :  { %1491 = vrcp.f32 %v550_v39  ;;  %v1490_v43 = vpop.eup %1489  ;;  %v563_v35 = vadd.f32 1.0, %v1488_v41 }
 0x310   :  { %1493 = vrcp.f32 %v556_v40  ;;  %v576_v40 = vunpack.c.l.bf16 %v1329_v58 }
 0x311   :  { %1495 = vrcp.f32 %v563_v35 }
 0x319   :  { %v1492_v44 = vpop.eup %1491 }
 0x31a   :  { %v1494_v45 = vpop.eup %1493  ;;  %v567_v46 = vmul.f32 %v1492_v44, %v1490_v43 }
 0x31b   :  { %v566_v47 = vmul.f32 %v1494_v45, %v1920_v42  ;;  %v1496_v49 = vpop.eup %1495  ;;  %v1328_v42 = vld [vmem:[%s2243_s0 + $0x30] sm:$0xff] }
 0x31c   :  { %v574_v53 = vunpack.c.l.bf16 %v1328_v42  ;;  %v575_v54 = vunpack.c.h.bf16 %v1328_v42 }
 0x31d   :  { %v1964_v48 = vadd.f32 %v567_v46, %v566_v47 }
 0x31f   :  { %1497 = vtanh.f32 %v1964_v48 }
 0x329   :  { %v1498_v50 = vpop.eup %1497 }
 0x32a   :  { %v570_v51 = vmul.f32 %v1498_v50, %v1496_v49 }
 0x32c   :  { %v578_v52 = vpack.c.bf16 %v570_v51, %v570_v51 }
 0x32e   :  { %612 = vmatmul.mubr.bf16.vlgmr.msra.gmra.mrb[12].mxu0 %v578_v52  ;;  %653 = vmatmul.mubr.bf16.vlgmr.msra.gmra.mrb[12].mxu1 %v578_v52 }
 0x32f   :  { %698 = vmatpush1.bf16.msra.mxu0 %v1650_v2  ;;  %739 = vmatpush1.bf16.msra.mxu1 %v1678_v7 }
 0x330   :  { %699 = vmatprep.subr.bf16.mxu0 %v1656_v3  ;;  %740 = vmatprep.subr.bf16.mxu1 %v1697_v10 }
 0x331   :  { %729 = vmatprep.mubr.bf16.mxu0 %v1611_v1  ;;  %770 = vmatprep.mubr.bf16.mxu1 %v1611_v1 }
 0x333   :  { %700 = vmatpush1.bf16.msra.mxu0 %v1662_v4  ;;  %741 = vmatpush1.bf16.msra.mxu1 %v1702_v11 }
 0x334   :  { %701 = vmatprep.subr.bf16.mxu0 %v1668_v5  ;;  %742 = vmatprep.subr.bf16.mxu1 %v1719_v14 }
 0x337   :  { %702 = vmatpush1.bf16.msra.mxu0 %v1684_v8  ;;  %743 = vmatpush1.bf16.msra.mxu1 %v1726_v15 }
 0x338   :  { %703 = vmatprep.subr.bf16.mxu0 %v1691_v9  ;;  %744 = vmatprep.subr.bf16.mxu1 %v1732_v16 }
 0x33b   :  { %704 = vmatpush1.bf16.msra.mxu0 %v1709_v12  ;;  %745 = vmatpush1.bf16.msra.mxu1 %v1750_v19 }
 0x33c   :  { %705 = vmatprep.subr.bf16.mxu0 %v1714_v13  ;;  %746 = vmatprep.subr.bf16.mxu1 %v1756_v20 }
 0x33f   :  { %706 = vmatpush1.bf16.msra.mxu0 %v1738_v17  ;;  %747 = vmatpush1.bf16.msra.mxu1 %v1774_v23 }
 0x340   :  { %707 = vmatprep.subr.bf16.mxu0 %v1744_v18  ;;  %748 = vmatprep.subr.bf16.mxu1 %v1780_v24 }
 0x343   :  { %708 = vmatpush1.bf16.msra.mxu0 %v1762_v21  ;;  %749 = vmatpush1.bf16.msra.mxu1 %v1798_v27 }
 0x344   :  { %709 = vmatprep.subr.bf16.mxu0 %v1767_v22  ;;  %750 = vmatprep.subr.bf16.mxu1 %v1804_v28 }
 0x347   :  { %710 = vmatpush1.bf16.msra.mxu0 %v1786_v25  ;;  %751 = vmatpush1.bf16.msra.mxu1 %v1817_v30 }
 0x348   :  { %711 = vmatprep.subr.bf16.mxu0 %v1792_v26  ;;  %752 = vmatprep.subr.bf16.mxu1 %v1823_v31 }
 0x34b   :  { %712 = vmatpush1.bf16.msra.mxu0 %v1810_v29  ;;  %753 = vmatpush1.bf16.msra.mxu1 %v1830_v32 }
 0x34c   :  { %815 = vmatprep.subr.bf16.mxu0 %v1643_v0  ;;  %856 = vmatprep.subr.bf16.mxu1 %v1673_v6 }
 0x401   :  { %v613_v55 = vpop.f32.mrb[12].mxu0  ;;  %v654_v56 = vpop.f32.mrb[12].mxu1 }
 0x402   :  { %v661_v57 = vadd.f32 %v613_v55, %v574_v53  ;;  %v615_v59 = vpop.f32.mrb[13].mxu0  ;;  %v656_v60 = vpop.f32.mrb[13].mxu1  ;;  %v663_v43 = vadd.f32 %v654_v56, %v576_v40 }
 0x403   :  { %v662_v61 = vadd.f32 %v615_v59, %v575_v54  ;;  %v617_v62 = vpop.f32.mrb[14].mxu0  ;;  %v658_v63 = vpop.f32.mrb[14].mxu1  ;;  %v664_v39 = vadd.f32 %v656_v60, %v577_v38 }
 0x404   :  { %v1330_v33 = vmul.f32 -1.442695, %v661_v57  ;;  %v618_v34 = vpop.f32.mrb[15].mxu0  ;;  %v659_v36 = vpop.f32.mrb[15].mxu1 }
 0x405   :  { %v1331_v37 = vmul.f32 -1.442695, %v662_v61  ;;  %v1332_v41 = vmul.f32 -1.442695, %v664_v39 }
 0x406   :  { %1499 = vpow2.f32 %v1330_v33  ;;  %v1334_v33 = vld [vmem:[%s2243_s0 + $0x48] sm:$0xff] }
 0x407   :  { %1501 = vpow2.f32 %v1331_v37 }
 0x408   :  { %1503 = vpow2.f32 %v1332_v41 }
 0x409   :  { %1505 = vtanh.f32 %v663_v43  ;;  %v695_v43 = vunpack.c.h.bf16 %v1334_v33 }
 0x410   :  { %v1500_v44 = vpop.eup %1499 }
 0x411   :  { %v1502_v45 = vpop.eup %1501  ;;  %v668_v46 = vadd.f32 1.0, %v1500_v44 }
 0x412   :  { %v674_v35 = vadd.f32 1.0, %v1502_v45  ;;  %v1504_v47 = vpop.eup %1503  ;;  %v694_v45 = vunpack.c.l.bf16 %v1334_v33 }
 0x413   :  { %1507 = vrcp.f32 %v668_v46  ;;  %v1506_v49 = vpop.eup %1505  ;;  %v681_v42 = vadd.f32 1.0, %v1504_v47 }
 0x414   :  { %1509 = vrcp.f32 %v674_v35 }
 0x415   :  { %1511 = vrcp.f32 %v681_v42 }
 0x41d   :  { %v1508_v50 = vpop.eup %1507 }
 0x41e   :  { %v1510_v51 = vpop.eup %1509  ;;  %v685_v52 = vmul.f32 %v1508_v50, %v1506_v49 }
 0x41f   :  { %v684_v53 = vmul.f32 %v1510_v51, %v1964_v48  ;;  %v1512_v55 = vpop.eup %1511  ;;  %v1333_v48 = vld [vmem:[%s2243_s0 + $0x40] sm:$0xff] }
 0x420   :  { %v692_v59 = vunpack.c.l.bf16 %v1333_v48  ;;  %v693_v60 = vunpack.c.h.bf16 %v1333_v48 }
 0x421   :  { %v2008_v54 = vadd.f32 %v685_v52, %v684_v53 }
 0x423   :  { %1513 = vtanh.f32 %v2008_v54 }
 0x42d   :  { %v1514_v56 = vpop.eup %1513 }
 0x42e   :  { %v688_v57 = vmul.f32 %v1514_v56, %v1512_v55 }
 0x430   :  { %v696_v58 = vpack.c.bf16 %v688_v57, %v688_v57 }
 0x432   :  { %730 = vmatmul.mubr.bf16.vlgmr.msra.gmra.mrb[16].mxu0 %v696_v58  ;;  %771 = vmatmul.mubr.bf16.vlgmr.msra.gmra.mrb[16].mxu1 %v696_v58 }
 0x433   :  { %816 = vmatpush1.bf16.msra.mxu0 %v1650_v2  ;;  %857 = vmatpush1.bf16.msra.mxu1 %v1678_v7 }
 0x434   :  { %817 = vmatprep.subr.bf16.mxu0 %v1656_v3  ;;  %858 = vmatprep.subr.bf16.mxu1 %v1697_v10 }
 0x435   :  { %847 = vmatprep.mubr.bf16.mxu0 %v1611_v1  ;;  %888 = vmatprep.mubr.bf16.mxu1 %v1611_v1 }
 0x437   :  { %818 = vmatpush1.bf16.msra.mxu0 %v1662_v4  ;;  %859 = vmatpush1.bf16.msra.mxu1 %v1702_v11 }
 0x438   :  { %819 = vmatprep.subr.bf16.mxu0 %v1668_v5  ;;  %860 = vmatprep.subr.bf16.mxu1 %v1719_v14 }
 0x43b   :  { %820 = vmatpush1.bf16.msra.mxu0 %v1684_v8  ;;  %861 = vmatpush1.bf16.msra.mxu1 %v1726_v15 }
 0x43c   :  { %821 = vmatprep.subr.bf16.mxu0 %v1691_v9  ;;  %862 = vmatprep.subr.bf16.mxu1 %v1732_v16 }
 0x43f   :  { %822 = vmatpush1.bf16.msra.mxu0 %v1709_v12  ;;  %863 = vmatpush1.bf16.msra.mxu1 %v1750_v19 }
 0x440   :  { %823 = vmatprep.subr.bf16.mxu0 %v1714_v13  ;;  %864 = vmatprep.subr.bf16.mxu1 %v1756_v20 }
 0x443   :  { %824 = vmatpush1.bf16.msra.mxu0 %v1738_v17  ;;  %865 = vmatpush1.bf16.msra.mxu1 %v1774_v23 }
 0x444   :  { %825 = vmatprep.subr.bf16.mxu0 %v1744_v18  ;;  %866 = vmatprep.subr.bf16.mxu1 %v1780_v24 }
 0x447   :  { %826 = vmatpush1.bf16.msra.mxu0 %v1762_v21  ;;  %867 = vmatpush1.bf16.msra.mxu1 %v1798_v27 }
 0x448   :  { %827 = vmatprep.subr.bf16.mxu0 %v1767_v22  ;;  %868 = vmatprep.subr.bf16.mxu1 %v1804_v28 }
 0x44b   :  { %828 = vmatpush1.bf16.msra.mxu0 %v1786_v25  ;;  %869 = vmatpush1.bf16.msra.mxu1 %v1817_v30 }
 0x44c   :  { %829 = vmatprep.subr.bf16.mxu0 %v1792_v26  ;;  %870 = vmatprep.subr.bf16.mxu1 %v1823_v31 }
 0x44f   :  { %830 = vmatpush1.bf16.msra.mxu0 %v1810_v29  ;;  %871 = vmatpush1.bf16.msra.mxu1 %v1830_v32 }
 0x450   :  { %933 = vmatprep.subr.bf16.mxu0 %v1643_v0  ;;  %974 = vmatprep.subr.bf16.mxu1 %v1673_v6 }
 0x505   :  { %v731_v61 = vpop.f32.mrb[16].mxu0  ;;  %v772_v62 = vpop.f32.mrb[16].mxu1 }
 0x506   :  { %v779_v63 = vadd.f32 %v731_v61, %v692_v59  ;;  %v733_v34 = vpop.f32.mrb[17].mxu0  ;;  %v774_v36 = vpop.f32.mrb[17].mxu1  ;;  %v781_v35 = vadd.f32 %v772_v62, %v694_v45  ;;  %v1586_v45 = vld [vmem:[%s2242_s1 + $0x28] ss:$16 sps:$4 sm:$0xff]  }
 0x507   :  { %v780_v37 = vadd.f32 %v733_v34, %v693_v60  ;;  %v735_v38 = vpop.f32.mrb[18].mxu0  ;;  %v776_v0 = vpop.f32.mrb[18].mxu1  ;;  %v782_v44 = vadd.f32 %v774_v36, %v695_v43  ;;  %v1584_v43 = vld [vmem:[%s2242_s1 + $0x2c] ss:$16 sps:$4 sm:$0xff]  }
 0x508   :  { %v1335_v39 = vmul.f32 -1.442695, %v779_v63  ;;  %v736_v6 = vpop.f32.mrb[19].mxu0  ;;  %v777_v40 = vpop.f32.mrb[19].mxu1 }
 0x509   :  { %v1336_v41 = vmul.f32 -1.442695, %v780_v37  ;;  %v1337_v46 = vmul.f32 -1.442695, %v782_v44  ;;  %v1581_v6 = vld [vmem:[%s2242_s1] ss:$16 sps:$4 sm:$0xff]  }
 0x50a   :  { %1515 = vpow2.f32 %v1335_v39  ;;  %v1582_v40 = vld [vmem:[%s2242_s1 + $0x8] ss:$16 sps:$4 sm:$0xff]   ;;  %v1585_v44 = vld [vmem:[%s2242_s1 + $0x20] ss:$16 sps:$4 sm:$0xff]  }
 0x50b   :  { %1517 = vpow2.f32 %v1336_v41  ;;  %v1583_v41 = vld [vmem:[%s2242_s1 + $0x24] ss:$16 sps:$4 sm:$0xff]  }
 0x50c   :  { %1519 = vpow2.f32 %v1337_v46  ;;  %v1587_v46 = vld [vmem:[%s2242_s1 + $0x44] ss:$16 sps:$4 sm:$0xff]  }
 0x50d   :  { %1521 = vtanh.f32 %v781_v35  ;;  %v1588_v35 = vld [vmem:[%s2242_s1 + $0x4c] ss:$16 sps:$4 sm:$0xff]  }
 0x514   :  { %v1516_v47 = vpop.eup %1515 }
 0x515   :  { %v1518_v49 = vpop.eup %1517  ;;  %v786_v50 = vadd.f32 1.0, %v1516_v47  ;;  %v1590_v47 = vld [vmem:[%s2242_s1 + $0x48] ss:$16 sps:$4 sm:$0xff]  }
 0x516   :  { %v792_v51 = vadd.f32 1.0, %v1518_v49  ;;  %v1520_v52 = vpop.eup %1519  ;;  %v1591_v49 = vld [vmem:[%s2242_s1 + $0x64] ss:$16 sps:$4 sm:$0xff]  }
 0x517   :  { %1523 = vrcp.f32 %v786_v50  ;;  %v1522_v42 = vpop.eup %1521  ;;  %v799_v57 = vadd.f32 1.0, %v1520_v52  ;;  %v1592_v50 = vld [vmem:[%s2242_s1 + $0x6c] ss:$16 sps:$4 sm:$0xff]   ;;  %v1594_v52 = vld [vmem:[%s2242_s1 + $0x68] ss:$16 sps:$4 sm:$0xff]  }
 0x518   :  { %1525 = vrcp.f32 %v792_v51  ;;  %v1593_v51 = vld [vmem:[%s2242_s1 + $0x60] ss:$16 sps:$4 sm:$0xff]  }
 0x519   :  { %1527 = vrcp.f32 %v799_v57  ;;  %v1599_v57 = vld [vmem:[%s2242_s1 + $0xa4] ss:$16 sps:$4 sm:$0xff]  }
 0x521   :  { %v1524_v53 = vpop.eup %1523 }
 0x522   :  { %v1526_v55 = vpop.eup %1525  ;;  %v803_v56 = vmul.f32 %v1524_v53, %v1522_v42  ;;  %v1595_v42 = vld [vmem:[%s2242_s1 + $0x84] ss:$16 sps:$4 sm:$0xff]   ;;  %v1596_v53 = vld [vmem:[%s2242_s1 + $0x8c] ss:$16 sps:$4 sm:$0xff]  }
 0x523   :  { %v802_v58 = vmul.f32 %v1526_v55, %v2008_v54  ;;  %v1528_v59 = vpop.eup %1527  ;;  %v1597_v55 = vld [vmem:[%s2242_s1 + $0x80] ss:$16 sps:$4 sm:$0xff]  }
 0x525   :  { %v2052_v48 = vadd.f32 %v803_v56, %v802_v58  ;;  %v1598_v56 = vld [vmem:[%s2242_s1 + $0x88] ss:$16 sps:$4 sm:$0xff]   ;;  %v1600_v58 = vld [vmem:[%s2242_s1 + $0xac] ss:$16 sps:$4 sm:$0xff]  }
 0x527   :  { %1529 = vtanh.f32 %v2052_v48 }
 0x531   :  { %v1530_v60 = vpop.eup %1529 }
 0x532   :  { %v806_v61 = vmul.f32 %v1530_v60, %v1528_v59  ;;  %v1602_v59 = vld [vmem:[%s2242_s1 + $0xa8] ss:$16 sps:$4 sm:$0xff]   ;;  %v1603_v60 = vld [vmem:[%s2242_s1 + $0xc4] ss:$16 sps:$4 sm:$0xff]  }
 0x534   :  { %v814_v62 = vpack.c.bf16 %v806_v61, %v806_v61  ;;  %v1604_v61 = vld [vmem:[%s2242_s1 + $0xcc] ss:$16 sps:$4 sm:$0xff]  }
 0x536   :  { %848 = vmatmul.mubr.bf16.vlgmr.msra.gmra.mrb[20].mxu0 %v814_v62  ;;  %889 = vmatmul.mubr.bf16.vlgmr.msra.gmra.mrb[20].mxu1 %v814_v62  ;;  %v1605_v62 = vld [vmem:[%s2242_s1 + $0xc0] ss:$16 sps:$4 sm:$0xff]  }
 0x537   :  { %934 = vmatpush1.bf16.msra.mxu0 %v1650_v2  ;;  %975 = vmatpush1.bf16.msra.mxu1 %v1678_v7  ;;  %v1579_v2 = vld [vmem:[%s2242_s1 + $0x4] ss:$16 sps:$4 sm:$0xff]  }
 0x538   :  { %935 = vmatprep.subr.bf16.mxu0 %v1656_v3  ;;  %976 = vmatprep.subr.bf16.mxu1 %v1697_v10  ;;  %v1580_v3 = vld [vmem:[%s2242_s1 + $0xc] ss:$16 sps:$4 sm:$0xff]  }
 0x539   :  { %965 = vmatprep.mubr.bf16.mxu0 %v1611_v1  ;;  %1006 = vmatprep.mubr.bf16.mxu1 %v1611_v1 }
 0x53b   :  { %936 = vmatpush1.bf16.msra.mxu0 %v1662_v4  ;;  %977 = vmatpush1.bf16.msra.mxu1 %v1702_v11  ;;  %v1338_v4 = vld [vmem:[%s2243_s0 + $0x50] sm:$0xff]  ;;  %v1339_v11 = vld [vmem:[%s2243_s0 + $0x58] sm:$0xff] }
 0x53c   :  { %937 = vmatprep.subr.bf16.mxu0 %v1668_v5  ;;  %978 = vmatprep.subr.bf16.mxu1 %v1719_v14  ;;  %v810_v5 = vunpack.c.l.bf16 %v1338_v4  ;;  %v811_v7 = vunpack.c.h.bf16 %v1338_v4  ;;  %v1608_v4 = vld [vmem:[%s2242_s1 + $0xec] ss:$16 sps:$4 sm:$0xff]  }
 0x53f   :  { %938 = vmatpush1.bf16.msra.mxu0 %v1684_v8  ;;  %979 = vmatpush1.bf16.msra.mxu1 %v1726_v15 }
 0x540   :  { %939 = vmatprep.subr.bf16.mxu0 %v1691_v9  ;;  %980 = vmatprep.subr.bf16.mxu1 %v1732_v16 }
 0x543   :  { %940 = vmatpush1.bf16.msra.mxu0 %v1709_v12  ;;  %981 = vmatpush1.bf16.msra.mxu1 %v1750_v19 }
 0x544   :  { %941 = vmatprep.subr.bf16.mxu0 %v1714_v13  ;;  %982 = vmatprep.subr.bf16.mxu1 %v1756_v20 }
 0x547   :  { %942 = vmatpush1.bf16.msra.mxu0 %v1738_v17  ;;  %983 = vmatpush1.bf16.msra.mxu1 %v1774_v23  ;;  %v812_v23 = vunpack.c.l.bf16 %v1339_v11 }
 0x548   :  { %943 = vmatprep.subr.bf16.mxu0 %v1744_v18  ;;  %984 = vmatprep.subr.bf16.mxu1 %v1780_v24 }
 0x54b   :  { %944 = vmatpush1.bf16.msra.mxu0 %v1762_v21  ;;  %985 = vmatpush1.bf16.msra.mxu1 %v1798_v27  ;;  %v813_v21 = vunpack.c.h.bf16 %v1339_v11 }
 0x54c   :  { %945 = vmatprep.subr.bf16.mxu0 %v1767_v22  ;;  %986 = vmatprep.subr.bf16.mxu1 %v1804_v28 }
 0x54f   :  { %946 = vmatpush1.bf16.msra.mxu0 %v1786_v25  ;;  %987 = vmatpush1.bf16.msra.mxu1 %v1817_v30 }
 0x550   :  { %947 = vmatprep.subr.bf16.mxu0 %v1792_v26  ;;  %988 = vmatprep.subr.bf16.mxu1 %v1823_v31 }
 0x553   :  { %948 = vmatpush1.bf16.msra.mxu0 %v1810_v29  ;;  %989 = vmatpush1.bf16.msra.mxu1 %v1830_v32 }
 0x554   :  { %1051 = vmatprep.subr.bf16.mxu0 %v1579_v2  ;;  %1092 = vmatprep.subr.bf16.mxu1 %v1580_v3  ;;  %v1606_v2 = vld [vmem:[%s2242_s1 + $0xc8] ss:$16 sps:$4 sm:$0xff]   ;;  %v1607_v3 = vld [vmem:[%s2242_s1 + $0xe4] ss:$16 sps:$4 sm:$0xff]  }
 0x609   :  { %v849_v8 = vpop.f32.mrb[20].mxu0  ;;  %v890_v9 = vpop.f32.mrb[20].mxu1 }
 0x60a   :  { %v897_v10 = vadd.f32 %v849_v8, %v810_v5  ;;  %v851_v12 = vpop.f32.mrb[21].mxu0  ;;  %v892_v13 = vpop.f32.mrb[21].mxu1  ;;  %v899_v25 = vadd.f32 %v890_v9, %v812_v23  ;;  %v1609_v5 = vld [vmem:[%s2242_s1 + $0xe0] ss:$16 sps:$4 sm:$0xff]  }
 0x60b   :  { %v898_v14 = vadd.f32 %v851_v12, %v811_v7  ;;  %v853_v15 = vpop.f32.mrb[22].mxu0  ;;  %v894_v16 = vpop.f32.mrb[22].mxu1  ;;  %v900_v22 = vadd.f32 %v892_v13, %v813_v21  ;;  %v1610_v7 = vld [vmem:[%s2242_s1 + $0xe8] ss:$16 sps:$4 sm:$0xff]   ;;  %v1343_v8 = vld [vmem:[%s2243_s0 + $0x60] sm:$0xff] }
 0x60c   :  { %v1340_v17 = vmul.f32 -1.442695, %v897_v10  ;;  %v854_v18 = vpop.f32.mrb[23].mxu0  ;;  %v895_v19 = vpop.f32.mrb[23].mxu1  ;;  %v928_v9 = vunpack.c.l.bf16 %v1343_v8  ;;  %v929_v10 = vunpack.c.h.bf16 %v1343_v8 }
 0x60d   :  { %v1341_v20 = vmul.f32 -1.442695, %v898_v14  ;;  %v1342_v24 = vmul.f32 -1.442695, %v900_v22  ;;  %v1344_v14 = vld [vmem:[%s2243_s0 + $0x68] sm:$0xff] }
 0x60e   :  { %1531 = vpow2.f32 %v1340_v17 }
 0x60f   :  { %1533 = vpow2.f32 %v1341_v20 }
 0x610   :  { %1535 = vpow2.f32 %v1342_v24  ;;  %v931_v24 = vunpack.c.h.bf16 %v1344_v14 }
 0x611   :  { %1537 = vtanh.f32 %v899_v25 }
 0x618   :  { %v1532_v26 = vpop.eup %1531 }
 0x619   :  { %v1534_v27 = vpop.eup %1533  ;;  %v904_v28 = vadd.f32 1.0, %v1532_v26  ;;  %v930_v26 = vunpack.c.l.bf16 %v1344_v14 }
 0x61a   :  { %v910_v29 = vadd.f32 1.0, %v1534_v27  ;;  %v1536_v30 = vpop.eup %1535 }
 0x61b   :  { %1539 = vrcp.f32 %v904_v28  ;;  %v1538_v31 = vpop.eup %1537  ;;  %v917_v33 = vadd.f32 1.0, %v1536_v30 }
 0x61c   :  { %1541 = vrcp.f32 %v910_v29 }
 0x61d   :  { %1543 = vrcp.f32 %v917_v33 }
 0x625   :  { %v1540_v32 = vpop.eup %1539 }
 0x626   :  { %v1542_v54 = vpop.eup %1541  ;;  %v921_v63 = vmul.f32 %v1540_v32, %v1538_v31 }
 0x627   :  { %v920_v34 = vmul.f32 %v1542_v54, %v2052_v48  ;;  %v1544_v37 = vpop.eup %1543  ;;  %v1601_v48 = vld [vmem:[%s2242_s1 + $0xa0] ss:$16 sps:$4 sm:$0xff]  }
 0x629   :  { %v2100_v36 = vadd.f32 %v921_v63, %v920_v34 }
 0x62b   :  { %1545 = vtanh.f32 %v2100_v36 }
 0x635   :  { %v1546_v38 = vpop.eup %1545 }
 0x636   :  { %v924_v0 = vmul.f32 %v1546_v38, %v1544_v37 }
 0x638   :  { %v932_v39 = vpack.c.bf16 %v924_v0, %v924_v0 }
 0x63a   :  { %966 = vmatmul.mubr.bf16.vlgmr.msra.gmra.mrb[24].mxu0 %v932_v39  ;;  %1007 = vmatmul.mubr.bf16.vlgmr.msra.gmra.mrb[24].mxu1 %v932_v39 }
 0x63b   :  { %1052 = vmatpush1.bf16.msra.mxu0 %v1581_v6  ;;  %1093 = vmatpush1.bf16.msra.mxu1 %v1582_v40 }
 0x63c   :  { %1053 = vmatprep.subr.bf16.mxu0 %v1583_v41  ;;  %1094 = vmatprep.subr.bf16.mxu1 %v1584_v43 }
 0x63d   :  { %1083 = vmatprep.mubr.bf16.mxu0 %v1611_v1  ;;  %1124 = vmatprep.mubr.bf16.mxu1 %v1611_v1  ;;  %v1589_v1 = vld [vmem:[%s2242_s1 + $0x40] ss:$16 sps:$4 sm:$0xff]  }
 0x63f   :  { %1054 = vmatpush1.bf16.msra.mxu0 %v1585_v44  ;;  %1095 = vmatpush1.bf16.msra.mxu1 %v1586_v45  ;;  %v1443_v44 = vld [vmem:[%s2244_s2] sm:$0xff]   ;;  %v1613_v45 = vmov 0.0  }
 0x640   :  { %1055 = vmatprep.subr.bf16.mxu0 %v1587_v46  ;;  %1096 = vmatprep.subr.bf16.mxu1 %v1588_v35  ;;  %v1445_v46 = vld [vmem:[%s2244_s2 + $0x10] sm:$0xff]   ;;  %v1446_v35 = vld [vmem:[%s2244_s2 + $0x18] sm:$0xff]  }
 0x643   :  { %1056 = vmatpush1.bf16.msra.mxu0 %v1589_v1  ;;  %1097 = vmatpush1.bf16.msra.mxu1 %v1590_v47  ;;  %v1447_v1 = vld [vmem:[%s2244_s2 + $0x20] sm:$0xff]   ;;  %v1448_v47 = vld [vmem:[%s2244_s2 + $0x28] sm:$0xff]  }
 0x644   :  { %1057 = vmatprep.subr.bf16.mxu0 %v1591_v49  ;;  %1098 = vmatprep.subr.bf16.mxu1 %v1592_v50  ;;  %v1449_v49 = vld [vmem:[%s2244_s2 + $0x30] sm:$0xff]   ;;  %v1450_v50 = vld [vmem:[%s2244_s2 + $0x38] sm:$0xff]  }
 0x647   :  { %1058 = vmatpush1.bf16.msra.mxu0 %v1593_v51  ;;  %1099 = vmatpush1.bf16.msra.mxu1 %v1594_v52  ;;  %v1348_v51 = vld [vmem:[%s2243_s0 + $0x70] sm:$0xff] }
 0x648   :  { %1059 = vmatprep.subr.bf16.mxu0 %v1595_v42  ;;  %1100 = vmatprep.subr.bf16.mxu1 %v1596_v53  ;;  %v1046_v52 = vunpack.c.l.bf16 %v1348_v51  ;;  %v1047_v42 = vunpack.c.h.bf16 %v1348_v51 }
 0x64b   :  { %1060 = vmatpush1.bf16.msra.mxu0 %v1597_v55  ;;  %1101 = vmatpush1.bf16.msra.mxu1 %v1598_v56 }
 0x64c   :  { %1061 = vmatprep.subr.bf16.mxu0 %v1599_v57  ;;  %1102 = vmatprep.subr.bf16.mxu1 %v1600_v58  ;;  %v1349_v57 = vld [vmem:[%s2243_s0 + $0x78] sm:$0xff] }
 0x64d   :  { %v1048_v8 = vunpack.c.l.bf16 %v1349_v57 }
 0x64f   :  { %1062 = vmatpush1.bf16.msra.mxu0 %v1601_v48  ;;  %1103 = vmatpush1.bf16.msra.mxu1 %v1602_v59 }
 0x650   :  { %1063 = vmatprep.subr.bf16.mxu0 %v1603_v60  ;;  %1104 = vmatprep.subr.bf16.mxu1 %v1604_v61 }
 0x653   :  { %1064 = vmatpush1.bf16.msra.mxu0 %v1605_v62  ;;  %1105 = vmatpush1.bf16.msra.mxu1 %v1606_v2 }
 0x654   :  { %1065 = vmatprep.subr.bf16.mxu0 %v1607_v3  ;;  %1106 = vmatprep.subr.bf16.mxu1 %v1608_v4 }
 0x657   :  { %1066 = vmatpush1.bf16.msra.mxu0 %v1609_v5  ;;  %1107 = vmatpush1.bf16.msra.mxu1 %v1610_v7  ;;  %v1049_v5 = vunpack.c.h.bf16 %v1349_v57 }
 0x658   :  { %1371 = vmatprep.subr.bf16.mxu0 %v1613_v45 }
 0x70d   :  { %v967_v11 = vpop.f32.mrb[24].mxu0  ;;  %v1008_v12 = vpop.f32.mrb[24].mxu1 }
 0x70e   :  { %v1015_v13 = vadd.f32 %v967_v11, %v928_v9  ;;  %v969_v15 = vpop.f32.mrb[25].mxu0  ;;  %v1010_v16 = vpop.f32.mrb[25].mxu1  ;;  %v1017_v28 = vadd.f32 %v1008_v12, %v930_v26 }
 0x70f   :  { %v1016_v17 = vadd.f32 %v969_v15, %v929_v10  ;;  %v971_v18 = vpop.f32.mrb[26].mxu0  ;;  %v1012_v19 = vpop.f32.mrb[26].mxu1  ;;  %v1018_v25 = vadd.f32 %v1010_v16, %v931_v24 }
 0x710   :  { %v1345_v20 = vmul.f32 -1.442695, %v1015_v13  ;;  %v972_v21 = vpop.f32.mrb[27].mxu0  ;;  %v1013_v22 = vpop.f32.mrb[27].mxu1 }
 0x711   :  { %v1346_v23 = vmul.f32 -1.442695, %v1016_v17  ;;  %v1347_v27 = vmul.f32 -1.442695, %v1018_v25 }
 0x712   :  { %1547 = vpow2.f32 %v1345_v20 }
 0x713   :  { %1549 = vpow2.f32 %v1346_v23 }
 0x714   :  { %1551 = vpow2.f32 %v1347_v27  ;;  %v1353_v27 = vld [vmem:[%s2245_s3] ss:$0 sm:$0xff] }
 0x715   :  { %1553 = vtanh.f32 %v1017_v28 }
 0x71c   :  { %v1548_v29 = vpop.eup %1547 }
 0x71d   :  { %v1550_v30 = vpop.eup %1549  ;;  %v1022_v31 = vadd.f32 1.0, %v1548_v29 }
 0x71e   :  { %v1028_v32 = vadd.f32 1.0, %v1550_v30  ;;  %v1552_v54 = vpop.eup %1551 }
 0x71f   :  { %1555 = vrcp.f32 %v1022_v31  ;;  %v1554_v63 = vpop.eup %1553  ;;  %v1035_v38 = vadd.f32 1.0, %v1552_v54 }
 0x720   :  { %1557 = vrcp.f32 %v1028_v32 }
 0x721   :  { %1559 = vrcp.f32 %v1035_v38 }
 0x729   :  { %v1556_v33 = vpop.eup %1555 }
 0x72a   :  { %v1558_v34 = vpop.eup %1557  ;;  %v1039_v37 = vmul.f32 %v1556_v33, %v1554_v63 }
 0x72b   :  { %v1038_v0 = vmul.f32 %v1558_v34, %v2100_v36  ;;  %v1560_v6 = vpop.eup %1559  ;;  %v1444_v36 = vld [vmem:[%s2244_s2 + $0x8] sm:$0xff]  }
 0x72d   :  { %v2202_v39 = vadd.f32 %v1039_v37, %v1038_v0 }
 0x72f   :  { %1561 = vtanh.f32 %v2202_v39 }
 0x739   :  { %v1562_v40 = vpop.eup %1561 }
 0x73a   :  { %v1042_v41 = vmul.f32 %v1562_v40, %v1560_v6 }
 0x73c   :  { %v1050_v43 = vpack.c.bf16 %v1042_v41, %v1042_v41 }
 0x73e   :  { %1084 = vmatmul.mubr.bf16.vlgmr.msra.gmra.mrb[28].mxu0 %v1050_v43  ;;  %1125 = vmatmul.mubr.bf16.vlgmr.msra.gmra.mrb[28].mxu1 %v1050_v43 }
 0x73f   :  { %1372 = vmatpush3.bf16.msra.mxu0 %v1443_v44  ;;  %1387 = vmatprep.mubr.msk.bf16.mxu0 %vm1614_vm0, %v1613_v45 }
 0x740   :  { %1373 = vmatprep.subr.bf16.mxu0 %v1613_v45 }
 0x743   :  { %1374 = vmatpush3.bf16.msra.mxu0 %v1444_v36 }
 0x744   :  { %1375 = vmatprep.subr.bf16.mxu0 %v1613_v45 }
 0x747   :  { %1376 = vmatpush3.bf16.msra.mxu0 %v1445_v46 }
 0x748   :  { %1377 = vmatprep.subr.bf16.mxu0 %v1613_v45 }
 0x74b   :  { %1378 = vmatpush3.bf16.msra.mxu0 %v1446_v35 }
 0x74c   :  { %1379 = vmatprep.subr.bf16.mxu0 %v1613_v45 }
 0x74f   :  { %1380 = vmatpush3.bf16.msra.mxu0 %v1447_v1 }
 0x750   :  { %1381 = vmatprep.subr.bf16.mxu0 %v1613_v45 }
 0x753   :  { %1382 = vmatpush3.bf16.msra.mxu0 %v1448_v47 }
 0x754   :  { %1383 = vmatprep.subr.bf16.mxu0 %v1613_v45 }
 0x757   :  { %1384 = vmatpush3.bf16.msra.mxu0 %v1449_v49 }
 0x758   :  { %1385 = vmatprep.subr.bf16.mxu0 %v1613_v45 }
 0x75b   :  { %1386 = vmatpush3.bf16.msra.mxu0 %v1450_v50 }
 0x811   :  { %v1085_v53 = vpop.f32.mrb[28].mxu0  ;;  %v1126_v55 = vpop.f32.mrb[28].mxu1 }
 0x812   :  { %v1133_v56 = vadd.f32 %v1085_v53, %v1046_v52  ;;  %v1087_v58 = vpop.f32.mrb[29].mxu0  ;;  %v1128_v48 = vpop.f32.mrb[29].mxu1  ;;  %v1135_v10 = vadd.f32 %v1126_v55, %v1048_v8 }
 0x813   :  { %v1134_v59 = vadd.f32 %v1087_v58, %v1047_v42  ;;  %v1089_v60 = vpop.f32.mrb[30].mxu0  ;;  %v1130_v61 = vpop.f32.mrb[30].mxu1  ;;  %v1136_v7 = vadd.f32 %v1128_v48, %v1049_v5 }
 0x814   :  { %v1350_v62 = vmul.f32 -1.442695, %v1133_v56  ;;  %v1090_v2 = vpop.f32.mrb[31].mxu0  ;;  %v1131_v3 = vpop.f32.mrb[31].mxu1 }
 0x815   :  { %v1351_v4 = vmul.f32 -1.442695, %v1134_v59  ;;  %v1352_v9 = vmul.f32 -1.442695, %v1136_v7 }
 0x816   :  { %1563 = vpow2.f32 %v1350_v62 }
 0x817   :  { %1565 = vpow2.f32 %v1351_v4 }
 0x818   :  { %1567 = vpow2.f32 %v1352_v9 }
 0x819   :  { %1569 = vtanh.f32 %v1135_v10 }
 0x820   :  { %v1564_v11 = vpop.eup %1563 }
 0x821   :  { %v1566_v12 = vpop.eup %1565  ;;  %v1140_v13 = vadd.f32 1.0, %v1564_v11 }
 0x822   :  { %v1146_v14 = vadd.f32 1.0, %v1566_v12  ;;  %v1568_v15 = vpop.eup %1567 }
 0x823   :  { %1571 = vrcp.f32 %v1140_v13  ;;  %v1570_v16 = vpop.eup %1569  ;;  %v1153_v20 = vadd.f32 1.0, %v1568_v15 }
 0x824   :  { %1573 = vrcp.f32 %v1146_v14 }
 0x825   :  { %1575 = vrcp.f32 %v1153_v20 }
 0x82d   :  { %v1572_v17 = vpop.eup %1571 }
 0x82e   :  { %v1574_v18 = vpop.eup %1573  ;;  %v1157_v19 = vmul.f32 %v1572_v17, %v1570_v16 }
 0x82f   :  { %v1156_v21 = vmul.f32 %v1574_v18, %v2202_v39  ;;  %v1576_v23 = vpop.eup %1575 }
 0x831   :  { %v1158_v22 = vadd.f32 %v1157_v19, %v1156_v21 }
 0x833   :  { %1577 = vtanh.f32 %v1158_v22 }
 0x83d   :  { %v1578_v24 = vpop.eup %1577 }
 0x83e   :  { %v1160_v25 = vmul.f32 %v1578_v24, %v1576_v23 }
 0x840   :  { %v1166_v26 = vpack.c.bf16 %v1160_v25, %v1160_v25 }
 0x842   :  { %1388 = vmatmul.mubr.bf16.vlgmr.msra.gmra.mrb[32].mxu0 %v1166_v26 }
 0x915   :  { %v1272_v28 = vpop.f32.mrb[32].mxu0 }
 0x916   :  { %v1273_v29 = vadd.f32 %v1353_v27, %v1272_v28  ;;  %v1389_v30 = vpop.f32.mrb[33].mxu0 }
 0x917   :  { %v1275_v31 = vpop.f32.mrb[34].mxu0 }
 0x918   :  { %1278 = vst [vmem:[%s2246_s4] sm:$0xff] %v1273_v29  ;;  %v1390_v32 = vpop.f32.mrb[35].mxu0 }

// kernel: rnn_forward.4
= control target key start
LH: loop header
LB: loop body
LE: loop exit
PB: predicated region body
PF: predicated region fallthrough
CT: control target
= control target key end

     0   :  { %9 = vsyncpa [#allocation6], 0  ;;  %s2132_s15 = smov [#allocation5]   ;;  %s2910_s0 = inlined_call_operand.vmem [shape: bf16[8,8,512], index: 0, kind: input, shape index: {}]   ;;  %s2911_s1 = inlined_call_operand.vmem [shape: bf16[128,512], index: 1, kind: input, shape index: {}]   ;;  %s2912_s2 = inlined_call_operand.hbm [shape: bf16[128,512], index: 2, kind: input, shape index: {}]   ;;  %s2913_s3 = inlined_call_operand.vmem [shape: f32[1,512], index: 3, kind: input, shape index: {}]   ;;  %s2914_s4 = inlined_call_operand.vmem [shape: bf16[8,8,512], index: 4, kind: output, shape index: {}]  }
   0x1   :  { %s19_s16 = sshll.u32 %s2132_s15, 4  ;;  %s2108_s19 = scalar_lea.hbm %s2912_s2, 4096  ;;  %s20_s16 = int_to_ptr.vmem [resolvable:$true] %s19_s16 }
   0x2   :  { %p2109_p0 = scmp.ne.s32.totalorder %s2912_s2, %s2108_s19  ;;  %p2112_p1 = scmp.lt.u32.totalorder %s2108_s19, %s2912_s2 }
   0x4   :  { %p2114_p2 = pnand %p2112_p1, %p2109_p0 }
   0x6   :  { %2117 = shalt.err (!%p2114_p2)
}
   0x7   :  { %s2118_s24 = scalar_lea.vmem %s20_s16, 4096  ;;  %p2123_p4 = scmp.lt.s32.totalorder %s20_s16, %s20_s16 }
   0x8   :  { %p2119_p3 = scmp.ne.s32.totalorder %s20_s16, %s2118_s24  ;;  %p2124_p5 = scmp.lt.s32.totalorder %s2118_s24, %s2118_s24 }
   0xa   :  { %p2125_p6 = por %p2124_p5, %p2123_p4 }
   0xc   :  { %p2126_p7 = pnand %p2125_p6, %p2119_p3 }
   0xe   :  { %2129 = shalt.err (!%p2126_p7)
}
   0xf   :  { %s2133_s25 = smov 256   ;;  %s2134_s26 = smov 16  }
  0x10   :  { %25 = dma.hbm_to_vmem [thread:$0]  %s2912_s2, 4096, %s20_s16, [#allocation6], %s2133_s25, %s2133_s25, %s2134_s26  }
  0x11   :  { %2130 = dma.done.wait [#allocation6], 4096  }
  0x12   :  { %2131 = vsyncadd [#allocation6], 4294963200  ;;  %v2135_v0 = vmov 0   ;;  %v2179_v1 = vld [vmem:[%s2911_s1 + $0x4] ss:$16 sps:$4 sm:$0xff]   ;;  %v2136_v33 = vmov 0.0|0.0  }
  0x13   :  { %271 = vmatprep.mubr.bf16.mxu0 %v2135_v0  ;;  %312 = vmatprep.mubr.bf16.mxu1 %v2135_v0  ;;  %v2184_v2 = vld [vmem:[%s2911_s1] ss:$16 sps:$4 sm:$0xff]   ;;  %v2190_v3 = vld [vmem:[%s2911_s1 + $0x24] ss:$16 sps:$4 sm:$0xff]   ;;  %v2207_v6 = vld [vmem:[%s2911_s1 + $0xc] ss:$16 sps:$4 sm:$0xff]  }
  0x14   :  { %239 = vmatprep.subr.bf16.mxu0 %v2179_v1  ;;  %v2196_v4 = vld [vmem:[%s2911_s1 + $0x20] ss:$16 sps:$4 sm:$0xff]   ;;  %v2202_v5 = vld [vmem:[%s2911_s1 + $0x44] ss:$16 sps:$4 sm:$0xff]   ;;  %v2212_v7 = vld [vmem:[%s2911_s1 + $0x8] ss:$16 sps:$4 sm:$0xff]   ;;  %280 = vmatprep.subr.bf16.mxu1 %v2207_v6 }
  0x15   :  { %240 = vmatpush1.bf16.msra.mxu0 %v2184_v2  ;;  %v2218_v8 = vld [vmem:[%s2911_s1 + $0x40] ss:$16 sps:$4 sm:$0xff]   ;;  %v2225_v9 = vld [vmem:[%s2911_s1 + $0x64] ss:$16 sps:$4 sm:$0xff]   ;;  %281 = vmatpush1.bf16.msra.mxu1 %v2212_v7  ;;  %v2231_v10 = vld [vmem:[%s2911_s1 + $0x2c] ss:$16 sps:$4 sm:$0xff]  }
  0x16   :  { %241 = vmatprep.subr.bf16.mxu0 %v2190_v3  ;;  %v2236_v11 = vld [vmem:[%s2911_s1 + $0x28] ss:$16 sps:$4 sm:$0xff]   ;;  %282 = vmatprep.subr.bf16.mxu1 %v2231_v10  ;;  %v2243_v12 = vld [vmem:[%s2911_s1 + $0x60] ss:$16 sps:$4 sm:$0xff]   ;;  %v2248_v13 = vld [vmem:[%s2911_s1 + $0x84] ss:$16 sps:$4 sm:$0xff]  }
  0x17   :  { %v2253_v14 = vld [vmem:[%s2911_s1 + $0x4c] ss:$16 sps:$4 sm:$0xff]   ;;  %v2260_v15 = vld [vmem:[%s2911_s1 + $0x48] ss:$16 sps:$4 sm:$0xff]   ;;  %v2272_v17 = vld [vmem:[%s2911_s1 + $0x80] ss:$16 sps:$4 sm:$0xff]  }
  0x18   :  { %v2266_v16 = vld [vmem:[%s2911_s1 + $0x6c] ss:$16 sps:$4 sm:$0xff]   ;;  %v2278_v18 = vld [vmem:[%s2911_s1 + $0xa4] ss:$16 sps:$4 sm:$0xff]   ;;  %v2284_v19 = vld [vmem:[%s2911_s1 + $0x68] ss:$16 sps:$4 sm:$0xff]  }
  0x19   :  { %242 = vmatpush1.bf16.msra.mxu0 %v2196_v4  ;;  %283 = vmatpush1.bf16.msra.mxu1 %v2236_v11  ;;  %v2290_v20 = vld [vmem:[%s2911_s1 + $0x8c] ss:$16 sps:$4 sm:$0xff]   ;;  %v2296_v21 = vld [vmem:[%s2911_s1 + $0xa0] ss:$16 sps:$4 sm:$0xff]   ;;  %v2301_v22 = vld [vmem:[%s2911_s1 + $0xc4] ss:$16 sps:$4 sm:$0xff]  }
  0x1a   :  { %243 = vmatprep.subr.bf16.mxu0 %v2202_v5  ;;  %284 = vmatprep.subr.bf16.mxu1 %v2253_v14  ;;  %v2308_v23 = vld [vmem:[%s2911_s1 + $0x88] ss:$16 sps:$4 sm:$0xff]   ;;  %v2313_v24 = vld [vmem:[%s2911_s1 + $0xc0] ss:$16 sps:$4 sm:$0xff]   ;;  %v2319_v25 = vld [vmem:[%s2911_s1 + $0xac] ss:$16 sps:$4 sm:$0xff]  }
  0x1b   :  { %v2324_v26 = vld [vmem:[%s2911_s1 + $0xe4] ss:$16 sps:$4 sm:$0xff]   ;;  %v2329_v27 = vld [vmem:[%s2911_s1 + $0xa8] ss:$16 sps:$4 sm:$0xff]   ;;  %v2335_v28 = vld [vmem:[%s2911_s1 + $0xcc] ss:$16 sps:$4 sm:$0xff]  }
  0x1c   :  { %v2342_v29 = vld [vmem:[%s2911_s1 + $0xe0] ss:$16 sps:$4 sm:$0xff]   ;;  %v2348_v30 = vld [vmem:[%s2911_s1 + $0xc8] ss:$16 sps:$4 sm:$0xff]   ;;  %v2354_v31 = vld [vmem:[%s2911_s1 + $0xec] ss:$16 sps:$4 sm:$0xff]  }
  0x1d   :  { %244 = vmatpush1.bf16.msra.mxu0 %v2218_v8  ;;  %285 = vmatpush1.bf16.msra.mxu1 %v2260_v15  ;;  %v2364_v32 = vld [vmem:[%s2911_s1 + $0xe8] ss:$16 sps:$4 sm:$0xff]   ;;  %v72_v34 = vld [vmem:[%s2910_s0] sm:$0xff] }
  0x1e   :  { %245 = vmatprep.subr.bf16.mxu0 %v2225_v9  ;;  %286 = vmatprep.subr.bf16.mxu1 %v2266_v16  ;;  %v74_v35 = vunpack.c.l.bf16 %v72_v34  ;;  %v75_v36 = vunpack.c.h.bf16 %v72_v34  ;;  %v73_v38 = vld [vmem:[%s2910_s0 + $0x8] sm:$0xff] }
  0x1f   :  { %v77_v45 = vunpack.c.h.bf16 %v73_v38  ;;  %v76_v51 = vunpack.c.l.bf16 %v73_v38 }
  0x21   :  { %246 = vmatpush1.bf16.msra.mxu0 %v2243_v12  ;;  %287 = vmatpush1.bf16.msra.mxu1 %v2284_v19 }
  0x22   :  { %247 = vmatprep.subr.bf16.mxu0 %v2248_v13  ;;  %288 = vmatprep.subr.bf16.mxu1 %v2290_v20 }
  0x25   :  { %248 = vmatpush1.bf16.msra.mxu0 %v2272_v17  ;;  %289 = vmatpush1.bf16.msra.mxu1 %v2308_v23 }
  0x26   :  { %249 = vmatprep.subr.bf16.mxu0 %v2278_v18  ;;  %290 = vmatprep.subr.bf16.mxu1 %v2319_v25 }
  0x29   :  { %250 = vmatpush1.bf16.msra.mxu0 %v2296_v21  ;;  %291 = vmatpush1.bf16.msra.mxu1 %v2329_v27 }
  0x2a   :  { %251 = vmatprep.subr.bf16.mxu0 %v2301_v22  ;;  %292 = vmatprep.subr.bf16.mxu1 %v2335_v28 }
  0x2d   :  { %252 = vmatpush1.bf16.msra.mxu0 %v2313_v24  ;;  %293 = vmatpush1.bf16.msra.mxu1 %v2348_v30 }
  0x2e   :  { %253 = vmatprep.subr.bf16.mxu0 %v2324_v26  ;;  %294 = vmatprep.subr.bf16.mxu1 %v2354_v31 }
  0x31   :  { %254 = vmatpush1.bf16.msra.mxu0 %v2342_v29  ;;  %295 = vmatpush1.bf16.msra.mxu1 %v2364_v32 }
  0x32   :  { %358 = vmatprep.subr.bf16.mxu0 %v2179_v1  ;;  %399 = vmatprep.subr.bf16.mxu1 %v2207_v6 }
  0x34   :  { %272 = vmatmul.mubr.bf16.vlgmr.msra.gmra.mrb[0].mxu0 %v2136_v33  ;;  %313 = vmatmul.mubr.bf16.vlgmr.msra.gmra.mrb[0].mxu1 %v2136_v33 }
  0x35   :  { %359 = vmatpush1.bf16.msra.mxu0 %v2184_v2  ;;  %390 = vmatprep.mubr.bf16.mxu0 %v2135_v0 }
  0x36   :  { %360 = vmatprep.subr.bf16.mxu0 %v2190_v3  ;;  %400 = vmatpush1.bf16.msra.mxu1 %v2212_v7 }
  0x37   :  { %401 = vmatprep.subr.bf16.mxu1 %v2231_v10  ;;  %431 = vmatprep.mubr.bf16.mxu1 %v2135_v0 }
  0x39   :  { %361 = vmatpush1.bf16.msra.mxu0 %v2196_v4 }
  0x3a   :  { %362 = vmatprep.subr.bf16.mxu0 %v2202_v5  ;;  %402 = vmatpush1.bf16.msra.mxu1 %v2236_v11 }
  0x3b   :  { %403 = vmatprep.subr.bf16.mxu1 %v2253_v14 }
  0x3d   :  { %363 = vmatpush1.bf16.msra.mxu0 %v2218_v8 }
  0x3e   :  { %364 = vmatprep.subr.bf16.mxu0 %v2225_v9  ;;  %404 = vmatpush1.bf16.msra.mxu1 %v2260_v15 }
  0x3f   :  { %405 = vmatprep.subr.bf16.mxu1 %v2266_v16 }
  0x41   :  { %365 = vmatpush1.bf16.msra.mxu0 %v2243_v12 }
  0x42   :  { %366 = vmatprep.subr.bf16.mxu0 %v2248_v13  ;;  %406 = vmatpush1.bf16.msra.mxu1 %v2284_v19 }
  0x43   :  { %407 = vmatprep.subr.bf16.mxu1 %v2290_v20 }
  0x45   :  { %367 = vmatpush1.bf16.msra.mxu0 %v2272_v17 }
  0x46   :  { %368 = vmatprep.subr.bf16.mxu0 %v2278_v18  ;;  %408 = vmatpush1.bf16.msra.mxu1 %v2308_v23 }
  0x47   :  { %409 = vmatprep.subr.bf16.mxu1 %v2319_v25 }
  0x49   :  { %369 = vmatpush1.bf16.msra.mxu0 %v2296_v21 }
  0x4a   :  { %370 = vmatprep.subr.bf16.mxu0 %v2301_v22  ;;  %410 = vmatpush1.bf16.msra.mxu1 %v2329_v27 }
  0x4b   :  { %411 = vmatprep.subr.bf16.mxu1 %v2335_v28 }
  0x4d   :  { %371 = vmatpush1.bf16.msra.mxu0 %v2313_v24 }
  0x4e   :  { %372 = vmatprep.subr.bf16.mxu0 %v2324_v26  ;;  %412 = vmatpush1.bf16.msra.mxu1 %v2348_v30 }
  0x4f   :  { %413 = vmatprep.subr.bf16.mxu1 %v2354_v31 }
  0x51   :  { %373 = vmatpush1.bf16.msra.mxu0 %v2342_v29 }
  0x52   :  { %478 = vmatprep.subr.bf16.mxu0 %v2179_v1  ;;  %414 = vmatpush1.bf16.msra.mxu1 %v2364_v32 }
  0x53   :  { %519 = vmatprep.subr.bf16.mxu1 %v2207_v6 }
 0x107   :  { %v273_v37 = vpop.f32.mrb[0].mxu0  ;;  %v314_v47 = vpop.f32.mrb[0].mxu1 }
 0x108   :  { %v321_v39 = vadd.f32 %v273_v37, %v74_v35  ;;  %v275_v40 = vpop.f32.mrb[1].mxu0  ;;  %v316_v48 = vpop.f32.mrb[1].mxu1  ;;  %v323_v54 = vadd.f32 %v314_v47, %v76_v51 }
 0x109   :  { %v322_v41 = vadd.f32 %v275_v40, %v75_v36  ;;  %v277_v42 = vpop.f32.mrb[2].mxu0  ;;  %v324_v49 = vadd.f32 %v316_v48, %v77_v45  ;;  %v318_v50 = vpop.f32.mrb[2].mxu1  ;;  %v1748_v40 = vld [vmem:[%s2910_s0 + $0x10] sm:$0xff] }
 0x10a   :  { %v1745_v43 = vmul.f32 -1.442695, %v321_v39  ;;  %v278_v44 = vpop.f32.mrb[3].mxu0  ;;  %v319_v52 = vpop.f32.mrb[3].mxu1  ;;  %v354_v42 = vunpack.c.h.bf16 %v1748_v40 }
 0x10b   :  { %v1746_v46 = vmul.f32 -1.442695, %v322_v41  ;;  %v1747_v53 = vmul.f32 -1.442695, %v324_v49  ;;  %v353_v41 = vunpack.c.l.bf16 %v1748_v40 }
 0x10c   :  { %1948 = vpow2.f32 %v1745_v43 }
 0x10d   :  { %1950 = vpow2.f32 %v1746_v46  ;;  %v1749_v46 = vld [vmem:[%s2910_s0 + $0x18] sm:$0xff] }
 0x10e   :  { %1952 = vpow2.f32 %v1747_v53 }
 0x10f   :  { %1954 = vtanh.f32 %v323_v54 }
 0x116   :  { %v1949_v55 = vpop.eup %1948 }
 0x117   :  { %v1951_v56 = vpop.eup %1950  ;;  %v328_v57 = vadd.f32 1.0, %v1949_v55 }
 0x118   :  { %v334_v58 = vadd.f32 1.0, %v1951_v56  ;;  %v1953_v59 = vpop.eup %1952  ;;  %v356_v56 = vunpack.c.h.bf16 %v1749_v46 }
 0x119   :  { %1956 = vrcp.f32 %v328_v57  ;;  %v1955_v60 = vpop.eup %1954  ;;  %v341_v62 = vadd.f32 1.0, %v1953_v59 }
 0x11a   :  { %1958 = vrcp.f32 %v334_v58  ;;  %v355_v58 = vunpack.c.l.bf16 %v1749_v46 }
 0x11b   :  { %1960 = vrcp.f32 %v341_v62 }
 0x123   :  { %v1957_v61 = vpop.eup %1956 }
 0x124   :  { %v1959_v63 = vpop.eup %1958  ;;  %v345_v33 = vmul.f32 %v1957_v61, %v1955_v60 }
 0x125   :  { %v344_v34 = vmul.f32 0.0, %v1959_v63  ;;  %v1961_v36 = vpop.eup %1960 }
 0x127   :  { %v2410_v35 = vadd.f32 %v345_v33, %v344_v34 }
 0x129   :  { %1962 = vtanh.f32 %v2410_v35 }
 0x133   :  { %v1963_v37 = vpop.eup %1962 }
 0x134   :  { %v2413_v38 = vmul.f32 %v1963_v37, %v1961_v36 }
 0x136   :  { %v357_v39 = vpack.c.bf16 %v2413_v38, %v2413_v38 }
 0x138   :  { %391 = vmatmul.mubr.bf16.vlgmr.msra.gmra.mrb[4].mxu0 %v357_v39  ;;  %432 = vmatmul.mubr.bf16.vlgmr.msra.gmra.mrb[4].mxu1 %v357_v39 }
 0x139   :  { %479 = vmatpush1.bf16.msra.mxu0 %v2184_v2  ;;  %520 = vmatpush1.bf16.msra.mxu1 %v2212_v7 }
 0x13a   :  { %480 = vmatprep.subr.bf16.mxu0 %v2190_v3  ;;  %521 = vmatprep.subr.bf16.mxu1 %v2231_v10 }
 0x13b   :  { %510 = vmatprep.mubr.bf16.mxu0 %v2135_v0  ;;  %551 = vmatprep.mubr.bf16.mxu1 %v2135_v0 }
 0x13d   :  { %481 = vmatpush1.bf16.msra.mxu0 %v2196_v4  ;;  %522 = vmatpush1.bf16.msra.mxu1 %v2236_v11 }
 0x13e   :  { %482 = vmatprep.subr.bf16.mxu0 %v2202_v5  ;;  %523 = vmatprep.subr.bf16.mxu1 %v2253_v14 }
 0x141   :  { %483 = vmatpush1.bf16.msra.mxu0 %v2218_v8  ;;  %524 = vmatpush1.bf16.msra.mxu1 %v2260_v15 }
 0x142   :  { %484 = vmatprep.subr.bf16.mxu0 %v2225_v9  ;;  %525 = vmatprep.subr.bf16.mxu1 %v2266_v16 }
 0x145   :  { %485 = vmatpush1.bf16.msra.mxu0 %v2243_v12  ;;  %526 = vmatpush1.bf16.msra.mxu1 %v2284_v19 }
 0x146   :  { %486 = vmatprep.subr.bf16.mxu0 %v2248_v13  ;;  %527 = vmatprep.subr.bf16.mxu1 %v2290_v20 }
 0x149   :  { %487 = vmatpush1.bf16.msra.mxu0 %v2272_v17  ;;  %528 = vmatpush1.bf16.msra.mxu1 %v2308_v23 }
 0x14a   :  { %488 = vmatprep.subr.bf16.mxu0 %v2278_v18  ;;  %529 = vmatprep.subr.bf16.mxu1 %v2319_v25 }
 0x14d   :  { %489 = vmatpush1.bf16.msra.mxu0 %v2296_v21  ;;  %530 = vmatpush1.bf16.msra.mxu1 %v2329_v27 }
 0x14e   :  { %490 = vmatprep.subr.bf16.mxu0 %v2301_v22  ;;  %531 = vmatprep.subr.bf16.mxu1 %v2335_v28 }
 0x151   :  { %491 = vmatpush1.bf16.msra.mxu0 %v2313_v24  ;;  %532 = vmatpush1.bf16.msra.mxu1 %v2348_v30 }
 0x152   :  { %492 = vmatprep.subr.bf16.mxu0 %v2324_v26  ;;  %533 = vmatprep.subr.bf16.mxu1 %v2354_v31 }
 0x155   :  { %493 = vmatpush1.bf16.msra.mxu0 %v2342_v29  ;;  %534 = vmatpush1.bf16.msra.mxu1 %v2364_v32 }
 0x156   :  { %598 = vmatprep.subr.bf16.mxu0 %v2179_v1  ;;  %639 = vmatprep.subr.bf16.mxu1 %v2207_v6 }
 0x20b   :  { %v392_v43 = vpop.f32.mrb[4].mxu0  ;;  %v433_v44 = vpop.f32.mrb[4].mxu1 }
 0x20c   :  { %v440_v45 = vadd.f32 %v392_v43, %v353_v41  ;;  %v394_v47 = vpop.f32.mrb[5].mxu0  ;;  %v435_v48 = vpop.f32.mrb[5].mxu1  ;;  %v442_v60 = vadd.f32 %v433_v44, %v355_v58 }
 0x20d   :  { %v441_v49 = vadd.f32 %v394_v47, %v354_v42  ;;  %v396_v50 = vpop.f32.mrb[6].mxu0  ;;  %v437_v51 = vpop.f32.mrb[6].mxu1  ;;  %v443_v57 = vadd.f32 %v435_v48, %v356_v56 }
 0x20e   :  { %v1750_v52 = vmul.f32 -1.442695, %v440_v45  ;;  %v397_v53 = vpop.f32.mrb[7].mxu0  ;;  %v438_v54 = vpop.f32.mrb[7].mxu1 }
 0x20f   :  { %v1751_v55 = vmul.f32 -1.442695, %v441_v49  ;;  %v1752_v59 = vmul.f32 -1.442695, %v443_v57  ;;  %v1754_v53 = vld [vmem:[%s2910_s0 + $0x28] sm:$0xff] }
 0x210   :  { %1964 = vpow2.f32 %v1750_v52 }
 0x211   :  { %1966 = vpow2.f32 %v1751_v55 }
 0x212   :  { %1968 = vpow2.f32 %v1752_v59 }
 0x213   :  { %1970 = vtanh.f32 %v442_v60 }
 0x21a   :  { %v1965_v61 = vpop.eup %1964 }
 0x21b   :  { %v1967_v62 = vpop.eup %1966  ;;  %v447_v63 = vadd.f32 1.0, %v1965_v61 }
 0x21c   :  { %v453_v33 = vadd.f32 1.0, %v1967_v62  ;;  %v1969_v34 = vpop.eup %1968 }
 0x21d   :  { %1972 = vrcp.f32 %v447_v63  ;;  %v1971_v36 = vpop.eup %1970  ;;  %v460_v41 = vadd.f32 1.0, %v1969_v34  ;;  %v476_v63 = vunpack.c.h.bf16 %v1754_v53  ;;  %v475_v34 = vunpack.c.l.bf16 %v1754_v53 }
 0x21e   :  { %1974 = vrcp.f32 %v453_v33 }
 0x21f   :  { %1976 = vrcp.f32 %v460_v41 }
 0x227   :  { %v1973_v37 = vpop.eup %1972 }
 0x228   :  { %v1975_v39 = vpop.eup %1974  ;;  %v464_v40 = vmul.f32 %v1973_v37, %v1971_v36 }
 0x229   :  { %v463_v42 = vmul.f32 %v1975_v39, %v2410_v35  ;;  %v1977_v44 = vpop.eup %1976  ;;  %v1753_v35 = vld [vmem:[%s2910_s0 + $0x20] sm:$0xff] }
 0x22a   :  { %v473_v48 = vunpack.c.l.bf16 %v1753_v35  ;;  %v474_v49 = vunpack.c.h.bf16 %v1753_v35 }
 0x22b   :  { %v2458_v43 = vadd.f32 %v464_v40, %v463_v42 }
 0x22d   :  { %1978 = vtanh.f32 %v2458_v43 }
 0x237   :  { %v1979_v45 = vpop.eup %1978 }
 0x238   :  { %v2461_v46 = vmul.f32 %v1979_v45, %v1977_v44 }
 0x23a   :  { %v477_v47 = vpack.c.bf16 %v2461_v46, %v2461_v46 }
 0x23c   :  { %511 = vmatmul.mubr.bf16.vlgmr.msra.gmra.mrb[8].mxu0 %v477_v47  ;;  %552 = vmatmul.mubr.bf16.vlgmr.msra.gmra.mrb[8].mxu1 %v477_v47 }
 0x23d   :  { %599 = vmatpush1.bf16.msra.mxu0 %v2184_v2  ;;  %640 = vmatpush1.bf16.msra.mxu1 %v2212_v7 }
 0x23e   :  { %600 = vmatprep.subr.bf16.mxu0 %v2190_v3  ;;  %641 = vmatprep.subr.bf16.mxu1 %v2231_v10 }
 0x23f   :  { %630 = vmatprep.mubr.bf16.mxu0 %v2135_v0  ;;  %671 = vmatprep.mubr.bf16.mxu1 %v2135_v0 }
 0x241   :  { %601 = vmatpush1.bf16.msra.mxu0 %v2196_v4  ;;  %642 = vmatpush1.bf16.msra.mxu1 %v2236_v11 }
 0x242   :  { %602 = vmatprep.subr.bf16.mxu0 %v2202_v5  ;;  %643 = vmatprep.subr.bf16.mxu1 %v2253_v14 }
 0x245   :  { %603 = vmatpush1.bf16.msra.mxu0 %v2218_v8  ;;  %644 = vmatpush1.bf16.msra.mxu1 %v2260_v15 }
 0x246   :  { %604 = vmatprep.subr.bf16.mxu0 %v2225_v9  ;;  %645 = vmatprep.subr.bf16.mxu1 %v2266_v16 }
 0x249   :  { %605 = vmatpush1.bf16.msra.mxu0 %v2243_v12  ;;  %646 = vmatpush1.bf16.msra.mxu1 %v2284_v19 }
 0x24a   :  { %606 = vmatprep.subr.bf16.mxu0 %v2248_v13  ;;  %647 = vmatprep.subr.bf16.mxu1 %v2290_v20 }
 0x24d   :  { %607 = vmatpush1.bf16.msra.mxu0 %v2272_v17  ;;  %648 = vmatpush1.bf16.msra.mxu1 %v2308_v23 }
 0x24e   :  { %608 = vmatprep.subr.bf16.mxu0 %v2278_v18  ;;  %649 = vmatprep.subr.bf16.mxu1 %v2319_v25 }
 0x251   :  { %609 = vmatpush1.bf16.msra.mxu0 %v2296_v21  ;;  %650 = vmatpush1.bf16.msra.mxu1 %v2329_v27 }
 0x252   :  { %610 = vmatprep.subr.bf16.mxu0 %v2301_v22  ;;  %651 = vmatprep.subr.bf16.mxu1 %v2335_v28 }
 0x255   :  { %611 = vmatpush1.bf16.msra.mxu0 %v2313_v24  ;;  %652 = vmatpush1.bf16.msra.mxu1 %v2348_v30 }
 0x256   :  { %612 = vmatprep.subr.bf16.mxu0 %v2324_v26  ;;  %653 = vmatprep.subr.bf16.mxu1 %v2354_v31 }
 0x259   :  { %613 = vmatpush1.bf16.msra.mxu0 %v2342_v29  ;;  %654 = vmatpush1.bf16.msra.mxu1 %v2364_v32 }
 0x25a   :  { %718 = vmatprep.subr.bf16.mxu0 %v2179_v1  ;;  %759 = vmatprep.subr.bf16.mxu1 %v2207_v6 }
 0x30f   :  { %v512_v50 = vpop.f32.mrb[8].mxu0  ;;  %v553_v51 = vpop.f32.mrb[8].mxu1 }
 0x310   :  { %v560_v52 = vadd.f32 %v512_v50, %v473_v48  ;;  %v514_v54 = vpop.f32.mrb[9].mxu0  ;;  %v555_v55 = vpop.f32.mrb[9].mxu1  ;;  %v562_v37 = vadd.f32 %v553_v51, %v475_v34 }
 0x311   :  { %v561_v56 = vadd.f32 %v514_v54, %v474_v49  ;;  %v516_v57 = vpop.f32.mrb[10].mxu0  ;;  %v557_v58 = vpop.f32.mrb[10].mxu1  ;;  %v563_v33 = vadd.f32 %v555_v55, %v476_v63 }
 0x312   :  { %v1755_v59 = vmul.f32 -1.442695, %v560_v52  ;;  %v517_v60 = vpop.f32.mrb[11].mxu0  ;;  %v558_v61 = vpop.f32.mrb[11].mxu1 }
 0x313   :  { %v1756_v62 = vmul.f32 -1.442695, %v561_v56  ;;  %v1757_v36 = vmul.f32 -1.442695, %v563_v33  ;;  %v1759_v61 = vld [vmem:[%s2910_s0 + $0x38] sm:$0xff] }
 0x314   :  { %1980 = vpow2.f32 %v1755_v59 }
 0x315   :  { %1982 = vpow2.f32 %v1756_v62 }
 0x316   :  { %1984 = vpow2.f32 %v1757_v36 }
 0x317   :  { %1986 = vtanh.f32 %v562_v37 }
 0x31e   :  { %v1981_v39 = vpop.eup %1980 }
 0x31f   :  { %v1983_v40 = vpop.eup %1982  ;;  %v567_v41 = vadd.f32 1.0, %v1981_v39 }
 0x320   :  { %v573_v42 = vadd.f32 1.0, %v1983_v40  ;;  %v1985_v44 = vpop.eup %1984 }
 0x321   :  { %1988 = vrcp.f32 %v567_v41  ;;  %v1987_v45 = vpop.eup %1986  ;;  %v580_v49 = vadd.f32 1.0, %v1985_v44 }
 0x322   :  { %1990 = vrcp.f32 %v573_v42  ;;  %v596_v42 = vunpack.c.h.bf16 %v1759_v61 }
 0x323   :  { %1992 = vrcp.f32 %v580_v49 }
 0x32b   :  { %v1989_v47 = vpop.eup %1988 }
 0x32c   :  { %v1991_v35 = vpop.eup %1990  ;;  %v584_v48 = vmul.f32 %v1989_v47, %v1987_v45  ;;  %v595_v45 = vunpack.c.l.bf16 %v1759_v61 }
 0x32d   :  { %v583_v50 = vmul.f32 %v1991_v35, %v2458_v43  ;;  %v1993_v51 = vpop.eup %1992  ;;  %v1758_v43 = vld [vmem:[%s2910_s0 + $0x30] sm:$0xff] }
 0x32e   :  { %v593_v56 = vunpack.c.l.bf16 %v1758_v43  ;;  %v594_v57 = vunpack.c.h.bf16 %v1758_v43 }
 0x32f   :  { %v2506_v52 = vadd.f32 %v584_v48, %v583_v50 }
 0x331   :  { %1994 = vtanh.f32 %v2506_v52 }
 0x33b   :  { %v1995_v53 = vpop.eup %1994 }
 0x33c   :  { %v2509_v54 = vmul.f32 %v1995_v53, %v1993_v51 }
 0x33e   :  { %v597_v55 = vpack.c.bf16 %v2509_v54, %v2509_v54 }
 0x340   :  { %631 = vmatmul.mubr.bf16.vlgmr.msra.gmra.mrb[12].mxu0 %v597_v55  ;;  %672 = vmatmul.mubr.bf16.vlgmr.msra.gmra.mrb[12].mxu1 %v597_v55 }
 0x341   :  { %719 = vmatpush1.bf16.msra.mxu0 %v2184_v2  ;;  %760 = vmatpush1.bf16.msra.mxu1 %v2212_v7 }
 0x342   :  { %720 = vmatprep.subr.bf16.mxu0 %v2190_v3  ;;  %761 = vmatprep.subr.bf16.mxu1 %v2231_v10 }
 0x343   :  { %750 = vmatprep.mubr.bf16.mxu0 %v2135_v0  ;;  %791 = vmatprep.mubr.bf16.mxu1 %v2135_v0 }
 0x345   :  { %721 = vmatpush1.bf16.msra.mxu0 %v2196_v4  ;;  %762 = vmatpush1.bf16.msra.mxu1 %v2236_v11 }
 0x346   :  { %722 = vmatprep.subr.bf16.mxu0 %v2202_v5  ;;  %763 = vmatprep.subr.bf16.mxu1 %v2253_v14 }
 0x349   :  { %723 = vmatpush1.bf16.msra.mxu0 %v2218_v8  ;;  %764 = vmatpush1.bf16.msra.mxu1 %v2260_v15 }
 0x34a   :  { %724 = vmatprep.subr.bf16.mxu0 %v2225_v9  ;;  %765 = vmatprep.subr.bf16.mxu1 %v2266_v16 }
 0x34d   :  { %725 = vmatpush1.bf16.msra.mxu0 %v2243_v12  ;;  %766 = vmatpush1.bf16.msra.mxu1 %v2284_v19 }
 0x34e   :  { %726 = vmatprep.subr.bf16.mxu0 %v2248_v13  ;;  %767 = vmatprep.subr.bf16.mxu1 %v2290_v20 }
 0x351   :  { %727 = vmatpush1.bf16.msra.mxu0 %v2272_v17  ;;  %768 = vmatpush1.bf16.msra.mxu1 %v2308_v23 }
 0x352   :  { %728 = vmatprep.subr.bf16.mxu0 %v2278_v18  ;;  %769 = vmatprep.subr.bf16.mxu1 %v2319_v25 }
 0x355   :  { %729 = vmatpush1.bf16.msra.mxu0 %v2296_v21  ;;  %770 = vmatpush1.bf16.msra.mxu1 %v2329_v27 }
 0x356   :  { %730 = vmatprep.subr.bf16.mxu0 %v2301_v22  ;;  %771 = vmatprep.subr.bf16.mxu1 %v2335_v28 }
 0x359   :  { %731 = vmatpush1.bf16.msra.mxu0 %v2313_v24  ;;  %772 = vmatpush1.bf16.msra.mxu1 %v2348_v30 }
 0x35a   :  { %732 = vmatprep.subr.bf16.mxu0 %v2324_v26  ;;  %773 = vmatprep.subr.bf16.mxu1 %v2354_v31 }
 0x35d   :  { %733 = vmatpush1.bf16.msra.mxu0 %v2342_v29  ;;  %774 = vmatpush1.bf16.msra.mxu1 %v2364_v32 }
 0x35e   :  { %838 = vmatprep.subr.bf16.mxu0 %v2179_v1  ;;  %879 = vmatprep.subr.bf16.mxu1 %v2207_v6 }
 0x413   :  { %v632_v58 = vpop.f32.mrb[12].mxu0  ;;  %v673_v59 = vpop.f32.mrb[12].mxu1 }
 0x414   :  { %v680_v60 = vadd.f32 %v632_v58, %v593_v56  ;;  %v634_v62 = vpop.f32.mrb[13].mxu0  ;;  %v675_v63 = vpop.f32.mrb[13].mxu1  ;;  %v682_v35 = vadd.f32 %v673_v59, %v595_v45 }
 0x415   :  { %v681_v33 = vadd.f32 %v634_v62, %v594_v57  ;;  %v636_v34 = vpop.f32.mrb[14].mxu0  ;;  %v677_v36 = vpop.f32.mrb[14].mxu1  ;;  %v683_v44 = vadd.f32 %v675_v63, %v596_v42 }
 0x416   :  { %v1760_v37 = vmul.f32 -1.442695, %v680_v60  ;;  %v637_v39 = vpop.f32.mrb[15].mxu0  ;;  %v678_v40 = vpop.f32.mrb[15].mxu1 }
 0x417   :  { %v1761_v41 = vmul.f32 -1.442695, %v681_v33  ;;  %v1762_v47 = vmul.f32 -1.442695, %v683_v44 }
 0x418   :  { %1996 = vpow2.f32 %v1760_v37 }
 0x419   :  { %1998 = vpow2.f32 %v1761_v41 }
 0x41a   :  { %2000 = vpow2.f32 %v1762_v47 }
 0x41b   :  { %2002 = vtanh.f32 %v682_v35 }
 0x422   :  { %v1997_v48 = vpop.eup %1996 }
 0x423   :  { %v1999_v49 = vpop.eup %1998  ;;  %v687_v50 = vadd.f32 1.0, %v1997_v48 }
 0x424   :  { %v693_v51 = vadd.f32 1.0, %v1999_v49  ;;  %v2001_v53 = vpop.eup %2000 }
 0x425   :  { %2004 = vrcp.f32 %v687_v50  ;;  %v2003_v55 = vpop.eup %2002  ;;  %v700_v58 = vadd.f32 1.0, %v2001_v53 }
 0x426   :  { %2006 = vrcp.f32 %v693_v51 }
 0x427   :  { %2008 = vrcp.f32 %v700_v58 }
 0x42f   :  { %v2005_v43 = vpop.eup %2004 }
 0x430   :  { %v2007_v56 = vpop.eup %2006  ;;  %v704_v57 = vmul.f32 %v2005_v43, %v2003_v55 }
 0x431   :  { %v703_v60 = vmul.f32 %v2007_v56, %v2506_v52  ;;  %v2009_v59 = vpop.eup %2008 }
 0x433   :  { %v2554_v62 = vadd.f32 %v704_v57, %v703_v60 }
 0x435   :  { %2010 = vtanh.f32 %v2554_v62 }
 0x43f   :  { %v2011_v61 = vpop.eup %2010 }
 0x440   :  { %v2557_v63 = vmul.f32 %v2011_v61, %v2009_v59 }
 0x442   :  { %v717_v33 = vpack.c.bf16 %v2557_v63, %v2557_v63 }
 0x444   :  { %751 = vmatmul.mubr.bf16.vlgmr.msra.gmra.mrb[16].mxu0 %v717_v33  ;;  %792 = vmatmul.mubr.bf16.vlgmr.msra.gmra.mrb[16].mxu1 %v717_v33  ;;  %v2612_v33 = vld [vmem:[%s2911_s1] ss:$16 sps:$4 sm:$0xff]  }
 0x445   :  { %839 = vmatpush1.bf16.msra.mxu0 %v2184_v2  ;;  %880 = vmatpush1.bf16.msra.mxu1 %v2212_v7  ;;  %v1763_v2 = vld [vmem:[%s2910_s0 + $0x40] sm:$0xff] }
 0x446   :  { %840 = vmatprep.subr.bf16.mxu0 %v2190_v3  ;;  %881 = vmatprep.subr.bf16.mxu1 %v2231_v10  ;;  %v713_v3 = vunpack.c.l.bf16 %v1763_v2 }
 0x447   :  { %870 = vmatprep.mubr.bf16.mxu0 %v2135_v0  ;;  %911 = vmatprep.mubr.bf16.mxu1 %v2135_v0 }
 0x449   :  { %841 = vmatpush1.bf16.msra.mxu0 %v2196_v4  ;;  %882 = vmatpush1.bf16.msra.mxu1 %v2236_v11  ;;  %v714_v4 = vunpack.c.h.bf16 %v1763_v2  ;;  %v2624_v2 = vld [vmem:[%s2911_s1 + $0x24] ss:$16 sps:$4 sm:$0xff]  }
 0x44a   :  { %842 = vmatprep.subr.bf16.mxu0 %v2202_v5  ;;  %883 = vmatprep.subr.bf16.mxu1 %v2253_v14 }
 0x44d   :  { %843 = vmatpush1.bf16.msra.mxu0 %v2218_v8  ;;  %884 = vmatpush1.bf16.msra.mxu1 %v2260_v15 }
 0x44e   :  { %844 = vmatprep.subr.bf16.mxu0 %v2225_v9  ;;  %885 = vmatprep.subr.bf16.mxu1 %v2266_v16  ;;  %v1764_v9 = vld [vmem:[%s2910_s0 + $0x48] sm:$0xff] }
 0x44f   :  { %v716_v39 = vunpack.c.h.bf16 %v1764_v9  ;;  %v715_v41 = vunpack.c.l.bf16 %v1764_v9 }
 0x451   :  { %845 = vmatpush1.bf16.msra.mxu0 %v2243_v12  ;;  %886 = vmatpush1.bf16.msra.mxu1 %v2284_v19 }
 0x452   :  { %846 = vmatprep.subr.bf16.mxu0 %v2248_v13  ;;  %887 = vmatprep.subr.bf16.mxu1 %v2290_v20 }
 0x455   :  { %847 = vmatpush1.bf16.msra.mxu0 %v2272_v17  ;;  %888 = vmatpush1.bf16.msra.mxu1 %v2308_v23 }
 0x456   :  { %848 = vmatprep.subr.bf16.mxu0 %v2278_v18  ;;  %889 = vmatprep.subr.bf16.mxu1 %v2319_v25 }
 0x459   :  { %849 = vmatpush1.bf16.msra.mxu0 %v2296_v21  ;;  %890 = vmatpush1.bf16.msra.mxu1 %v2329_v27 }
 0x45a   :  { %850 = vmatprep.subr.bf16.mxu0 %v2301_v22  ;;  %891 = vmatprep.subr.bf16.mxu1 %v2335_v28 }
 0x45d   :  { %851 = vmatpush1.bf16.msra.mxu0 %v2313_v24  ;;  %892 = vmatpush1.bf16.msra.mxu1 %v2348_v30 }
 0x45e   :  { %852 = vmatprep.subr.bf16.mxu0 %v2324_v26  ;;  %893 = vmatprep.subr.bf16.mxu1 %v2354_v31 }
 0x461   :  { %853 = vmatpush1.bf16.msra.mxu0 %v2342_v29  ;;  %894 = vmatpush1.bf16.msra.mxu1 %v2364_v32 }
 0x462   :  { %958 = vmatprep.subr.bf16.mxu0 %v2179_v1  ;;  %999 = vmatprep.subr.bf16.mxu1 %v2207_v6 }
 0x517   :  { %v752_v5 = vpop.f32.mrb[16].mxu0  ;;  %v793_v7 = vpop.f32.mrb[16].mxu1 }
 0x518   :  { %v800_v8 = vadd.f32 %v752_v5, %v713_v3  ;;  %v754_v11 = vpop.f32.mrb[17].mxu0  ;;  %v795_v12 = vpop.f32.mrb[17].mxu1  ;;  %v802_v44 = vadd.f32 %v793_v7, %v715_v41  ;;  %v2633_v3 = vld [vmem:[%s2911_s1 + $0x20] ss:$16 sps:$4 sm:$0xff]   ;;  %v2659_v7 = vld [vmem:[%s2911_s1 + $0x64] ss:$16 sps:$4 sm:$0xff]  }
 0x519   :  { %v801_v13 = vadd.f32 %v754_v11, %v714_v4  ;;  %v756_v52 = vpop.f32.mrb[18].mxu0  ;;  %v797_v1 = vpop.f32.mrb[18].mxu1  ;;  %v803_v40 = vadd.f32 %v795_v12, %v716_v39  ;;  %v2639_v4 = vld [vmem:[%s2911_s1 + $0x28] ss:$16 sps:$4 sm:$0xff]   ;;  %v2652_v5 = vld [vmem:[%s2911_s1 + $0x40] ss:$16 sps:$4 sm:$0xff]  }
 0x51a   :  { %v1765_v34 = vmul.f32 -1.442695, %v800_v8  ;;  %v757_v6 = vpop.f32.mrb[19].mxu0  ;;  %v798_v36 = vpop.f32.mrb[19].mxu1 }
 0x51b   :  { %v1766_v37 = vmul.f32 -1.442695, %v801_v13  ;;  %v1767_v42 = vmul.f32 -1.442695, %v803_v40 }
 0x51c   :  { %2012 = vpow2.f32 %v1765_v34 }
 0x51d   :  { %2014 = vpow2.f32 %v1766_v37 }
 0x51e   :  { %2016 = vpow2.f32 %v1767_v42 }
 0x51f   :  { %2018 = vtanh.f32 %v802_v44 }
 0x526   :  { %v2013_v45 = vpop.eup %2012 }
 0x527   :  { %v2015_v47 = vpop.eup %2014  ;;  %v807_v35 = vadd.f32 1.0, %v2013_v45 }
 0x528   :  { %v813_v48 = vadd.f32 1.0, %v2015_v47  ;;  %v2017_v49 = vpop.eup %2016 }
 0x529   :  { %2020 = vrcp.f32 %v807_v35  ;;  %v2019_v50 = vpop.eup %2018  ;;  %v820_v43 = vadd.f32 1.0, %v2017_v49 }
 0x52a   :  { %2022 = vrcp.f32 %v813_v48 }
 0x52b   :  { %2024 = vrcp.f32 %v820_v43  ;;  %v2091_v43 = vld [vmem:[%s2911_s1 + $0x6c] ss:$16 sps:$4 sm:$0xff]  }
 0x533   :  { %v2021_v51 = vpop.eup %2020 }
 0x534   :  { %v2023_v53 = vpop.eup %2022  ;;  %v824_v55 = vmul.f32 %v2021_v51, %v2019_v50  ;;  %v2088_v51 = vld [vmem:[%s2911_s1 + $0x2c] ss:$16 sps:$4 sm:$0xff]  }
 0x535   :  { %v823_v56 = vmul.f32 %v2023_v53, %v2554_v62  ;;  %v2025_v58 = vpop.eup %2024  ;;  %v2618_v62 = vld [vmem:[%s2911_s1 + $0x8] ss:$16 sps:$4 sm:$0xff]   ;;  %v2089_v53 = vld [vmem:[%s2911_s1 + $0x4c] ss:$16 sps:$4 sm:$0xff]  }
 0x537   :  { %v2602_v57 = vadd.f32 %v824_v55, %v823_v56  ;;  %v2090_v55 = vld [vmem:[%s2911_s1 + $0x48] ss:$16 sps:$4 sm:$0xff]  }
 0x538   :  { %v2092_v56 = vld [vmem:[%s2911_s1 + $0x68] ss:$16 sps:$4 sm:$0xff]  }
 0x539   :  { %2026 = vtanh.f32 %v2602_v57 }
 0x543   :  { %v2027_v60 = vpop.eup %2026 }
 0x544   :  { %v2605_v59 = vmul.f32 %v2027_v60, %v2025_v58  ;;  %v2094_v58 = vld [vmem:[%s2911_s1 + $0x80] ss:$16 sps:$4 sm:$0xff]   ;;  %v2095_v60 = vld [vmem:[%s2911_s1 + $0x88] ss:$16 sps:$4 sm:$0xff]  }
 0x546   :  { %v837_v61 = vpack.c.bf16 %v2605_v59, %v2605_v59 }
 0x548   :  { %871 = vmatmul.mubr.bf16.vlgmr.msra.gmra.mrb[20].mxu0 %v837_v61  ;;  %912 = vmatmul.mubr.bf16.vlgmr.msra.gmra.mrb[20].mxu1 %v837_v61  ;;  %v2096_v61 = vld [vmem:[%s2911_s1 + $0xa4] ss:$16 sps:$4 sm:$0xff]  }
 0x549   :  { %959 = vmatpush1.bf16.msra.mxu0 %v2612_v33  ;;  %1000 = vmatpush1.bf16.msra.mxu1 %v2618_v62 }
 0x54a   :  { %960 = vmatprep.subr.bf16.mxu0 %v2624_v2  ;;  %1001 = vmatprep.subr.bf16.mxu1 %v2231_v10  ;;  %v2645_v10 = vld [vmem:[%s2911_s1 + $0x44] ss:$16 sps:$4 sm:$0xff]  }
 0x54b   :  { %990 = vmatprep.mubr.bf16.mxu0 %v2135_v0  ;;  %1031 = vmatprep.mubr.bf16.mxu1 %v2135_v0 }
 0x54d   :  { %961 = vmatpush1.bf16.msra.mxu0 %v2633_v3  ;;  %1002 = vmatpush1.bf16.msra.mxu1 %v2639_v4 }
 0x54e   :  { %962 = vmatprep.subr.bf16.mxu0 %v2645_v10  ;;  %1003 = vmatprep.subr.bf16.mxu1 %v2253_v14  ;;  %v2666_v14 = vld [vmem:[%s2911_s1 + $0x60] ss:$16 sps:$4 sm:$0xff]  }
 0x551   :  { %963 = vmatpush1.bf16.msra.mxu0 %v2652_v5  ;;  %1004 = vmatpush1.bf16.msra.mxu1 %v2260_v15  ;;  %v2673_v15 = vld [vmem:[%s2911_s1 + $0x84] ss:$16 sps:$4 sm:$0xff]  }
 0x552   :  { %964 = vmatprep.subr.bf16.mxu0 %v2659_v7  ;;  %1005 = vmatprep.subr.bf16.mxu1 %v2266_v16  ;;  %v2086_v16 = vld [vmem:[%s2911_s1 + $0x4] ss:$16 sps:$4 sm:$0xff]  }
 0x555   :  { %965 = vmatpush1.bf16.msra.mxu0 %v2666_v14  ;;  %1006 = vmatpush1.bf16.msra.mxu1 %v2284_v19 }
 0x556   :  { %966 = vmatprep.subr.bf16.mxu0 %v2673_v15  ;;  %1007 = vmatprep.subr.bf16.mxu1 %v2290_v20 }
 0x559   :  { %967 = vmatpush1.bf16.msra.mxu0 %v2272_v17  ;;  %1008 = vmatpush1.bf16.msra.mxu1 %v2308_v23  ;;  %v2087_v17 = vld [vmem:[%s2911_s1 + $0xc] ss:$16 sps:$4 sm:$0xff]  }
 0x55a   :  { %968 = vmatprep.subr.bf16.mxu0 %v2278_v18  ;;  %1009 = vmatprep.subr.bf16.mxu1 %v2319_v25  ;;  %v1768_v18 = vld [vmem:[%s2910_s0 + $0x50] sm:$0xff] }
 0x55b   :  { %v833_v19 = vunpack.c.l.bf16 %v1768_v18  ;;  %v834_v20 = vunpack.c.h.bf16 %v1768_v18  ;;  %v1905_v18 = vld [vmem:[#allocation5 + $0xc] ss:$16 sps:$4 sm:$0xff]  }
 0x55d   :  { %969 = vmatpush1.bf16.msra.mxu0 %v2296_v21  ;;  %1010 = vmatpush1.bf16.msra.mxu1 %v2329_v27 }
 0x55e   :  { %970 = vmatprep.subr.bf16.mxu0 %v2301_v22  ;;  %1011 = vmatprep.subr.bf16.mxu1 %v2335_v28 }
 0x561   :  { %971 = vmatpush1.bf16.msra.mxu0 %v2313_v24  ;;  %1012 = vmatpush1.bf16.msra.mxu1 %v2348_v30  ;;  %v1769_v24 = vld [vmem:[%s2910_s0 + $0x58] sm:$0xff] }
 0x562   :  { %972 = vmatprep.subr.bf16.mxu0 %v2324_v26  ;;  %1013 = vmatprep.subr.bf16.mxu1 %v2354_v31  ;;  %v836_v9 = vunpack.c.h.bf16 %v1769_v24  ;;  %v835_v12 = vunpack.c.l.bf16 %v1769_v24 }
 0x565   :  { %973 = vmatpush1.bf16.msra.mxu0 %v2342_v29  ;;  %1014 = vmatpush1.bf16.msra.mxu1 %v2364_v32 }
 0x566   :  { %1078 = vmatprep.subr.bf16.mxu0 %v2086_v16  ;;  %1119 = vmatprep.subr.bf16.mxu1 %v2087_v17  ;;  %v2107_v16 = vld [vmem:[%s2911_s1 + $0xe8] ss:$16 sps:$4 sm:$0xff]   ;;  %v1902_v17 = vld [vmem:[#allocation5 + $0x4] ss:$16 sps:$4 sm:$0xff]  }
 0x61b   :  { %v872_v21 = vpop.f32.mrb[20].mxu0  ;;  %v913_v22 = vpop.f32.mrb[20].mxu1 }
 0x61c   :  { %v920_v23 = vadd.f32 %v872_v21, %v833_v19  ;;  %v874_v25 = vpop.f32.mrb[21].mxu0  ;;  %v915_v26 = vpop.f32.mrb[21].mxu1  ;;  %v922_v52 = vadd.f32 %v913_v22, %v835_v12  ;;  %v1773_v19 = vld [vmem:[%s2910_s0 + $0x60] sm:$0xff] }
 0x61d   :  { %v921_v27 = vadd.f32 %v874_v25, %v834_v20  ;;  %v876_v28 = vpop.f32.mrb[22].mxu0  ;;  %v917_v29 = vpop.f32.mrb[22].mxu1  ;;  %v923_v11 = vadd.f32 %v915_v26, %v836_v9  ;;  %v953_v20 = vunpack.c.l.bf16 %v1773_v19  ;;  %v954_v21 = vunpack.c.h.bf16 %v1773_v19  ;;  %v1774_v25 = vld [vmem:[%s2910_s0 + $0x68] sm:$0xff]  ;;  %v1930_v19 = vld [vmem:[#allocation5 + $0xa0] ss:$16 sps:$4 sm:$0xff]  }
 0x61e   :  { %v1770_v30 = vmul.f32 -1.442695, %v920_v23  ;;  %v877_v31 = vpop.f32.mrb[23].mxu0  ;;  %v918_v32 = vpop.f32.mrb[23].mxu1 }
 0x61f   :  { %v1771_v8 = vmul.f32 -1.442695, %v921_v27  ;;  %v1772_v13 = vmul.f32 -1.442695, %v923_v11  ;;  %v956_v11 = vunpack.c.h.bf16 %v1774_v25 }
 0x620   :  { %2028 = vpow2.f32 %v1770_v30 }
 0x621   :  { %2030 = vpow2.f32 %v1771_v8 }
 0x622   :  { %2032 = vpow2.f32 %v1772_v13  ;;  %v955_v13 = vunpack.c.l.bf16 %v1774_v25  ;;  %v1944_v25 = vld [vmem:[#allocation5 + $0xe4] ss:$16 sps:$4 sm:$0xff]  }
 0x623   :  { %2034 = vtanh.f32 %v922_v52 }
 0x62a   :  { %v2029_v1 = vpop.eup %2028 }
 0x62b   :  { %v2031_v34 = vpop.eup %2030  ;;  %v927_v6 = vadd.f32 1.0, %v2029_v1 }
 0x62c   :  { %v933_v36 = vadd.f32 1.0, %v2031_v34  ;;  %v2033_v37 = vpop.eup %2032 }
 0x62d   :  { %2036 = vrcp.f32 %v927_v6  ;;  %v2035_v39 = vpop.eup %2034  ;;  %v940_v44 = vadd.f32 1.0, %v2033_v37 }
 0x62e   :  { %2038 = vrcp.f32 %v933_v36 }
 0x62f   :  { %2040 = vrcp.f32 %v940_v44 }
 0x637   :  { %v2037_v40 = vpop.eup %2036 }
 0x638   :  { %v2039_v41 = vpop.eup %2038  ;;  %v944_v42 = vmul.f32 %v2037_v40, %v2035_v39 }
 0x639   :  { %v943_v45 = vmul.f32 %v2039_v41, %v2602_v57  ;;  %v2041_v35 = vpop.eup %2040  ;;  %v2093_v57 = vld [vmem:[%s2911_s1 + $0x8c] ss:$16 sps:$4 sm:$0xff]  }
 0x63b   :  { %v2704_v47 = vadd.f32 %v944_v42, %v943_v45 }
 0x63d   :  { %2042 = vtanh.f32 %v2704_v47 }
 0x647   :  { %v2043_v48 = vpop.eup %2042 }
 0x648   :  { %v2707_v49 = vmul.f32 %v2043_v48, %v2041_v35 }
 0x64a   :  { %v957_v50 = vpack.c.bf16 %v2707_v49, %v2707_v49 }
 0x64c   :  { %991 = vmatmul.mubr.bf16.vlgmr.msra.gmra.mrb[24].mxu0 %v957_v50  ;;  %1032 = vmatmul.mubr.bf16.vlgmr.msra.gmra.mrb[24].mxu1 %v957_v50 }
 0x64d   :  { %1079 = vmatpush1.bf16.msra.mxu0 %v2612_v33  ;;  %1120 = vmatpush1.bf16.msra.mxu1 %v2618_v62  ;;  %v2097_v33 = vld [vmem:[%s2911_s1 + $0xac] ss:$16 sps:$4 sm:$0xff]   ;;  %v2098_v62 = vld [vmem:[%s2911_s1 + $0xa0] ss:$16 sps:$4 sm:$0xff]  }
 0x64e   :  { %1080 = vmatprep.subr.bf16.mxu0 %v2624_v2  ;;  %1121 = vmatprep.subr.bf16.mxu1 %v2088_v51  ;;  %v2099_v2 = vld [vmem:[%s2911_s1 + $0xa8] ss:$16 sps:$4 sm:$0xff]  }
 0x64f   :  { %1110 = vmatprep.mubr.bf16.mxu0 %v2135_v0  ;;  %1151 = vmatprep.mubr.bf16.mxu1 %v2135_v0 }
 0x651   :  { %1081 = vmatpush1.bf16.msra.mxu0 %v2633_v3  ;;  %1122 = vmatpush1.bf16.msra.mxu1 %v2639_v4  ;;  %v2100_v3 = vld [vmem:[%s2911_s1 + $0xc4] ss:$16 sps:$4 sm:$0xff]   ;;  %v2101_v4 = vld [vmem:[%s2911_s1 + $0xcc] ss:$16 sps:$4 sm:$0xff]  }
 0x652   :  { %1082 = vmatprep.subr.bf16.mxu0 %v2645_v10  ;;  %1123 = vmatprep.subr.bf16.mxu1 %v2089_v53  ;;  %v2102_v10 = vld [vmem:[%s2911_s1 + $0xc0] ss:$16 sps:$4 sm:$0xff]  }
 0x655   :  { %1083 = vmatpush1.bf16.msra.mxu0 %v2652_v5  ;;  %1124 = vmatpush1.bf16.msra.mxu1 %v2090_v55  ;;  %v2103_v5 = vld [vmem:[%s2911_s1 + $0xc8] ss:$16 sps:$4 sm:$0xff]   ;;  %v1900_v55 = vld [vmem:[#allocation5] ss:$16 sps:$4 sm:$0xff]  }
 0x656   :  { %1084 = vmatprep.subr.bf16.mxu0 %v2659_v7  ;;  %1125 = vmatprep.subr.bf16.mxu1 %v2091_v43  ;;  %v2104_v7 = vld [vmem:[%s2911_s1 + $0xe4] ss:$16 sps:$4 sm:$0xff]   ;;  %v1903_v43 = vld [vmem:[#allocation5 + $0x8] ss:$16 sps:$4 sm:$0xff]  }
 0x659   :  { %1085 = vmatpush1.bf16.msra.mxu0 %v2666_v14  ;;  %1126 = vmatpush1.bf16.msra.mxu1 %v2092_v56  ;;  %v2105_v14 = vld [vmem:[%s2911_s1 + $0xec] ss:$16 sps:$4 sm:$0xff]  }
 0x65a   :  { %1086 = vmatprep.subr.bf16.mxu0 %v2673_v15  ;;  %1127 = vmatprep.subr.bf16.mxu1 %v2093_v57  ;;  %v2106_v15 = vld [vmem:[%s2911_s1 + $0xe0] ss:$16 sps:$4 sm:$0xff]   ;;  %v1908_v57 = vld [vmem:[#allocation5 + $0x24] ss:$16 sps:$4 sm:$0xff]  }
 0x65d   :  { %1087 = vmatpush1.bf16.msra.mxu0 %v2094_v58  ;;  %1128 = vmatpush1.bf16.msra.mxu1 %v2095_v60  ;;  %v1911_v58 = vld [vmem:[#allocation5 + $0x2c] ss:$16 sps:$4 sm:$0xff]   ;;  %v1909_v60 = vld [vmem:[#allocation5 + $0x28] ss:$16 sps:$4 sm:$0xff]  }
 0x65e   :  { %1088 = vmatprep.subr.bf16.mxu0 %v2096_v61  ;;  %1129 = vmatprep.subr.bf16.mxu1 %v2097_v33  ;;  %v1914_v61 = vld [vmem:[#allocation5 + $0x44] ss:$16 sps:$4 sm:$0xff]   ;;  %v1917_v33 = vld [vmem:[#allocation5 + $0x4c] ss:$16 sps:$4 sm:$0xff]  }
 0x661   :  { %1089 = vmatpush1.bf16.msra.mxu0 %v2098_v62  ;;  %1130 = vmatpush1.bf16.msra.mxu1 %v2099_v2  ;;  %v1912_v62 = vld [vmem:[#allocation5 + $0x40] ss:$16 sps:$4 sm:$0xff]   ;;  %v1915_v2 = vld [vmem:[#allocation5 + $0x48] ss:$16 sps:$4 sm:$0xff]  }
 0x662   :  { %1090 = vmatprep.subr.bf16.mxu0 %v2100_v3  ;;  %1131 = vmatprep.subr.bf16.mxu1 %v2101_v4  ;;  %v1920_v3 = vld [vmem:[#allocation5 + $0x64] ss:$16 sps:$4 sm:$0xff]   ;;  %v1923_v4 = vld [vmem:[#allocation5 + $0x6c] ss:$16 sps:$4 sm:$0xff]  }
 0x665   :  { %1091 = vmatpush1.bf16.msra.mxu0 %v2102_v10  ;;  %1132 = vmatpush1.bf16.msra.mxu1 %v2103_v5  ;;  %v1918_v10 = vld [vmem:[#allocation5 + $0x60] ss:$16 sps:$4 sm:$0xff]   ;;  %v1921_v5 = vld [vmem:[#allocation5 + $0x68] ss:$16 sps:$4 sm:$0xff]  }
 0x666   :  { %1092 = vmatprep.subr.bf16.mxu0 %v2104_v7  ;;  %1133 = vmatprep.subr.bf16.mxu1 %v2105_v14  ;;  %v1926_v7 = vld [vmem:[#allocation5 + $0x84] ss:$16 sps:$4 sm:$0xff]   ;;  %v1929_v14 = vld [vmem:[#allocation5 + $0x8c] ss:$16 sps:$4 sm:$0xff]  }
 0x669   :  { %1093 = vmatpush1.bf16.msra.mxu0 %v2106_v15  ;;  %1134 = vmatpush1.bf16.msra.mxu1 %v2107_v16  ;;  %v1924_v15 = vld [vmem:[#allocation5 + $0x80] ss:$16 sps:$4 sm:$0xff]   ;;  %v1927_v16 = vld [vmem:[#allocation5 + $0x88] ss:$16 sps:$4 sm:$0xff]  }
 0x66a   :  { %1418 = vmatprep.subr.bf16.mxu0 %v1902_v17  ;;  %1491 = vmatprep.subr.bf16.mxu1 %v1905_v18  ;;  %v1932_v17 = vld [vmem:[#allocation5 + $0xa4] ss:$16 sps:$4 sm:$0xff]   ;;  %v1935_v18 = vld [vmem:[#allocation5 + $0xac] ss:$16 sps:$4 sm:$0xff]  }
 0x71f   :  { %v992_v22 = vpop.f32.mrb[24].mxu0  ;;  %v1033_v23 = vpop.f32.mrb[24].mxu1 }
 0x720   :  { %v1040_v24 = vadd.f32 %v992_v22, %v953_v20  ;;  %v994_v26 = vpop.f32.mrb[25].mxu0  ;;  %v1035_v27 = vpop.f32.mrb[25].mxu1  ;;  %v1042_v1 = vadd.f32 %v1033_v23, %v955_v13  ;;  %v1933_v20 = vld [vmem:[#allocation5 + $0xa8] ss:$16 sps:$4 sm:$0xff]   ;;  %v1941_v22 = vld [vmem:[#allocation5 + $0xcc] ss:$16 sps:$4 sm:$0xff]  }
 0x721   :  { %v1041_v28 = vadd.f32 %v994_v26, %v954_v21  ;;  %v996_v29 = vpop.f32.mrb[26].mxu0  ;;  %v1037_v30 = vpop.f32.mrb[26].mxu1  ;;  %v1043_v12 = vadd.f32 %v1035_v27, %v956_v11  ;;  %v1938_v21 = vld [vmem:[#allocation5 + $0xc4] ss:$16 sps:$4 sm:$0xff]   ;;  %v1936_v23 = vld [vmem:[#allocation5 + $0xc0] ss:$16 sps:$4 sm:$0xff]  }
 0x722   :  { %v1775_v31 = vmul.f32 -1.442695, %v1040_v24  ;;  %v997_v32 = vpop.f32.mrb[27].mxu0  ;;  %v1038_v8 = vpop.f32.mrb[27].mxu1  ;;  %v1939_v24 = vld [vmem:[#allocation5 + $0xc8] ss:$16 sps:$4 sm:$0xff]   ;;  %v1200_v29 = vpack.c.bf16 %v2461_v46, %v2413_v38  ;;  %v1201_v30 = vpack.c.bf16 %v2557_v63, %v2509_v54 }
 0x723   :  { %v1776_v9 = vmul.f32 -1.442695, %v1041_v28  ;;  %v1777_v52 = vmul.f32 -1.442695, %v1043_v12  ;;  %v1947_v26 = vld [vmem:[#allocation5 + $0xec] ss:$16 sps:$4 sm:$0xff]  }
 0x724   :  { %2044 = vpow2.f32 %v1775_v31  ;;  %v1942_v27 = vld [vmem:[#allocation5 + $0xe0] ss:$16 sps:$4 sm:$0xff]   ;;  %v1945_v28 = vld [vmem:[#allocation5 + $0xe8] ss:$16 sps:$4 sm:$0xff]   ;;  %v1202_v31 = vpack.c.bf16 %v2707_v49, %v2605_v59 }
 0x725   :  { %2046 = vpow2.f32 %v1776_v9  ;;  %v1778_v38 = vld [vmem:[%s2910_s0 + $0x70] sm:$0xff]  ;;  %v1779_v9 = vld [vmem:[%s2910_s0 + $0x78] sm:$0xff] }
 0x726   :  { %2048 = vpow2.f32 %v1777_v52  ;;  %v1073_v46 = vunpack.c.l.bf16 %v1778_v38  ;;  %v1074_v54 = vunpack.c.h.bf16 %v1778_v38 }
 0x727   :  { %2050 = vtanh.f32 %v1042_v1 }
 0x72e   :  { %v2045_v34 = vpop.eup %2044 }
 0x72f   :  { %v2047_v6 = vpop.eup %2046  ;;  %v1047_v36 = vadd.f32 1.0, %v2045_v34 }
 0x730   :  { %v1053_v37 = vadd.f32 1.0, %v2047_v6  ;;  %v2049_v39 = vpop.eup %2048  ;;  %v1076_v6 = vunpack.c.h.bf16 %v1779_v9 }
 0x731   :  { %2052 = vrcp.f32 %v1047_v36  ;;  %v2051_v40 = vpop.eup %2050  ;;  %v1060_v45 = vadd.f32 1.0, %v2049_v39 }
 0x732   :  { %2054 = vrcp.f32 %v1053_v37  ;;  %v1075_v37 = vunpack.c.l.bf16 %v1779_v9 }
 0x733   :  { %2056 = vrcp.f32 %v1060_v45 }
 0x73b   :  { %v2053_v41 = vpop.eup %2052 }
 0x73c   :  { %v2055_v42 = vpop.eup %2054  ;;  %v1064_v44 = vmul.f32 %v2053_v41, %v2051_v40 }
 0x73d   :  { %v1063_v35 = vmul.f32 %v2055_v42, %v2704_v47  ;;  %v2057_v50 = vpop.eup %2056  ;;  %v1906_v47 = vld [vmem:[#allocation5 + $0x20] ss:$16 sps:$4 sm:$0xff]  }
 0x73f   :  { %v2790_v48 = vadd.f32 %v1064_v44, %v1063_v35  ;;  %v1238_v35 = vlaneseq }
 0x741   :  { %2058 = vtanh.f32 %v2790_v48 }
 0x74b   :  { %v2059_v51 = vpop.eup %2058 }
 0x74c   :  { %v2793_v53 = vmul.f32 %v2059_v51, %v2057_v50  ;;  %v1239_v50 = vshrl.u32 %v1238_v35, 7 }
 0x74e   :  { %v1077_v56 = vpack.c.bf16 %v2793_v53, %v2793_v53  ;;  %v1240_v51 = vsub.s32 0, %v1239_v50 }
 0x750   :  { %1111 = vmatmul.mubr.bf16.vlgmr.msra.gmra.mrb[28].mxu0 %v1077_v56  ;;  %1152 = vmatmul.mubr.bf16.vlgmr.msra.gmra.mrb[28].mxu1 %v1077_v56  ;;  %v1236_v56 = vld [vmem:[%s2913_s3] sm:$0xf] }
 0x751   :  { %1419 = vmatpush1.bf16.msra.mxu0 %v1900_v55  ;;  %1492 = vmatpush1.bf16.msra.mxu1 %v1903_v43  ;;  %v1248_v55 = vsub.s32 2, %v1239_v50 }
 0x752   :  { %1420 = vmatprep.subr.bf16.mxu0 %v1908_v57  ;;  %1493 = vmatprep.subr.bf16.mxu1 %v1911_v58  ;;  %v1244_v57 = vsub.s32 1, %v1239_v50  ;;  %v1252_v58 = vsub.s32 3, %v1239_v50 }
 0x753   :  { %1450 = vmatprep.mubr.bf16.mxu0 %v2135_v0  ;;  %1523 = vmatprep.mubr.bf16.mxu1 %v2135_v0 }
 0x755   :  { %1421 = vmatpush1.bf16.msra.mxu0 %v1906_v47  ;;  %1494 = vmatpush1.bf16.msra.mxu1 %v1909_v60 }
 0x756   :  { %1422 = vmatprep.subr.bf16.mxu0 %v1914_v61  ;;  %1495 = vmatprep.subr.bf16.mxu1 %v1917_v33 }
 0x759   :  { %1423 = vmatpush1.bf16.msra.mxu0 %v1912_v62  ;;  %1496 = vmatpush1.bf16.msra.mxu1 %v1915_v2  ;;  %v2820_v2 = vrot.slane %v1236_v56, %v1240_v51 }
 0x75a   :  { %1424 = vmatprep.subr.bf16.mxu0 %v1920_v3  ;;  %1497 = vmatprep.subr.bf16.mxu1 %v1923_v4  ;;  %v2822_v3 = vrot.slane %v1236_v56, %v1248_v55 }
 0x75d   :  { %1425 = vmatpush1.bf16.msra.mxu0 %v1918_v10  ;;  %1498 = vmatpush1.bf16.msra.mxu1 %v1921_v5  ;;  %v2825_v10 = vrot.slane %v1236_v56, %v1244_v57  ;;  %v2827_v5 = vrot.slane %v1236_v56, %v1252_v58 }
 0x75e   :  { %1426 = vmatprep.subr.bf16.mxu0 %v1926_v7  ;;  %1499 = vmatprep.subr.bf16.mxu1 %v1929_v14 }
 0x761   :  { %1427 = vmatpush1.bf16.msra.mxu0 %v1924_v15  ;;  %1500 = vmatpush1.bf16.msra.mxu1 %v1927_v16 }
 0x762   :  { %1428 = vmatprep.subr.bf16.mxu0 %v1932_v17  ;;  %1501 = vmatprep.subr.bf16.mxu1 %v1935_v18 }
 0x765   :  { %1429 = vmatpush1.bf16.msra.mxu0 %v1930_v19  ;;  %1502 = vmatpush1.bf16.msra.mxu1 %v1933_v20 }
 0x766   :  { %1430 = vmatprep.subr.bf16.mxu0 %v1938_v21  ;;  %1503 = vmatprep.subr.bf16.mxu1 %v1941_v22 }
 0x769   :  { %1431 = vmatpush1.bf16.msra.mxu0 %v1936_v23  ;;  %1504 = vmatpush1.bf16.msra.mxu1 %v1939_v24 }
 0x76a   :  { %1432 = vmatprep.subr.bf16.mxu0 %v1944_v25  ;;  %1505 = vmatprep.subr.bf16.mxu1 %v1947_v26 }
 0x76d   :  { %1433 = vmatpush1.bf16.msra.mxu0 %v1942_v27  ;;  %1506 = vmatpush1.bf16.msra.mxu1 %v1945_v28 }
 0x770   :  { %1451 = vmatmul.mubr.bf16.vlgmr.msra.gmra.mrb[32].mxu0 %v1200_v29  ;;  %1524 = vmatmul.mubr.bf16.vlgmr.msra.gmra.mrb[32].mxu1 %v1200_v29 }
 0x771   :  { %1460 = vmatprep.mubr.bf16.mxu0 %v2135_v0  ;;  %1533 = vmatprep.mubr.bf16.mxu1 %v2135_v0 }
 0x778   :  { %1461 = vmatmul.mubr.bf16.gmra.mrb[36].mxu0 %v1201_v30  ;;  %1534 = vmatmul.mubr.bf16.gmra.mrb[36].mxu1 %v1201_v30 }
 0x779   :  { %1470 = vmatprep.mubr.bf16.mxu0 %v2135_v0  ;;  %1543 = vmatprep.mubr.bf16.mxu1 %v2135_v0 }
 0x780   :  { %1471 = vmatmul.mubr.bf16.gmra.mrb[40].mxu0 %v1202_v31  ;;  %1544 = vmatmul.mubr.bf16.gmra.mrb[40].mxu1 %v1202_v31 }
 0x781   :  { %1480 = vmatprep.mubr.bf16.mxu0 %v2135_v0  ;;  %1553 = vmatprep.mubr.bf16.mxu1 %v2135_v0 }
 0x823   :  { %v1112_v63 = vpop.f32.mrb[28].mxu0  ;;  %v1153_v32 = vpop.f32.mrb[28].mxu1 }
 0x824   :  { %v1160_v8 = vadd.f32 %v1112_v63, %v1073_v46  ;;  %v1114_v59 = vpop.f32.mrb[29].mxu0  ;;  %v1155_v49 = vpop.f32.mrb[29].mxu1  ;;  %v1162_v40 = vadd.f32 %v1153_v32, %v1075_v37 }
 0x825   :  { %v1161_v11 = vadd.f32 %v1114_v59, %v1074_v54  ;;  %v1116_v12 = vpop.f32.mrb[30].mxu0  ;;  %v1157_v13 = vpop.f32.mrb[30].mxu1  ;;  %v1163_v36 = vadd.f32 %v1155_v49, %v1076_v6 }
 0x826   :  { %v1780_v52 = vmul.f32 -1.442695, %v1160_v8  ;;  %v1117_v0 = vpop.f32.mrb[31].mxu0  ;;  %v1158_v1 = vpop.f32.mrb[31].mxu1 }
 0x827   :  { %v1781_v34 = vmul.f32 -1.442695, %v1161_v11  ;;  %v1782_v39 = vmul.f32 -1.442695, %v1163_v36 }
 0x828   :  { %2060 = vpow2.f32 %v1780_v52 }
 0x829   :  { %2062 = vpow2.f32 %v1781_v34 }
 0x82a   :  { %2064 = vpow2.f32 %v1782_v39 }
 0x82b   :  { %2066 = vtanh.f32 %v1162_v40 }
 0x832   :  { %v2061_v41 = vpop.eup %2060 }
 0x833   :  { %v2063_v42 = vpop.eup %2062  ;;  %v1167_v44 = vadd.f32 1.0, %v2061_v41 }
 0x834   :  { %v1173_v45 = vadd.f32 1.0, %v2063_v42  ;;  %v2065_v43 = vpop.eup %2064 }
 0x835   :  { %2068 = vrcp.f32 %v1167_v44  ;;  %v2067_v47 = vpop.eup %2066  ;;  %v1180_v62 = vadd.f32 1.0, %v2065_v43 }
 0x836   :  { %2070 = vrcp.f32 %v1173_v45 }
 0x837   :  { %2072 = vrcp.f32 %v1180_v62 }
 0x83f   :  { %v2069_v60 = vpop.eup %2068 }
 0x840   :  { %v2071_v61 = vpop.eup %2070  ;;  %v1184_v33 = vmul.f32 %v2069_v60, %v2067_v47 }
 0x841   :  { %v1183_v4 = vmul.f32 %v2071_v61, %v2790_v48  ;;  %v2073_v13 = vpop.eup %2072 }
 0x843   :  { %v1452_v7 = vpop.f32.mrb[32].mxu0  ;;  %v1525_v14 = vpop.f32.mrb[32].mxu1  ;;  %v1185_v15 = vadd.f32 %v1184_v33, %v1183_v4 }
 0x844   :  { %v1453_v16 = vadd.f32 %v1452_v7, %v2820_v2  ;;  %v1526_v17 = vadd.f32 %v1525_v14, %v2822_v3  ;;  %v1454_v18 = vpop.f32.mrb[33].mxu0  ;;  %v1527_v19 = vpop.f32.mrb[33].mxu1 }
 0x845   :  { %v1455_v20 = vadd.f32 %v1454_v18, %v2825_v10  ;;  %v1528_v21 = vadd.f32 %v1527_v19, %v2827_v5  ;;  %v1456_v22 = vpop.f32.mrb[34].mxu0  ;;  %v1529_v48 = vpop.f32.mrb[34].mxu1  ;;  %2074 = vtanh.f32 %v1185_v15 }
 0x846   :  { %v1457_v23 = vadd.f32 %v1456_v22, %v2820_v2  ;;  %v1530_v24 = vadd.f32 %v1529_v48, %v2822_v3  ;;  %v1458_v25 = vpop.f32.mrb[35].mxu0  ;;  %v1531_v26 = vpop.f32.mrb[35].mxu1 }
 0x847   :  { %v1831_v27 = vpack.c.bf16 %v1455_v20, %v1453_v16  ;;  %v1832_v28 = vpack.c.bf16 %v1528_v21, %v1526_v17  ;;  %v1459_v29 = vadd.f32 %v1458_v25, %v2825_v10  ;;  %v1532_v30 = vadd.f32 %v1531_v26, %v2827_v5 }
 0x849   :  { %1692 = vst [vmem:[%s2914_s4] sm:$0xff] %v1831_v27  ;;  %1693 = vst [vmem:[%s2914_s4 + $0x8] sm:$0xff] %v1832_v28  ;;  %v1833_v31 = vpack.c.bf16 %v1459_v29, %v1457_v23  ;;  %v1834_v38 = vpack.c.bf16 %v1532_v30, %v1530_v24 }
 0x84b   :  { %1694 = vst [vmem:[%s2914_s4 + $0x10] sm:$0xff] %v1833_v31  ;;  %1695 = vst [vmem:[%s2914_s4 + $0x18] sm:$0xff] %v1834_v38  ;;  %v1462_v46 = vpop.f32.mrb[36].mxu0  ;;  %v1535_v54 = vpop.f32.mrb[36].mxu1 }
 0x84c   :  { %v1463_v63 = vadd.f32 %v1462_v46, %v2820_v2  ;;  %v1536_v32 = vadd.f32 %v1535_v54, %v2822_v3  ;;  %v1464_v8 = vpop.f32.mrb[37].mxu0  ;;  %v1537_v9 = vpop.f32.mrb[37].mxu1 }
 0x84d   :  { %v1465_v59 = vadd.f32 %v1464_v8, %v2825_v10  ;;  %v1538_v49 = vadd.f32 %v1537_v9, %v2827_v5  ;;  %v1466_v11 = vpop.f32.mrb[38].mxu0  ;;  %v1539_v12 = vpop.f32.mrb[38].mxu1 }
 0x84e   :  { %v1467_v52 = vadd.f32 %v1466_v11, %v2820_v2  ;;  %v1540_v0 = vadd.f32 %v1539_v12, %v2822_v3  ;;  %v1468_v1 = vpop.f32.mrb[39].mxu0  ;;  %v1541_v34 = vpop.f32.mrb[39].mxu1 }
 0x84f   :  { %v2075_v6 = vpop.eup %2074  ;;  %v1835_v36 = vpack.c.bf16 %v1465_v59, %v1463_v63  ;;  %v1836_v37 = vpack.c.bf16 %v1538_v49, %v1536_v32  ;;  %v1469_v39 = vadd.f32 %v1468_v1, %v2825_v10  ;;  %v1542_v40 = vadd.f32 %v1541_v34, %v2827_v5 }
 0x850   :  { %v1187_v41 = vmul.f32 %v2075_v6, %v2073_v13 }
 0x851   :  { %1696 = vst [vmem:[%s2914_s4 + $0x20] sm:$0xff] %v1835_v36  ;;  %1697 = vst [vmem:[%s2914_s4 + $0x28] sm:$0xff] %v1836_v37  ;;  %v1837_v42 = vpack.c.bf16 %v1469_v39, %v1467_v52  ;;  %v1838_v44 = vpack.c.bf16 %v1542_v40, %v1540_v0 }
 0x852   :  { %v1203_v45 = vpack.c.bf16 %v1187_v41, %v2793_v53 }
 0x853   :  { %1698 = vst [vmem:[%s2914_s4 + $0x30] sm:$0xff] %v1837_v42  ;;  %1699 = vst [vmem:[%s2914_s4 + $0x38] sm:$0xff] %v1838_v44  ;;  %v1472_v35 = vpop.f32.mrb[40].mxu0  ;;  %v1545_v50 = vpop.f32.mrb[40].mxu1 }
 0x854   :  { %v1473_v51 = vadd.f32 %v1472_v35, %v2820_v2  ;;  %v1546_v55 = vadd.f32 %v1545_v50, %v2822_v3  ;;  %v1474_v43 = vpop.f32.mrb[41].mxu0  ;;  %v1547_v56 = vpop.f32.mrb[41].mxu1  ;;  %1481 = vmatmul.mubr.bf16.gmra.mrb[44].mxu0 %v1203_v45  ;;  %1554 = vmatmul.mubr.bf16.gmra.mrb[44].mxu1 %v1203_v45 }
 0x855   :  { %v1475_v53 = vadd.f32 %v1474_v43, %v2825_v10  ;;  %v1548_v57 = vadd.f32 %v1547_v56, %v2827_v5  ;;  %v1476_v58 = vpop.f32.mrb[42].mxu0  ;;  %v1549_v47 = vpop.f32.mrb[42].mxu1 }
 0x856   :  { %v1477_v60 = vadd.f32 %v1476_v58, %v2820_v2  ;;  %v1550_v61 = vadd.f32 %v1549_v47, %v2822_v3  ;;  %v1478_v33 = vpop.f32.mrb[43].mxu0  ;;  %v1551_v62 = vpop.f32.mrb[43].mxu1 }
 0x857   :  { %v1839_v4 = vpack.c.bf16 %v1475_v53, %v1473_v51  ;;  %v1840_v7 = vpack.c.bf16 %v1548_v57, %v1546_v55  ;;  %v1479_v14 = vadd.f32 %v1478_v33, %v2825_v10  ;;  %v1552_v15 = vadd.f32 %v1551_v62, %v2827_v5 }
 0x859   :  { %1700 = vst [vmem:[%s2914_s4 + $0x40] sm:$0xff] %v1839_v4  ;;  %1701 = vst [vmem:[%s2914_s4 + $0x48] sm:$0xff] %v1840_v7  ;;  %v1841_v16 = vpack.c.bf16 %v1479_v14, %v1477_v60  ;;  %v1842_v17 = vpack.c.bf16 %v1552_v15, %v1550_v61 }
 0x85b   :  { %1702 = vst [vmem:[%s2914_s4 + $0x50] sm:$0xff] %v1841_v16  ;;  %1703 = vst [vmem:[%s2914_s4 + $0x58] sm:$0xff] %v1842_v17 }
 0x927   :  { %v1482_v18 = vpop.f32.mrb[44].mxu0  ;;  %v1555_v19 = vpop.f32.mrb[44].mxu1 }
 0x928   :  { %v1483_v20 = vadd.f32 %v1482_v18, %v2820_v2  ;;  %v1556_v21 = vadd.f32 %v1555_v19, %v2822_v3  ;;  %v1484_v22 = vpop.f32.mrb[45].mxu0  ;;  %v1557_v48 = vpop.f32.mrb[45].mxu1 }
 0x929   :  { %v1485_v23 = vadd.f32 %v1484_v22, %v2825_v10  ;;  %v1558_v24 = vadd.f32 %v1557_v48, %v2827_v5  ;;  %v1486_v25 = vpop.f32.mrb[46].mxu0  ;;  %v1559_v26 = vpop.f32.mrb[46].mxu1 }
 0x92a   :  { %v1487_v27 = vadd.f32 %v1486_v25, %v2820_v2  ;;  %v1560_v28 = vadd.f32 %v1559_v26, %v2822_v3  ;;  %v1488_v29 = vpop.f32.mrb[47].mxu0  ;;  %v1561_v30 = vpop.f32.mrb[47].mxu1 }
 0x92b   :  { %v1843_v31 = vpack.c.bf16 %v1485_v23, %v1483_v20  ;;  %v1844_v38 = vpack.c.bf16 %v1558_v24, %v1556_v21  ;;  %v1489_v46 = vadd.f32 %v1488_v29, %v2825_v10  ;;  %v1562_v54 = vadd.f32 %v1561_v30, %v2827_v5 }
 0x92d   :  { %1704 = vst [vmem:[%s2914_s4 + $0x60] sm:$0xff] %v1843_v31  ;;  %1705 = vst [vmem:[%s2914_s4 + $0x68] sm:$0xff] %v1844_v38  ;;  %v1845_v63 = vpack.c.bf16 %v1489_v46, %v1487_v27  ;;  %v1846_v2 = vpack.c.bf16 %v1562_v54, %v1560_v28 }
 0x92f   :  { %1706 = vst [vmem:[%s2914_s4 + $0x70] sm:$0xff] %v1845_v63  ;;  %1707 = vst [vmem:[%s2914_s4 + $0x78] sm:$0xff] %v1846_v2 }
 0x930   :  { %1712 = vsyncpa [#allocation6], 1 }

</bundles_post_ra>
